<compile_context>
chip_gen: v7x
topology: tpu7x:2x2x1
jax: 0.10.0
libtpu: 0.0.40
codegen_flags: <defaults>
</compile_context>

<pallas_src>
import functools

import jax
import jax.numpy as jnp
import numpy as np
from jax.experimental import pallas as pl
from jax.experimental.pallas import tpu as pltpu

NGRAMS = 7


def _round_up(x: int, m: int) -> int:
    return ((x + m - 1) // m) * m


# ----------------------------- Pallas hot path -----------------------------
def _hdc_fused_kernel(idx_ref, keys_ref, codebook_ref, o_ref, enc_ref, sems,
                      *, ngrams, num_channels, c_pad, w_pad):
    """Fused codebook row-gather + MAP n-gram bind/bundle.

    idx_ref      : SMEM (B*C,) int32  scalar-prefetched codebook row ids
    keys_ref     : VMEM (w_pad, D)    key HVs, rows >= num_windows pre-zeroed
    codebook_ref : HBM  (V, D)        concat(motion_levels, hr_levels) codebook
    o_ref        : VMEM (B, D)        bundled output hypervectors
    enc_ref      : VMEM (B*c_pad, D)  scratch: gathered level HVs at t=0
    sems         : DMA semaphores (B*c_pad,)
    """
    B, D = o_ref.shape
    C = num_channels
    n = ngrams

    # --- 1) Gather: one row DMA per (batch, channel), all in flight at once.
    # Pad rows (c >= C) are filled with a duplicate of a valid row so every
    # scratch value is a finite +-1: their windows are masked by the zeroed key
    # rows below, and 0 * NaN from uninitialized VMEM would otherwise poison
    # the bundle sum.
    copies = []
    for b in range(B):
        for c in range(c_pad):
            src = idx_ref[b * C + (c if c < C else 0)]
            cp = pltpu.make_async_copy(
                codebook_ref.at[pl.ds(src, 1)],          # (1, D) HBM row
                enc_ref.at[pl.ds(b * c_pad + c, 1)],     # (1, D) VMEM row
                sems.at[b * c_pad + c])
            cp.start()
            copies.append(cp)
    for cp in copies:
        cp.wait()

    # --- 2) n-gram products.
    # prod[b, w] = prod_j roll_D(enc[b, w+1+j], n-1-j)   (valid for w < C-n).
    # Both rolls are XLU ops on the full (8,128)-aligned flat slab; valid rows
    # never read pad rows nor cross a batch boundary (w+1+j <= C-1 < c_pad).
    # The VPU multiplies only touch the aligned (B, w_pad, D) window slab.
    enc = enc_ref[...]                                     # (B*c_pad, D)
    prod = None
    for j in range(n):
        lane_shift = n - 1 - j
        r = enc if lane_shift == 0 else pltpu.roll(enc, shift=lane_shift, axis=1)
        # bring row (w + 1 + j) of each batch slab down to row w
        r = pltpu.roll(r, shift=B * c_pad - (1 + j), axis=0)
        r = r.reshape(B, c_pad, D)[:, :w_pad, :]           # aligned tile subset
        prod = r if prod is None else prod * r

    # --- 3) bind with pre-masked keys, bundle (sum) over windows:
    # a single dense, lane-aligned (B, D) store.
    o_ref[...] = jnp.sum(keys_ref[...][None, :, :] * prod, axis=1)


def hdc_encode(idx, keys_padded, codebook, *, num_channels, ngrams=NGRAMS):
    """idx: (B*C,) int32 codebook rows; keys_padded: (w_pad, D); codebook: (V, D)."""
    C = num_channels
    B = idx.shape[0] // C
    assert idx.shape == (B * C,)
    w_pad, D = keys_padded.shape
    assert codebook.shape[1] == D
    num_windows = C - ngrams
    assert num_windows >= 1, "need at least one n-gram window"
    assert D % 128 == 0, "HD dimension must be lane-aligned (pad D to 128)"
    assert w_pad == _round_up(num_windows, 8)
    c_pad = _round_up(C, 8)

    # TODO(synk): for large B (or torchhd-scale D ~10k), add a grid over B
    # marked "parallel" -- uses v7x's 2nd TensorCore and bounds per-step VMEM
    # (v7x scoped VMEM is half of v5e/v6e).  At B=2 a single step is fastest.
    kernel = functools.partial(_hdc_fused_kernel, ngrams=ngrams,
                               num_channels=C, c_pad=c_pad, w_pad=w_pad)
    return pl.pallas_call(
        kernel,
        out_shape=jax.ShapeDtypeStruct((B, D), codebook.dtype),
        grid_spec=pltpu.PrefetchScalarGridSpec(
            num_scalar_prefetch=1,            # idx -> SMEM before the grid runs
            grid=(1,),                        # whole (tiny) problem in one step
            in_specs=[
                pl.BlockSpec((w_pad, D), lambda i, idx: (0, 0)),   # keys (VMEM)
                pl.BlockSpec(memory_space=pl.ANY),                 # codebook (HBM)
            ],
            out_specs=pl.BlockSpec((B, D), lambda i, idx: (0, 0)),
            scratch_shapes=[
                pltpu.VMEM((B * c_pad, D), codebook.dtype),
                pltpu.SemaphoreType.DMA((B * c_pad,)),
            ]),
        compiler_params=pltpu.CompilerParams(
            dimension_semantics=("arbitrary",)),
    )(idx, keys_padded, codebook)


# ------------------------------- JAX glue ----------------------------------
def make_bipolar(key, shape, dtype=jnp.float32):
    return jnp.where(jax.random.bernoulli(key, 0.5, shape), 1.0, -1.0).astype(dtype)


def level_index(values, n_levels, low, high):
    # torchhd embeddings.Level forward: value -> nearest level index.
    idx = jnp.round((values - low) / (high - low) * (n_levels - 1))
    return jnp.clip(idx, 0, n_levels - 1).astype(jnp.int32)


def prepare_encoder_params(params, ngrams=NGRAMS):
    """One-time (init-time) packing of the module parameters for the fused kernel."""
    keys = params["keys"]                               # (C, D)
    C, D = keys.shape
    num_windows = C - ngrams
    w_pad = _round_up(num_windows, 8)
    # keys[:-ngrams], zero-padded to an (8,128)-aligned slab; the zero rows
    # double as the mask for invalid / padded window rows inside the kernel.
    keys_padded = jnp.zeros((w_pad, D), keys.dtype).at[:num_windows].set(
        keys[:num_windows])
    # Single codebook so one scalar index addresses both Level embeddings.
    codebook = jnp.concatenate([params["motion_weight"], params["hr_weight"]],
                               axis=0)
    # TODO(synk): on v6e/v7x, bf16 storage for keys_padded / codebook (values
    # are exactly +-1, sums of <= num_windows terms are exact) would halve DMA
    # bytes; float32 is kept so one code path also suits v5e (no bf16 VALU).
    return dict(keys_padded=keys_padded, codebook=codebook,
                num_channels=C,
                motion_levels=params["motion_weight"].shape[0],
                hr_levels=params["hr_weight"].shape[0],
                hr_offset=params["motion_weight"].shape[0])


def hdc_generic_encoder_forward(enc_params, x, ngrams=NGRAMS):
    # The module only uses time step 0 of the encoded levels, so only B*C
    # scalar codebook indices are computed here; the codebook gather itself is
    # fused into the Pallas kernel via the scalar-prefetched row ids.
    x0 = x[:, 0, :]                                               # (B, C)
    idx_motion = level_index(x0[:, :-1], enc_params["motion_levels"], -3.0, 3.0)
    idx_hr = level_index(x0[:, -1:], enc_params["hr_levels"], 50.0, 200.0)
    idx = jnp.concatenate([idx_motion, idx_hr + enc_params["hr_offset"]],
                          axis=1).reshape(-1)                     # (B*C,) int32
    hvs = hdc_encode(idx, enc_params["keys_padded"], enc_params["codebook"],
                     num_channels=enc_params["num_channels"], ngrams=ngrams)
    # final functional.multiset over the singleton "stack" dim is the identity
    return hvs


# --------------------------- pure-JAX reference -----------------------------
def reference_forward(params, x, ngrams=NGRAMS):
    # Direct transcription of the PyTorch module (gather over all T, use t=0).
    motion = x[:, :, :-1]
    hr = x[:, :, -1:]
    mw, hw = params["motion_weight"], params["hr_weight"]
    enc = jnp.concatenate(
        [mw[level_index(motion, mw.shape[0], -3.0, 3.0)],
         hw[level_index(hr, hw.shape[0], 50.0, 200.0)]], axis=2)
    enc0 = enc[:, 0]                                              # (B, C, D)
    keys = params["keys"]
    B, C, D = enc0.shape
    W = C - ngrams
    prod = jnp.ones((B, W, D), enc0.dtype)
    for j in range(ngrams):
        rj = jnp.roll(enc0, ngrams - 1 - j, axis=-1)
        prod = prod * rj[:, 1 + j:1 + j + W, :]
    return jnp.sum(keys[None, :W, :] * prod, axis=1)


if __name__ == "__main__":
    key = jax.random.PRNGKey(0)
    B, T, C, D = 2, 4, 12, 256   # input_size = C = 12, out_dimension = D = 256
    k1, k2, k3, k4, k5 = jax.random.split(key, 5)

    params = {
        "keys": make_bipolar(k1, (C, D)),               # embeddings.Random(C, D)
        # TODO(synk): torchhd Level uses correlated (interpolated) level
        # hypervectors; deterministic random +-1 codebooks are synthetic init.
        "motion_weight": make_bipolar(k2, (3000, D)),   # embeddings.Level(3000, D, -3, 3)
        "hr_weight": make_bipolar(k3, (200, D)),        # embeddings.Level(200, D, 50, 200)
    }
    enc_params = prepare_encoder_params(params)

    motion = jax.random.uniform(k4, (B, T, C - 1), minval=-3.0, maxval=3.0)
    hr = jax.random.uniform(k5, (B, T, 1), minval=50.0, maxval=200.0)
    x = jnp.concatenate([motion, hr], axis=-1).astype(jnp.float32)   # (B, T, C)

    out = hdc_generic_encoder_forward(enc_params, x)
    out = jax.block_until_ready(out)

    ref = reference_forward(params, x)
    assert out.shape == (B, D)
    np.testing.assert_allclose(np.asarray(out), np.asarray(ref), rtol=0, atol=1e-5)
    print("KERNEL_OK")
</pallas_src>

<mosaic_0001>
module attributes {stable_mosaic.version = 11 : i64} {
  func.func @_hdc_fused_kernel(%arg0: i32, %arg1: memref<24xi32, #tpu.memory_space<smem>>, %arg2: memref<8x256xf32, #tpu.memory_space<vmem>>, %arg3: memref<3200x256xf32, #tpu.memory_space<any>>, %arg4: memref<2x256xf32, #tpu.memory_space<vmem>>, %arg5: memref<32x256xf32, #tpu.memory_space<vmem>>, %arg6: memref<32x!tpu.dma_semaphore, #tpu.memory_space<semaphore_mem>>) attributes {dimension_semantics = [#tpu.dimension_semantics<arbitrary>], iteration_bounds = array<i64: 1>, scalar_prefetch = 1 : i64, scratch_operands = 2 : i64, tpu.core_type = #tpu.core_type<tc>, window_params = [{pipeline_mode = #tpu.pipeline_mode<synchronous>, transform_indices = @transform_0, window_bounds = array<i64: 8, 256>}, {}, {pipeline_mode = #tpu.pipeline_mode<synchronous>, transform_indices = @transform_2, window_bounds = array<i64: 2, 256>}]} {
    %c0 = arith.constant 0 : index
    %0 = memref.load %arg1[%c0] : memref<24xi32, #tpu.memory_space<smem>>
    %c0_i32 = arith.constant 0 : i32
    %c0_i32_0 = arith.constant 0 : i32
    %1 = tpu.memref_slice %arg3[%0, %c0_i32_0] : memref<3200x256xf32, #tpu.memory_space<any>> -> memref<1x256xf32, #tpu.memory_space<any>>
    %c0_i32_1 = arith.constant 0 : i32
    %c0_i32_2 = arith.constant 0 : i32
    %2 = tpu.memref_slice %arg5[%c0_i32_1, %c0_i32_2] : memref<32x256xf32, #tpu.memory_space<vmem>> -> memref<1x256xf32, #tpu.memory_space<vmem>>
    %3 = tpu.memref_slice %arg6[%c0_i32] : memref<32x!tpu.dma_semaphore, #tpu.memory_space<semaphore_mem>> -> memref<1x!tpu.dma_semaphore, #tpu.memory_space<semaphore_mem>>
    %4 = tpu.memref_squeeze %3 : memref<1x!tpu.dma_semaphore, #tpu.memory_space<semaphore_mem>> -> memref<!tpu.dma_semaphore, #tpu.memory_space<semaphore_mem>>
    tpu.enqueue_dma source(%1 : memref<1x256xf32, #tpu.memory_space<any>>) target(%2 : memref<1x256xf32, #tpu.memory_space<vmem>>) target_semaphore(%4 : memref<!tpu.dma_semaphore, #tpu.memory_space<semaphore_mem>>)
    %c1 = arith.constant 1 : index
    %5 = memref.load %arg1[%c1] : memref<24xi32, #tpu.memory_space<smem>>
    %c1_i32 = arith.constant 1 : i32
    %c0_i32_3 = arith.constant 0 : i32
    %6 = tpu.memref_slice %arg3[%5, %c0_i32_3] : memref<3200x256xf32, #tpu.memory_space<any>> -> memref<1x256xf32, #tpu.memory_space<any>>
    %c1_i32_4 = arith.constant 1 : i32
    %c0_i32_5 = arith.constant 0 : i32
    %7 = tpu.memref_slice %arg5[%c1_i32_4, %c0_i32_5] : memref<32x256xf32, #tpu.memory_space<vmem>> -> memref<1x256xf32, #tpu.memory_space<vmem>>
    %8 = tpu.memref_slice %arg6[%c1_i32] : memref<32x!tpu.dma_semaphore, #tpu.memory_space<semaphore_mem>> -> memref<1x!tpu.dma_semaphore, #tpu.memory_space<semaphore_mem>>
    %9 = tpu.memref_squeeze %8 : memref<1x!tpu.dma_semaphore, #tpu.memory_space<semaphore_mem>> -> memref<!tpu.dma_semaphore, #tpu.memory_space<semaphore_mem>>
    tpu.enqueue_dma source(%6 : memref<1x256xf32, #tpu.memory_space<any>>) target(%7 : memref<1x256xf32, #tpu.memory_space<vmem>>) target_semaphore(%9 : memref<!tpu.dma_semaphore, #tpu.memory_space<semaphore_mem>>)
    %c2 = arith.constant 2 : index
    %10 = memref.load %arg1[%c2] : memref<24xi32, #tpu.memory_space<smem>>
    %c2_i32 = arith.constant 2 : i32
    %c0_i32_6 = arith.constant 0 : i32
    %11 = tpu.memref_slice %arg3[%10, %c0_i32_6] : memref<3200x256xf32, #tpu.memory_space<any>> -> memref<1x256xf32, #tpu.memory_space<any>>
    %c2_i32_7 = arith.constant 2 : i32
    %c0_i32_8 = arith.constant 0 : i32
    %12 = tpu.memref_slice %arg5[%c2_i32_7, %c0_i32_8] : memref<32x256xf32, #tpu.memory_space<vmem>> -> memref<1x256xf32, #tpu.memory_space<vmem>>
    %13 = tpu.memref_slice %arg6[%c2_i32] : memref<32x!tpu.dma_semaphore, #tpu.memory_space<semaphore_mem>> -> memref<1x!tpu.dma_semaphore, #tpu.memory_space<semaphore_mem>>
    %14 = tpu.memref_squeeze %13 : memref<1x!tpu.dma_semaphore, #tpu.memory_space<semaphore_mem>> -> memref<!tpu.dma_semaphore, #tpu.memory_space<semaphore_mem>>
    tpu.enqueue_dma source(%11 : memref<1x256xf32, #tpu.memory_space<any>>) target(%12 : memref<1x256xf32, #tpu.memory_space<vmem>>) target_semaphore(%14 : memref<!tpu.dma_semaphore, #tpu.memory_space<semaphore_mem>>)
    %c3 = arith.constant 3 : index
    %15 = memref.load %arg1[%c3] : memref<24xi32, #tpu.memory_space<smem>>
    %c3_i32 = arith.constant 3 : i32
    %c0_i32_9 = arith.constant 0 : i32
    %16 = tpu.memref_slice %arg3[%15, %c0_i32_9] : memref<3200x256xf32, #tpu.memory_space<any>> -> memref<1x256xf32, #tpu.memory_space<any>>
    %c3_i32_10 = arith.constant 3 : i32
    %c0_i32_11 = arith.constant 0 : i32
    %17 = tpu.memref_slice %arg5[%c3_i32_10, %c0_i32_11] : memref<32x256xf32, #tpu.memory_space<vmem>> -> memref<1x256xf32, #tpu.memory_space<vmem>>
    %18 = tpu.memref_slice %arg6[%c3_i32] : memref<32x!tpu.dma_semaphore, #tpu.memory_space<semaphore_mem>> -> memref<1x!tpu.dma_semaphore, #tpu.memory_space<semaphore_mem>>
    %19 = tpu.memref_squeeze %18 : memref<1x!tpu.dma_semaphore, #tpu.memory_space<semaphore_mem>> -> memref<!tpu.dma_semaphore, #tpu.memory_space<semaphore_mem>>
    tpu.enqueue_dma source(%16 : memref<1x256xf32, #tpu.memory_space<any>>) target(%17 : memref<1x256xf32, #tpu.memory_space<vmem>>) target_semaphore(%19 : memref<!tpu.dma_semaphore, #tpu.memory_space<semaphore_mem>>)
    %c4 = arith.constant 4 : index
    %20 = memref.load %arg1[%c4] : memref<24xi32, #tpu.memory_space<smem>>
    %c4_i32 = arith.constant 4 : i32
    %c0_i32_12 = arith.constant 0 : i32
    %21 = tpu.memref_slice %arg3[%20, %c0_i32_12] : memref<3200x256xf32, #tpu.memory_space<any>> -> memref<1x256xf32, #tpu.memory_space<any>>
    %c4_i32_13 = arith.constant 4 : i32
    %c0_i32_14 = arith.constant 0 : i32
    %22 = tpu.memref_slice %arg5[%c4_i32_13, %c0_i32_14] : memref<32x256xf32, #tpu.memory_space<vmem>> -> memref<1x256xf32, #tpu.memory_space<vmem>>
    %23 = tpu.memref_slice %arg6[%c4_i32] : memref<32x!tpu.dma_semaphore, #tpu.memory_space<semaphore_mem>> -> memref<1x!tpu.dma_semaphore, #tpu.memory_space<semaphore_mem>>
    %24 = tpu.memref_squeeze %23 : memref<1x!tpu.dma_semaphore, #tpu.memory_space<semaphore_mem>> -> memref<!tpu.dma_semaphore, #tpu.memory_space<semaphore_mem>>
    tpu.enqueue_dma source(%21 : memref<1x256xf32, #tpu.memory_space<any>>) target(%22 : memref<1x256xf32, #tpu.memory_space<vmem>>) target_semaphore(%24 : memref<!tpu.dma_semaphore, #tpu.memory_space<semaphore_mem>>)
    %c5 = arith.constant 5 : index
    %25 = memref.load %arg1[%c5] : memref<24xi32, #tpu.memory_space<smem>>
    %c5_i32 = arith.constant 5 : i32
    %c0_i32_15 = arith.constant 0 : i32
    %26 = tpu.memref_slice %arg3[%25, %c0_i32_15] : memref<3200x256xf32, #tpu.memory_space<any>> -> memref<1x256xf32, #tpu.memory_space<any>>
    %c5_i32_16 = arith.constant 5 : i32
    %c0_i32_17 = arith.constant 0 : i32
    %27 = tpu.memref_slice %arg5[%c5_i32_16, %c0_i32_17] : memref<32x256xf32, #tpu.memory_space<vmem>> -> memref<1x256xf32, #tpu.memory_space<vmem>>
    %28 = tpu.memref_slice %arg6[%c5_i32] : memref<32x!tpu.dma_semaphore, #tpu.memory_space<semaphore_mem>> -> memref<1x!tpu.dma_semaphore, #tpu.memory_space<semaphore_mem>>
    %29 = tpu.memref_squeeze %28 : memref<1x!tpu.dma_semaphore, #tpu.memory_space<semaphore_mem>> -> memref<!tpu.dma_semaphore, #tpu.memory_space<semaphore_mem>>
    tpu.enqueue_dma source(%26 : memref<1x256xf32, #tpu.memory_space<any>>) target(%27 : memref<1x256xf32, #tpu.memory_space<vmem>>) target_semaphore(%29 : memref<!tpu.dma_semaphore, #tpu.memory_space<semaphore_mem>>)
    %c6 = arith.constant 6 : index
    %30 = memref.load %arg1[%c6] : memref<24xi32, #tpu.memory_space<smem>>
    %c6_i32 = arith.constant 6 : i32
    %c0_i32_18 = arith.constant 0 : i32
    %31 = tpu.memref_slice %arg3[%30, %c0_i32_18] : memref<3200x256xf32, #tpu.memory_space<any>> -> memref<1x256xf32, #tpu.memory_space<any>>
    %c6_i32_19 = arith.constant 6 : i32
    %c0_i32_20 = arith.constant 0 : i32
    %32 = tpu.memref_slice %arg5[%c6_i32_19, %c0_i32_20] : memref<32x256xf32, #tpu.memory_space<vmem>> -> memref<1x256xf32, #tpu.memory_space<vmem>>
    %33 = tpu.memref_slice %arg6[%c6_i32] : memref<32x!tpu.dma_semaphore, #tpu.memory_space<semaphore_mem>> -> memref<1x!tpu.dma_semaphore, #tpu.memory_space<semaphore_mem>>
    %34 = tpu.memref_squeeze %33 : memref<1x!tpu.dma_semaphore, #tpu.memory_space<semaphore_mem>> -> memref<!tpu.dma_semaphore, #tpu.memory_space<semaphore_mem>>
    tpu.enqueue_dma source(%31 : memref<1x256xf32, #tpu.memory_space<any>>) target(%32 : memref<1x256xf32, #tpu.memory_space<vmem>>) target_semaphore(%34 : memref<!tpu.dma_semaphore, #tpu.memory_space<semaphore_mem>>)
    %c7 = arith.constant 7 : index
    %35 = memref.load %arg1[%c7] : memref<24xi32, #tpu.memory_space<smem>>
    %c7_i32 = arith.constant 7 : i32
    %c0_i32_21 = arith.constant 0 : i32
    %36 = tpu.memref_slice %arg3[%35, %c0_i32_21] : memref<3200x256xf32, #tpu.memory_space<any>> -> memref<1x256xf32, #tpu.memory_space<any>>
    %c7_i32_22 = arith.constant 7 : i32
    %c0_i32_23 = arith.constant 0 : i32
    %37 = tpu.memref_slice %arg5[%c7_i32_22, %c0_i32_23] : memref<32x256xf32, #tpu.memory_space<vmem>> -> memref<1x256xf32, #tpu.memory_space<vmem>>
    %38 = tpu.memref_slice %arg6[%c7_i32] : memref<32x!tpu.dma_semaphore, #tpu.memory_space<semaphore_mem>> -> memref<1x!tpu.dma_semaphore, #tpu.memory_space<semaphore_mem>>
    %39 = tpu.memref_squeeze %38 : memref<1x!tpu.dma_semaphore, #tpu.memory_space<semaphore_mem>> -> memref<!tpu.dma_semaphore, #tpu.memory_space<semaphore_mem>>
    tpu.enqueue_dma source(%36 : memref<1x256xf32, #tpu.memory_space<any>>) target(%37 : memref<1x256xf32, #tpu.memory_space<vmem>>) target_semaphore(%39 : memref<!tpu.dma_semaphore, #tpu.memory_space<semaphore_mem>>)
    %c8 = arith.constant 8 : index
    %40 = memref.load %arg1[%c8] : memref<24xi32, #tpu.memory_space<smem>>
    %c8_i32 = arith.constant 8 : i32
    %c0_i32_24 = arith.constant 0 : i32
    %41 = tpu.memref_slice %arg3[%40, %c0_i32_24] : memref<3200x256xf32, #tpu.memory_space<any>> -> memref<1x256xf32, #tpu.memory_space<any>>
    %c8_i32_25 = arith.constant 8 : i32
    %c0_i32_26 = arith.constant 0 : i32
    %42 = tpu.memref_slice %arg5[%c8_i32_25, %c0_i32_26] : memref<32x256xf32, #tpu.memory_space<vmem>> -> memref<1x256xf32, #tpu.memory_space<vmem>>
    %43 = tpu.memref_slice %arg6[%c8_i32] : memref<32x!tpu.dma_semaphore, #tpu.memory_space<semaphore_mem>> -> memref<1x!tpu.dma_semaphore, #tpu.memory_space<semaphore_mem>>
    %44 = tpu.memref_squeeze %43 : memref<1x!tpu.dma_semaphore, #tpu.memory_space<semaphore_mem>> -> memref<!tpu.dma_semaphore, #tpu.memory_space<semaphore_mem>>
    tpu.enqueue_dma source(%41 : memref<1x256xf32, #tpu.memory_space<any>>) target(%42 : memref<1x256xf32, #tpu.memory_space<vmem>>) target_semaphore(%44 : memref<!tpu.dma_semaphore, #tpu.memory_space<semaphore_mem>>)
    %c9 = arith.constant 9 : index
    %45 = memref.load %arg1[%c9] : memref<24xi32, #tpu.memory_space<smem>>
    %c9_i32 = arith.constant 9 : i32
    %c0_i32_27 = arith.constant 0 : i32
    %46 = tpu.memref_slice %arg3[%45, %c0_i32_27] : memref<3200x256xf32, #tpu.memory_space<any>> -> memref<1x256xf32, #tpu.memory_space<any>>
    %c9_i32_28 = arith.constant 9 : i32
    %c0_i32_29 = arith.constant 0 : i32
    %47 = tpu.memref_slice %arg5[%c9_i32_28, %c0_i32_29] : memref<32x256xf32, #tpu.memory_space<vmem>> -> memref<1x256xf32, #tpu.memory_space<vmem>>
    %48 = tpu.memref_slice %arg6[%c9_i32] : memref<32x!tpu.dma_semaphore, #tpu.memory_space<semaphore_mem>> -> memref<1x!tpu.dma_semaphore, #tpu.memory_space<semaphore_mem>>
    %49 = tpu.memref_squeeze %48 : memref<1x!tpu.dma_semaphore, #tpu.memory_space<semaphore_mem>> -> memref<!tpu.dma_semaphore, #tpu.memory_space<semaphore_mem>>
    tpu.enqueue_dma source(%46 : memref<1x256xf32, #tpu.memory_space<any>>) target(%47 : memref<1x256xf32, #tpu.memory_space<vmem>>) target_semaphore(%49 : memref<!tpu.dma_semaphore, #tpu.memory_space<semaphore_mem>>)
    %c10 = arith.constant 10 : index
    %50 = memref.load %arg1[%c10] : memref<24xi32, #tpu.memory_space<smem>>
    %c10_i32 = arith.constant 10 : i32
    %c0_i32_30 = arith.constant 0 : i32
    %51 = tpu.memref_slice %arg3[%50, %c0_i32_30] : memref<3200x256xf32, #tpu.memory_space<any>> -> memref<1x256xf32, #tpu.memory_space<any>>
    %c10_i32_31 = arith.constant 10 : i32
    %c0_i32_32 = arith.constant 0 : i32
    %52 = tpu.memref_slice %arg5[%c10_i32_31, %c0_i32_32] : memref<32x256xf32, #tpu.memory_space<vmem>> -> memref<1x256xf32, #tpu.memory_space<vmem>>
    %53 = tpu.memref_slice %arg6[%c10_i32] : memref<32x!tpu.dma_semaphore, #tpu.memory_space<semaphore_mem>> -> memref<1x!tpu.dma_semaphore, #tpu.memory_space<semaphore_mem>>
    %54 = tpu.memref_squeeze %53 : memref<1x!tpu.dma_semaphore, #tpu.memory_space<semaphore_mem>> -> memref<!tpu.dma_semaphore, #tpu.memory_space<semaphore_mem>>
    tpu.enqueue_dma source(%51 : memref<1x256xf32, #tpu.memory_space<any>>) target(%52 : memref<1x256xf32, #tpu.memory_space<vmem>>) target_semaphore(%54 : memref<!tpu.dma_semaphore, #tpu.memory_space<semaphore_mem>>)
    %c11 = arith.constant 11 : index
    %55 = memref.load %arg1[%c11] : memref<24xi32, #tpu.memory_space<smem>>
    %c11_i32 = arith.constant 11 : i32
    %c0_i32_33 = arith.constant 0 : i32
    %56 = tpu.memref_slice %arg3[%55, %c0_i32_33] : memref<3200x256xf32, #tpu.memory_space<any>> -> memref<1x256xf32, #tpu.memory_space<any>>
    %c11_i32_34 = arith.constant 11 : i32
    %c0_i32_35 = arith.constant 0 : i32
    %57 = tpu.memref_slice %arg5[%c11_i32_34, %c0_i32_35] : memref<32x256xf32, #tpu.memory_space<vmem>> -> memref<1x256xf32, #tpu.memory_space<vmem>>
    %58 = tpu.memref_slice %arg6[%c11_i32] : memref<32x!tpu.dma_semaphore, #tpu.memory_space<semaphore_mem>> -> memref<1x!tpu.dma_semaphore, #tpu.memory_space<semaphore_mem>>
    %59 = tpu.memref_squeeze %58 : memref<1x!tpu.dma_semaphore, #tpu.memory_space<semaphore_mem>> -> memref<!tpu.dma_semaphore, #tpu.memory_space<semaphore_mem>>
    tpu.enqueue_dma source(%56 : memref<1x256xf32, #tpu.memory_space<any>>) target(%57 : memref<1x256xf32, #tpu.memory_space<vmem>>) target_semaphore(%59 : memref<!tpu.dma_semaphore, #tpu.memory_space<semaphore_mem>>)
    %c0_36 = arith.constant 0 : index
    %60 = memref.load %arg1[%c0_36] : memref<24xi32, #tpu.memory_space<smem>>
    %c12_i32 = arith.constant 12 : i32
    %c0_i32_37 = arith.constant 0 : i32
    %61 = tpu.memref_slice %arg3[%60, %c0_i32_37] : memref<3200x256xf32, #tpu.memory_space<any>> -> memref<1x256xf32, #tpu.memory_space<any>>
    %c12_i32_38 = arith.constant 12 : i32
    %c0_i32_39 = arith.constant 0 : i32
    %62 = tpu.memref_slice %arg5[%c12_i32_38, %c0_i32_39] : memref<32x256xf32, #tpu.memory_space<vmem>> -> memref<1x256xf32, #tpu.memory_space<vmem>>
    %63 = tpu.memref_slice %arg6[%c12_i32] : memref<32x!tpu.dma_semaphore, #tpu.memory_space<semaphore_mem>> -> memref<1x!tpu.dma_semaphore, #tpu.memory_space<semaphore_mem>>
    %64 = tpu.memref_squeeze %63 : memref<1x!tpu.dma_semaphore, #tpu.memory_space<semaphore_mem>> -> memref<!tpu.dma_semaphore, #tpu.memory_space<semaphore_mem>>
    tpu.enqueue_dma source(%61 : memref<1x256xf32, #tpu.memory_space<any>>) target(%62 : memref<1x256xf32, #tpu.memory_space<vmem>>) target_semaphore(%64 : memref<!tpu.dma_semaphore, #tpu.memory_space<semaphore_mem>>)
    %c0_40 = arith.constant 0 : index
    %65 = memref.load %arg1[%c0_40] : memref<24xi32, #tpu.memory_space<smem>>
    %c13_i32 = arith.constant 13 : i32
    %c0_i32_41 = arith.constant 0 : i32
    %66 = tpu.memref_slice %arg3[%65, %c0_i32_41] : memref<3200x256xf32, #tpu.memory_space<any>> -> memref<1x256xf32, #tpu.memory_space<any>>
    %c13_i32_42 = arith.constant 13 : i32
    %c0_i32_43 = arith.constant 0 : i32
    %67 = tpu.memref_slice %arg5[%c13_i32_42, %c0_i32_43] : memref<32x256xf32, #tpu.memory_space<vmem>> -> memref<1x256xf32, #tpu.memory_space<vmem>>
    %68 = tpu.memref_slice %arg6[%c13_i32] : memref<32x!tpu.dma_semaphore, #tpu.memory_space<semaphore_mem>> -> memref<1x!tpu.dma_semaphore, #tpu.memory_space<semaphore_mem>>
    %69 = tpu.memref_squeeze %68 : memref<1x!tpu.dma_semaphore, #tpu.memory_space<semaphore_mem>> -> memref<!tpu.dma_semaphore, #tpu.memory_space<semaphore_mem>>
    tpu.enqueue_dma source(%66 : memref<1x256xf32, #tpu.memory_space<any>>) target(%67 : memref<1x256xf32, #tpu.memory_space<vmem>>) target_semaphore(%69 : memref<!tpu.dma_semaphore, #tpu.memory_space<semaphore_mem>>)
    %c0_44 = arith.constant 0 : index
    %70 = memref.load %arg1[%c0_44] : memref<24xi32, #tpu.memory_space<smem>>
    %c14_i32 = arith.constant 14 : i32
    %c0_i32_45 = arith.constant 0 : i32
    %71 = tpu.memref_slice %arg3[%70, %c0_i32_45] : memref<3200x256xf32, #tpu.memory_space<any>> -> memref<1x256xf32, #tpu.memory_space<any>>
    %c14_i32_46 = arith.constant 14 : i32
    %c0_i32_47 = arith.constant 0 : i32
    %72 = tpu.memref_slice %arg5[%c14_i32_46, %c0_i32_47] : memref<32x256xf32, #tpu.memory_space<vmem>> -> memref<1x256xf32, #tpu.memory_space<vmem>>
    %73 = tpu.memref_slice %arg6[%c14_i32] : memref<32x!tpu.dma_semaphore, #tpu.memory_space<semaphore_mem>> -> memref<1x!tpu.dma_semaphore, #tpu.memory_space<semaphore_mem>>
    %74 = tpu.memref_squeeze %73 : memref<1x!tpu.dma_semaphore, #tpu.memory_space<semaphore_mem>> -> memref<!tpu.dma_semaphore, #tpu.memory_space<semaphore_mem>>
    tpu.enqueue_dma source(%71 : memref<1x256xf32, #tpu.memory_space<any>>) target(%72 : memref<1x256xf32, #tpu.memory_space<vmem>>) target_semaphore(%74 : memref<!tpu.dma_semaphore, #tpu.memory_space<semaphore_mem>>)
    %c0_48 = arith.constant 0 : index
    %75 = memref.load %arg1[%c0_48] : memref<24xi32, #tpu.memory_space<smem>>
    %c15_i32 = arith.constant 15 : i32
    %c0_i32_49 = arith.constant 0 : i32
    %76 = tpu.memref_slice %arg3[%75, %c0_i32_49] : memref<3200x256xf32, #tpu.memory_space<any>> -> memref<1x256xf32, #tpu.memory_space<any>>
    %c15_i32_50 = arith.constant 15 : i32
    %c0_i32_51 = arith.constant 0 : i32
    %77 = tpu.memref_slice %arg5[%c15_i32_50, %c0_i32_51] : memref<32x256xf32, #tpu.memory_space<vmem>> -> memref<1x256xf32, #tpu.memory_space<vmem>>
    %78 = tpu.memref_slice %arg6[%c15_i32] : memref<32x!tpu.dma_semaphore, #tpu.memory_space<semaphore_mem>> -> memref<1x!tpu.dma_semaphore, #tpu.memory_space<semaphore_mem>>
    %79 = tpu.memref_squeeze %78 : memref<1x!tpu.dma_semaphore, #tpu.memory_space<semaphore_mem>> -> memref<!tpu.dma_semaphore, #tpu.memory_space<semaphore_mem>>
    tpu.enqueue_dma source(%76 : memref<1x256xf32, #tpu.memory_space<any>>) target(%77 : memref<1x256xf32, #tpu.memory_space<vmem>>) target_semaphore(%79 : memref<!tpu.dma_semaphore, #tpu.memory_space<semaphore_mem>>)
    %c12 = arith.constant 12 : index
    %80 = memref.load %arg1[%c12] : memref<24xi32, #tpu.memory_space<smem>>
    %c16_i32 = arith.constant 16 : i32
    %c0_i32_52 = arith.constant 0 : i32
    %81 = tpu.memref_slice %arg3[%80, %c0_i32_52] : memref<3200x256xf32, #tpu.memory_space<any>> -> memref<1x256xf32, #tpu.memory_space<any>>
    %c16_i32_53 = arith.constant 16 : i32
    %c0_i32_54 = arith.constant 0 : i32
    %82 = tpu.memref_slice %arg5[%c16_i32_53, %c0_i32_54] : memref<32x256xf32, #tpu.memory_space<vmem>> -> memref<1x256xf32, #tpu.memory_space<vmem>>
    %83 = tpu.memref_slice %arg6[%c16_i32] : memref<32x!tpu.dma_semaphore, #tpu.memory_space<semaphore_mem>> -> memref<1x!tpu.dma_semaphore, #tpu.memory_space<semaphore_mem>>
    %84 = tpu.memref_squeeze %83 : memref<1x!tpu.dma_semaphore, #tpu.memory_space<semaphore_mem>> -> memref<!tpu.dma_semaphore, #tpu.memory_space<semaphore_mem>>
    tpu.enqueue_dma source(%81 : memref<1x256xf32, #tpu.memory_space<any>>) target(%82 : memref<1x256xf32, #tpu.memory_space<vmem>>) target_semaphore(%84 : memref<!tpu.dma_semaphore, #tpu.memory_space<semaphore_mem>>)
    %c13 = arith.constant 13 : index
    %85 = memref.load %arg1[%c13] : memref<24xi32, #tpu.memory_space<smem>>
    %c17_i32 = arith.constant 17 : i32
    %c0_i32_55 = arith.constant 0 : i32
    %86 = tpu.memref_slice %arg3[%85, %c0_i32_55] : memref<3200x256xf32, #tpu.memory_space<any>> -> memref<1x256xf32, #tpu.memory_space<any>>
    %c17_i32_56 = arith.constant 17 : i32
    %c0_i32_57 = arith.constant 0 : i32
    %87 = tpu.memref_slice %arg5[%c17_i32_56, %c0_i32_57] : memref<32x256xf32, #tpu.memory_space<vmem>> -> memref<1x256xf32, #tpu.memory_space<vmem>>
    %88 = tpu.memref_slice %arg6[%c17_i32] : memref<32x!tpu.dma_semaphore, #tpu.memory_space<semaphore_mem>> -> memref<1x!tpu.dma_semaphore, #tpu.memory_space<semaphore_mem>>
    %89 = tpu.memref_squeeze %88 : memref<1x!tpu.dma_semaphore, #tpu.memory_space<semaphore_mem>> -> memref<!tpu.dma_semaphore, #tpu.memory_space<semaphore_mem>>
    tpu.enqueue_dma source(%86 : memref<1x256xf32, #tpu.memory_space<any>>) target(%87 : memref<1x256xf32, #tpu.memory_space<vmem>>) target_semaphore(%89 : memref<!tpu.dma_semaphore, #tpu.memory_space<semaphore_mem>>)
    %c14 = arith.constant 14 : index
    %90 = memref.load %arg1[%c14] : memref<24xi32, #tpu.memory_space<smem>>
    %c18_i32 = arith.constant 18 : i32
    %c0_i32_58 = arith.constant 0 : i32
    %91 = tpu.memref_slice %arg3[%90, %c0_i32_58] : memref<3200x256xf32, #tpu.memory_space<any>> -> memref<1x256xf32, #tpu.memory_space<any>>
    %c18_i32_59 = arith.constant 18 : i32
    %c0_i32_60 = arith.constant 0 : i32
    %92 = tpu.memref_slice %arg5[%c18_i32_59, %c0_i32_60] : memref<32x256xf32, #tpu.memory_space<vmem>> -> memref<1x256xf32, #tpu.memory_space<vmem>>
    %93 = tpu.memref_slice %arg6[%c18_i32] : memref<32x!tpu.dma_semaphore, #tpu.memory_space<semaphore_mem>> -> memref<1x!tpu.dma_semaphore, #tpu.memory_space<semaphore_mem>>
    %94 = tpu.memref_squeeze %93 : memref<1x!tpu.dma_semaphore, #tpu.memory_space<semaphore_mem>> -> memref<!tpu.dma_semaphore, #tpu.memory_space<semaphore_mem>>
    tpu.enqueue_dma source(%91 : memref<1x256xf32, #tpu.memory_space<any>>) target(%92 : memref<1x256xf32, #tpu.memory_space<vmem>>) target_semaphore(%94 : memref<!tpu.dma_semaphore, #tpu.memory_space<semaphore_mem>>)
    %c15 = arith.constant 15 : index
    %95 = memref.load %arg1[%c15] : memref<24xi32, #tpu.memory_space<smem>>
    %c19_i32 = arith.constant 19 : i32
    %c0_i32_61 = arith.constant 0 : i32
    %96 = tpu.memref_slice %arg3[%95, %c0_i32_61] : memref<3200x256xf32, #tpu.memory_space<any>> -> memref<1x256xf32, #tpu.memory_space<any>>
    %c19_i32_62 = arith.constant 19 : i32
    %c0_i32_63 = arith.constant 0 : i32
    %97 = tpu.memref_slice %arg5[%c19_i32_62, %c0_i32_63] : memref<32x256xf32, #tpu.memory_space<vmem>> -> memref<1x256xf32, #tpu.memory_space<vmem>>
    %98 = tpu.memref_slice %arg6[%c19_i32] : memref<32x!tpu.dma_semaphore, #tpu.memory_space<semaphore_mem>> -> memref<1x!tpu.dma_semaphore, #tpu.memory_space<semaphore_mem>>
    %99 = tpu.memref_squeeze %98 : memref<1x!tpu.dma_semaphore, #tpu.memory_space<semaphore_mem>> -> memref<!tpu.dma_semaphore, #tpu.memory_space<semaphore_mem>>
    tpu.enqueue_dma source(%96 : memref<1x256xf32, #tpu.memory_space<any>>) target(%97 : memref<1x256xf32, #tpu.memory_space<vmem>>) target_semaphore(%99 : memref<!tpu.dma_semaphore, #tpu.memory_space<semaphore_mem>>)
    %c16 = arith.constant 16 : index
    %100 = memref.load %arg1[%c16] : memref<24xi32, #tpu.memory_space<smem>>
    %c20_i32 = arith.constant 20 : i32
    %c0_i32_64 = arith.constant 0 : i32
    %101 = tpu.memref_slice %arg3[%100, %c0_i32_64] : memref<3200x256xf32, #tpu.memory_space<any>> -> memref<1x256xf32, #tpu.memory_space<any>>
    %c20_i32_65 = arith.constant 20 : i32
    %c0_i32_66 = arith.constant 0 : i32
    %102 = tpu.memref_slice %arg5[%c20_i32_65, %c0_i32_66] : memref<32x256xf32, #tpu.memory_space<vmem>> -> memref<1x256xf32, #tpu.memory_space<vmem>>
    %103 = tpu.memref_slice %arg6[%c20_i32] : memref<32x!tpu.dma_semaphore, #tpu.memory_space<semaphore_mem>> -> memref<1x!tpu.dma_semaphore, #tpu.memory_space<semaphore_mem>>
    %104 = tpu.memref_squeeze %103 : memref<1x!tpu.dma_semaphore, #tpu.memory_space<semaphore_mem>> -> memref<!tpu.dma_semaphore, #tpu.memory_space<semaphore_mem>>
    tpu.enqueue_dma source(%101 : memref<1x256xf32, #tpu.memory_space<any>>) target(%102 : memref<1x256xf32, #tpu.memory_space<vmem>>) target_semaphore(%104 : memref<!tpu.dma_semaphore, #tpu.memory_space<semaphore_mem>>)
    %c17 = arith.constant 17 : index
    %105 = memref.load %arg1[%c17] : memref<24xi32, #tpu.memory_space<smem>>
    %c21_i32 = arith.constant 21 : i32
    %c0_i32_67 = arith.constant 0 : i32
    %106 = tpu.memref_slice %arg3[%105, %c0_i32_67] : memref<3200x256xf32, #tpu.memory_space<any>> -> memref<1x256xf32, #tpu.memory_space<any>>
    %c21_i32_68 = arith.constant 21 : i32
    %c0_i32_69 = arith.constant 0 : i32
    %107 = tpu.memref_slice %arg5[%c21_i32_68, %c0_i32_69] : memref<32x256xf32, #tpu.memory_space<vmem>> -> memref<1x256xf32, #tpu.memory_space<vmem>>
    %108 = tpu.memref_slice %arg6[%c21_i32] : memref<32x!tpu.dma_semaphore, #tpu.memory_space<semaphore_mem>> -> memref<1x!tpu.dma_semaphore, #tpu.memory_space<semaphore_mem>>
    %109 = tpu.memref_squeeze %108 : memref<1x!tpu.dma_semaphore, #tpu.memory_space<semaphore_mem>> -> memref<!tpu.dma_semaphore, #tpu.memory_space<semaphore_mem>>
    tpu.enqueue_dma source(%106 : memref<1x256xf32, #tpu.memory_space<any>>) target(%107 : memref<1x256xf32, #tpu.memory_space<vmem>>) target_semaphore(%109 : memref<!tpu.dma_semaphore, #tpu.memory_space<semaphore_mem>>)
    %c18 = arith.constant 18 : index
    %110 = memref.load %arg1[%c18] : memref<24xi32, #tpu.memory_space<smem>>
    %c22_i32 = arith.constant 22 : i32
    %c0_i32_70 = arith.constant 0 : i32
    %111 = tpu.memref_slice %arg3[%110, %c0_i32_70] : memref<3200x256xf32, #tpu.memory_space<any>> -> memref<1x256xf32, #tpu.memory_space<any>>
    %c22_i32_71 = arith.constant 22 : i32
    %c0_i32_72 = arith.constant 0 : i32
    %112 = tpu.memref_slice %arg5[%c22_i32_71, %c0_i32_72] : memref<32x256xf32, #tpu.memory_space<vmem>> -> memref<1x256xf32, #tpu.memory_space<vmem>>
    %113 = tpu.memref_slice %arg6[%c22_i32] : memref<32x!tpu.dma_semaphore, #tpu.memory_space<semaphore_mem>> -> memref<1x!tpu.dma_semaphore, #tpu.memory_space<semaphore_mem>>
    %114 = tpu.memref_squeeze %113 : memref<1x!tpu.dma_semaphore, #tpu.memory_space<semaphore_mem>> -> memref<!tpu.dma_semaphore, #tpu.memory_space<semaphore_mem>>
    tpu.enqueue_dma source(%111 : memref<1x256xf32, #tpu.memory_space<any>>) target(%112 : memref<1x256xf32, #tpu.memory_space<vmem>>) target_semaphore(%114 : memref<!tpu.dma_semaphore, #tpu.memory_space<semaphore_mem>>)
    %c19 = arith.constant 19 : index
    %115 = memref.load %arg1[%c19] : memref<24xi32, #tpu.memory_space<smem>>
    %c23_i32 = arith.constant 23 : i32
    %c0_i32_73 = arith.constant 0 : i32
    %116 = tpu.memref_slice %arg3[%115, %c0_i32_73] : memref<3200x256xf32, #tpu.memory_space<any>> -> memref<1x256xf32, #tpu.memory_space<any>>
    %c23_i32_74 = arith.constant 23 : i32
    %c0_i32_75 = arith.constant 0 : i32
    %117 = tpu.memref_slice %arg5[%c23_i32_74, %c0_i32_75] : memref<32x256xf32, #tpu.memory_space<vmem>> -> memref<1x256xf32, #tpu.memory_space<vmem>>
    %118 = tpu.memref_slice %arg6[%c23_i32] : memref<32x!tpu.dma_semaphore, #tpu.memory_space<semaphore_mem>> -> memref<1x!tpu.dma_semaphore, #tpu.memory_space<semaphore_mem>>
    %119 = tpu.memref_squeeze %118 : memref<1x!tpu.dma_semaphore, #tpu.memory_space<semaphore_mem>> -> memref<!tpu.dma_semaphore, #tpu.memory_space<semaphore_mem>>
    tpu.enqueue_dma source(%116 : memref<1x256xf32, #tpu.memory_space<any>>) target(%117 : memref<1x256xf32, #tpu.memory_space<vmem>>) target_semaphore(%119 : memref<!tpu.dma_semaphore, #tpu.memory_space<semaphore_mem>>)
    %c20 = arith.constant 20 : index
    %120 = memref.load %arg1[%c20] : memref<24xi32, #tpu.memory_space<smem>>
    %c24_i32 = arith.constant 24 : i32
    %c0_i32_76 = arith.constant 0 : i32
    %121 = tpu.memref_slice %arg3[%120, %c0_i32_76] : memref<3200x256xf32, #tpu.memory_space<any>> -> memref<1x256xf32, #tpu.memory_space<any>>
    %c24_i32_77 = arith.constant 24 : i32
    %c0_i32_78 = arith.constant 0 : i32
    %122 = tpu.memref_slice %arg5[%c24_i32_77, %c0_i32_78] : memref<32x256xf32, #tpu.memory_space<vmem>> -> memref<1x256xf32, #tpu.memory_space<vmem>>
    %123 = tpu.memref_slice %arg6[%c24_i32] : memref<32x!tpu.dma_semaphore, #tpu.memory_space<semaphore_mem>> -> memref<1x!tpu.dma_semaphore, #tpu.memory_space<semaphore_mem>>
    %124 = tpu.memref_squeeze %123 : memref<1x!tpu.dma_semaphore, #tpu.memory_space<semaphore_mem>> -> memref<!tpu.dma_semaphore, #tpu.memory_space<semaphore_mem>>
    tpu.enqueue_dma source(%121 : memref<1x256xf32, #tpu.memory_space<any>>) target(%122 : memref<1x256xf32, #tpu.memory_space<vmem>>) target_semaphore(%124 : memref<!tpu.dma_semaphore, #tpu.memory_space<semaphore_mem>>)
    %c21 = arith.constant 21 : index
    %125 = memref.load %arg1[%c21] : memref<24xi32, #tpu.memory_space<smem>>
    %c25_i32 = arith.constant 25 : i32
    %c0_i32_79 = arith.constant 0 : i32
    %126 = tpu.memref_slice %arg3[%125, %c0_i32_79] : memref<3200x256xf32, #tpu.memory_space<any>> -> memref<1x256xf32, #tpu.memory_space<any>>
    %c25_i32_80 = arith.constant 25 : i32
    %c0_i32_81 = arith.constant 0 : i32
    %127 = tpu.memref_slice %arg5[%c25_i32_80, %c0_i32_81] : memref<32x256xf32, #tpu.memory_space<vmem>> -> memref<1x256xf32, #tpu.memory_space<vmem>>
    %128 = tpu.memref_slice %arg6[%c25_i32] : memref<32x!tpu.dma_semaphore, #tpu.memory_space<semaphore_mem>> -> memref<1x!tpu.dma_semaphore, #tpu.memory_space<semaphore_mem>>
    %129 = tpu.memref_squeeze %128 : memref<1x!tpu.dma_semaphore, #tpu.memory_space<semaphore_mem>> -> memref<!tpu.dma_semaphore, #tpu.memory_space<semaphore_mem>>
    tpu.enqueue_dma source(%126 : memref<1x256xf32, #tpu.memory_space<any>>) target(%127 : memref<1x256xf32, #tpu.memory_space<vmem>>) target_semaphore(%129 : memref<!tpu.dma_semaphore, #tpu.memory_space<semaphore_mem>>)
    %c22 = arith.constant 22 : index
    %130 = memref.load %arg1[%c22] : memref<24xi32, #tpu.memory_space<smem>>
    %c26_i32 = arith.constant 26 : i32
    %c0_i32_82 = arith.constant 0 : i32
    %131 = tpu.memref_slice %arg3[%130, %c0_i32_82] : memref<3200x256xf32, #tpu.memory_space<any>> -> memref<1x256xf32, #tpu.memory_space<any>>
    %c26_i32_83 = arith.constant 26 : i32
    %c0_i32_84 = arith.constant 0 : i32
    %132 = tpu.memref_slice %arg5[%c26_i32_83, %c0_i32_84] : memref<32x256xf32, #tpu.memory_space<vmem>> -> memref<1x256xf32, #tpu.memory_space<vmem>>
    %133 = tpu.memref_slice %arg6[%c26_i32] : memref<32x!tpu.dma_semaphore, #tpu.memory_space<semaphore_mem>> -> memref<1x!tpu.dma_semaphore, #tpu.memory_space<semaphore_mem>>
    %134 = tpu.memref_squeeze %133 : memref<1x!tpu.dma_semaphore, #tpu.memory_space<semaphore_mem>> -> memref<!tpu.dma_semaphore, #tpu.memory_space<semaphore_mem>>
    tpu.enqueue_dma source(%131 : memref<1x256xf32, #tpu.memory_space<any>>) target(%132 : memref<1x256xf32, #tpu.memory_space<vmem>>) target_semaphore(%134 : memref<!tpu.dma_semaphore, #tpu.memory_space<semaphore_mem>>)
    %c23 = arith.constant 23 : index
    %135 = memref.load %arg1[%c23] : memref<24xi32, #tpu.memory_space<smem>>
    %c27_i32 = arith.constant 27 : i32
    %c0_i32_85 = arith.constant 0 : i32
    %136 = tpu.memref_slice %arg3[%135, %c0_i32_85] : memref<3200x256xf32, #tpu.memory_space<any>> -> memref<1x256xf32, #tpu.memory_space<any>>
    %c27_i32_86 = arith.constant 27 : i32
    %c0_i32_87 = arith.constant 0 : i32
    %137 = tpu.memref_slice %arg5[%c27_i32_86, %c0_i32_87] : memref<32x256xf32, #tpu.memory_space<vmem>> -> memref<1x256xf32, #tpu.memory_space<vmem>>
    %138 = tpu.memref_slice %arg6[%c27_i32] : memref<32x!tpu.dma_semaphore, #tpu.memory_space<semaphore_mem>> -> memref<1x!tpu.dma_semaphore, #tpu.memory_space<semaphore_mem>>
    %139 = tpu.memref_squeeze %138 : memref<1x!tpu.dma_semaphore, #tpu.memory_space<semaphore_mem>> -> memref<!tpu.dma_semaphore, #tpu.memory_space<semaphore_mem>>
    tpu.enqueue_dma source(%136 : memref<1x256xf32, #tpu.memory_space<any>>) target(%137 : memref<1x256xf32, #tpu.memory_space<vmem>>) target_semaphore(%139 : memref<!tpu.dma_semaphore, #tpu.memory_space<semaphore_mem>>)
    %c12_88 = arith.constant 12 : index
    %140 = memref.load %arg1[%c12_88] : memref<24xi32, #tpu.memory_space<smem>>
    %c28_i32 = arith.constant 28 : i32
    %c0_i32_89 = arith.constant 0 : i32
    %141 = tpu.memref_slice %arg3[%140, %c0_i32_89] : memref<3200x256xf32, #tpu.memory_space<any>> -> memref<1x256xf32, #tpu.memory_space<any>>
    %c28_i32_90 = arith.constant 28 : i32
    %c0_i32_91 = arith.constant 0 : i32
    %142 = tpu.memref_slice %arg5[%c28_i32_90, %c0_i32_91] : memref<32x256xf32, #tpu.memory_space<vmem>> -> memref<1x256xf32, #tpu.memory_space<vmem>>
    %143 = tpu.memref_slice %arg6[%c28_i32] : memref<32x!tpu.dma_semaphore, #tpu.memory_space<semaphore_mem>> -> memref<1x!tpu.dma_semaphore, #tpu.memory_space<semaphore_mem>>
    %144 = tpu.memref_squeeze %143 : memref<1x!tpu.dma_semaphore, #tpu.memory_space<semaphore_mem>> -> memref<!tpu.dma_semaphore, #tpu.memory_space<semaphore_mem>>
    tpu.enqueue_dma source(%141 : memref<1x256xf32, #tpu.memory_space<any>>) target(%142 : memref<1x256xf32, #tpu.memory_space<vmem>>) target_semaphore(%144 : memref<!tpu.dma_semaphore, #tpu.memory_space<semaphore_mem>>)
    %c12_92 = arith.constant 12 : index
    %145 = memref.load %arg1[%c12_92] : memref<24xi32, #tpu.memory_space<smem>>
    %c29_i32 = arith.constant 29 : i32
    %c0_i32_93 = arith.constant 0 : i32
    %146 = tpu.memref_slice %arg3[%145, %c0_i32_93] : memref<3200x256xf32, #tpu.memory_space<any>> -> memref<1x256xf32, #tpu.memory_space<any>>
    %c29_i32_94 = arith.constant 29 : i32
    %c0_i32_95 = arith.constant 0 : i32
    %147 = tpu.memref_slice %arg5[%c29_i32_94, %c0_i32_95] : memref<32x256xf32, #tpu.memory_space<vmem>> -> memref<1x256xf32, #tpu.memory_space<vmem>>
    %148 = tpu.memref_slice %arg6[%c29_i32] : memref<32x!tpu.dma_semaphore, #tpu.memory_space<semaphore_mem>> -> memref<1x!tpu.dma_semaphore, #tpu.memory_space<semaphore_mem>>
    %149 = tpu.memref_squeeze %148 : memref<1x!tpu.dma_semaphore, #tpu.memory_space<semaphore_mem>> -> memref<!tpu.dma_semaphore, #tpu.memory_space<semaphore_mem>>
    tpu.enqueue_dma source(%146 : memref<1x256xf32, #tpu.memory_space<any>>) target(%147 : memref<1x256xf32, #tpu.memory_space<vmem>>) target_semaphore(%149 : memref<!tpu.dma_semaphore, #tpu.memory_space<semaphore_mem>>)
    %c12_96 = arith.constant 12 : index
    %150 = memref.load %arg1[%c12_96] : memref<24xi32, #tpu.memory_space<smem>>
    %c30_i32 = arith.constant 30 : i32
    %c0_i32_97 = arith.constant 0 : i32
    %151 = tpu.memref_slice %arg3[%150, %c0_i32_97] : memref<3200x256xf32, #tpu.memory_space<any>> -> memref<1x256xf32, #tpu.memory_space<any>>
    %c30_i32_98 = arith.constant 30 : i32
    %c0_i32_99 = arith.constant 0 : i32
    %152 = tpu.memref_slice %arg5[%c30_i32_98, %c0_i32_99] : memref<32x256xf32, #tpu.memory_space<vmem>> -> memref<1x256xf32, #tpu.memory_space<vmem>>
    %153 = tpu.memref_slice %arg6[%c30_i32] : memref<32x!tpu.dma_semaphore, #tpu.memory_space<semaphore_mem>> -> memref<1x!tpu.dma_semaphore, #tpu.memory_space<semaphore_mem>>
    %154 = tpu.memref_squeeze %153 : memref<1x!tpu.dma_semaphore, #tpu.memory_space<semaphore_mem>> -> memref<!tpu.dma_semaphore, #tpu.memory_space<semaphore_mem>>
    tpu.enqueue_dma source(%151 : memref<1x256xf32, #tpu.memory_space<any>>) target(%152 : memref<1x256xf32, #tpu.memory_space<vmem>>) target_semaphore(%154 : memref<!tpu.dma_semaphore, #tpu.memory_space<semaphore_mem>>)
    %c12_100 = arith.constant 12 : index
    %155 = memref.load %arg1[%c12_100] : memref<24xi32, #tpu.memory_space<smem>>
    %c31_i32 = arith.constant 31 : i32
    %c0_i32_101 = arith.constant 0 : i32
    %156 = tpu.memref_slice %arg3[%155, %c0_i32_101] : memref<3200x256xf32, #tpu.memory_space<any>> -> memref<1x256xf32, #tpu.memory_space<any>>
    %c31_i32_102 = arith.constant 31 : i32
    %c0_i32_103 = arith.constant 0 : i32
    %157 = tpu.memref_slice %arg5[%c31_i32_102, %c0_i32_103] : memref<32x256xf32, #tpu.memory_space<vmem>> -> memref<1x256xf32, #tpu.memory_space<vmem>>
    %158 = tpu.memref_slice %arg6[%c31_i32] : memref<32x!tpu.dma_semaphore, #tpu.memory_space<semaphore_mem>> -> memref<1x!tpu.dma_semaphore, #tpu.memory_space<semaphore_mem>>
    %159 = tpu.memref_squeeze %158 : memref<1x!tpu.dma_semaphore, #tpu.memory_space<semaphore_mem>> -> memref<!tpu.dma_semaphore, #tpu.memory_space<semaphore_mem>>
    tpu.enqueue_dma source(%156 : memref<1x256xf32, #tpu.memory_space<any>>) target(%157 : memref<1x256xf32, #tpu.memory_space<vmem>>) target_semaphore(%159 : memref<!tpu.dma_semaphore, #tpu.memory_space<semaphore_mem>>)
    %c0_i32_104 = arith.constant 0 : i32
    %c0_i32_105 = arith.constant 0 : i32
    %160 = tpu.memref_slice %arg3[%0, %c0_i32_105] : memref<3200x256xf32, #tpu.memory_space<any>> -> memref<1x256xf32, #tpu.memory_space<any>>
    %c0_i32_106 = arith.constant 0 : i32
    %c0_i32_107 = arith.constant 0 : i32
    %161 = tpu.memref_slice %arg5[%c0_i32_106, %c0_i32_107] : memref<32x256xf32, #tpu.memory_space<vmem>> -> memref<1x256xf32, #tpu.memory_space<vmem>>
    %162 = tpu.memref_slice %arg6[%c0_i32_104] : memref<32x!tpu.dma_semaphore, #tpu.memory_space<semaphore_mem>> -> memref<1x!tpu.dma_semaphore, #tpu.memory_space<semaphore_mem>>
    %163 = tpu.memref_squeeze %162 : memref<1x!tpu.dma_semaphore, #tpu.memory_space<semaphore_mem>> -> memref<!tpu.dma_semaphore, #tpu.memory_space<semaphore_mem>>
    tpu.wait_dma2 semaphore(%163 : memref<!tpu.dma_semaphore, #tpu.memory_space<semaphore_mem>>) src(%160 : memref<1x256xf32, #tpu.memory_space<any>>) dst(%161 : memref<1x256xf32, #tpu.memory_space<vmem>>)
    %c1_i32_108 = arith.constant 1 : i32
    %c0_i32_109 = arith.constant 0 : i32
    %164 = tpu.memref_slice %arg3[%5, %c0_i32_109] : memref<3200x256xf32, #tpu.memory_space<any>> -> memref<1x256xf32, #tpu.memory_space<any>>
    %c1_i32_110 = arith.constant 1 : i32
    %c0_i32_111 = arith.constant 0 : i32
    %165 = tpu.memref_slice %arg5[%c1_i32_110, %c0_i32_111] : memref<32x256xf32, #tpu.memory_space<vmem>> -> memref<1x256xf32, #tpu.memory_space<vmem>>
    %166 = tpu.memref_slice %arg6[%c1_i32_108] : memref<32x!tpu.dma_semaphore, #tpu.memory_space<semaphore_mem>> -> memref<1x!tpu.dma_semaphore, #tpu.memory_space<semaphore_mem>>
    %167 = tpu.memref_squeeze %166 : memref<1x!tpu.dma_semaphore, #tpu.memory_space<semaphore_mem>> -> memref<!tpu.dma_semaphore, #tpu.memory_space<semaphore_mem>>
    tpu.wait_dma2 semaphore(%167 : memref<!tpu.dma_semaphore, #tpu.memory_space<semaphore_mem>>) src(%164 : memref<1x256xf32, #tpu.memory_space<any>>) dst(%165 : memref<1x256xf32, #tpu.memory_space<vmem>>)
    %c2_i32_112 = arith.constant 2 : i32
    %c0_i32_113 = arith.constant 0 : i32
    %168 = tpu.memref_slice %arg3[%10, %c0_i32_113] : memref<3200x256xf32, #tpu.memory_space<any>> -> memref<1x256xf32, #tpu.memory_space<any>>
    %c2_i32_114 = arith.constant 2 : i32
    %c0_i32_115 = arith.constant 0 : i32
    %169 = tpu.memref_slice %arg5[%c2_i32_114, %c0_i32_115] : memref<32x256xf32, #tpu.memory_space<vmem>> -> memref<1x256xf32, #tpu.memory_space<vmem>>
    %170 = tpu.memref_slice %arg6[%c2_i32_112] : memref<32x!tpu.dma_semaphore, #tpu.memory_space<semaphore_mem>> -> memref<1x!tpu.dma_semaphore, #tpu.memory_space<semaphore_mem>>
    %171 = tpu.memref_squeeze %170 : memref<1x!tpu.dma_semaphore, #tpu.memory_space<semaphore_mem>> -> memref<!tpu.dma_semaphore, #tpu.memory_space<semaphore_mem>>
    tpu.wait_dma2 semaphore(%171 : memref<!tpu.dma_semaphore, #tpu.memory_space<semaphore_mem>>) src(%168 : memref<1x256xf32, #tpu.memory_space<any>>) dst(%169 : memref<1x256xf32, #tpu.memory_space<vmem>>)
    %c3_i32_116 = arith.constant 3 : i32
    %c0_i32_117 = arith.constant 0 : i32
    %172 = tpu.memref_slice %arg3[%15, %c0_i32_117] : memref<3200x256xf32, #tpu.memory_space<any>> -> memref<1x256xf32, #tpu.memory_space<any>>
    %c3_i32_118 = arith.constant 3 : i32
    %c0_i32_119 = arith.constant 0 : i32
    %173 = tpu.memref_slice %arg5[%c3_i32_118, %c0_i32_119] : memref<32x256xf32, #tpu.memory_space<vmem>> -> memref<1x256xf32, #tpu.memory_space<vmem>>
    %174 = tpu.memref_slice %arg6[%c3_i32_116] : memref<32x!tpu.dma_semaphore, #tpu.memory_space<semaphore_mem>> -> memref<1x!tpu.dma_semaphore, #tpu.memory_space<semaphore_mem>>
    %175 = tpu.memref_squeeze %174 : memref<1x!tpu.dma_semaphore, #tpu.memory_space<semaphore_mem>> -> memref<!tpu.dma_semaphore, #tpu.memory_space<semaphore_mem>>
    tpu.wait_dma2 semaphore(%175 : memref<!tpu.dma_semaphore, #tpu.memory_space<semaphore_mem>>) src(%172 : memref<1x256xf32, #tpu.memory_space<any>>) dst(%173 : memref<1x256xf32, #tpu.memory_space<vmem>>)
    %c4_i32_120 = arith.constant 4 : i32
    %c0_i32_121 = arith.constant 0 : i32
    %176 = tpu.memref_slice %arg3[%20, %c0_i32_121] : memref<3200x256xf32, #tpu.memory_space<any>> -> memref<1x256xf32, #tpu.memory_space<any>>
    %c4_i32_122 = arith.constant 4 : i32
    %c0_i32_123 = arith.constant 0 : i32
    %177 = tpu.memref_slice %arg5[%c4_i32_122, %c0_i32_123] : memref<32x256xf32, #tpu.memory_space<vmem>> -> memref<1x256xf32, #tpu.memory_space<vmem>>
    %178 = tpu.memref_slice %arg6[%c4_i32_120] : memref<32x!tpu.dma_semaphore, #tpu.memory_space<semaphore_mem>> -> memref<1x!tpu.dma_semaphore, #tpu.memory_space<semaphore_mem>>
    %179 = tpu.memref_squeeze %178 : memref<1x!tpu.dma_semaphore, #tpu.memory_space<semaphore_mem>> -> memref<!tpu.dma_semaphore, #tpu.memory_space<semaphore_mem>>
    tpu.wait_dma2 semaphore(%179 : memref<!tpu.dma_semaphore, #tpu.memory_space<semaphore_mem>>) src(%176 : memref<1x256xf32, #tpu.memory_space<any>>) dst(%177 : memref<1x256xf32, #tpu.memory_space<vmem>>)
    %c5_i32_124 = arith.constant 5 : i32
    %c0_i32_125 = arith.constant 0 : i32
    %180 = tpu.memref_slice %arg3[%25, %c0_i32_125] : memref<3200x256xf32, #tpu.memory_space<any>> -> memref<1x256xf32, #tpu.memory_space<any>>
    %c5_i32_126 = arith.constant 5 : i32
    %c0_i32_127 = arith.constant 0 : i32
    %181 = tpu.memref_slice %arg5[%c5_i32_126, %c0_i32_127] : memref<32x256xf32, #tpu.memory_space<vmem>> -> memref<1x256xf32, #tpu.memory_space<vmem>>
    %182 = tpu.memref_slice %arg6[%c5_i32_124] : memref<32x!tpu.dma_semaphore, #tpu.memory_space<semaphore_mem>> -> memref<1x!tpu.dma_semaphore, #tpu.memory_space<semaphore_mem>>
    %183 = tpu.memref_squeeze %182 : memref<1x!tpu.dma_semaphore, #tpu.memory_space<semaphore_mem>> -> memref<!tpu.dma_semaphore, #tpu.memory_space<semaphore_mem>>
    tpu.wait_dma2 semaphore(%183 : memref<!tpu.dma_semaphore, #tpu.memory_space<semaphore_mem>>) src(%180 : memref<1x256xf32, #tpu.memory_space<any>>) dst(%181 : memref<1x256xf32, #tpu.memory_space<vmem>>)
    %c6_i32_128 = arith.constant 6 : i32
    %c0_i32_129 = arith.constant 0 : i32
    %184 = tpu.memref_slice %arg3[%30, %c0_i32_129] : memref<3200x256xf32, #tpu.memory_space<any>> -> memref<1x256xf32, #tpu.memory_space<any>>
    %c6_i32_130 = arith.constant 6 : i32
    %c0_i32_131 = arith.constant 0 : i32
    %185 = tpu.memref_slice %arg5[%c6_i32_130, %c0_i32_131] : memref<32x256xf32, #tpu.memory_space<vmem>> -> memref<1x256xf32, #tpu.memory_space<vmem>>
    %186 = tpu.memref_slice %arg6[%c6_i32_128] : memref<32x!tpu.dma_semaphore, #tpu.memory_space<semaphore_mem>> -> memref<1x!tpu.dma_semaphore, #tpu.memory_space<semaphore_mem>>
    %187 = tpu.memref_squeeze %186 : memref<1x!tpu.dma_semaphore, #tpu.memory_space<semaphore_mem>> -> memref<!tpu.dma_semaphore, #tpu.memory_space<semaphore_mem>>
    tpu.wait_dma2 semaphore(%187 : memref<!tpu.dma_semaphore, #tpu.memory_space<semaphore_mem>>) src(%184 : memref<1x256xf32, #tpu.memory_space<any>>) dst(%185 : memref<1x256xf32, #tpu.memory_space<vmem>>)
    %c7_i32_132 = arith.constant 7 : i32
    %c0_i32_133 = arith.constant 0 : i32
    %188 = tpu.memref_slice %arg3[%35, %c0_i32_133] : memref<3200x256xf32, #tpu.memory_space<any>> -> memref<1x256xf32, #tpu.memory_space<any>>
    %c7_i32_134 = arith.constant 7 : i32
    %c0_i32_135 = arith.constant 0 : i32
    %189 = tpu.memref_slice %arg5[%c7_i32_134, %c0_i32_135] : memref<32x256xf32, #tpu.memory_space<vmem>> -> memref<1x256xf32, #tpu.memory_space<vmem>>
    %190 = tpu.memref_slice %arg6[%c7_i32_132] : memref<32x!tpu.dma_semaphore, #tpu.memory_space<semaphore_mem>> -> memref<1x!tpu.dma_semaphore, #tpu.memory_space<semaphore_mem>>
    %191 = tpu.memref_squeeze %190 : memref<1x!tpu.dma_semaphore, #tpu.memory_space<semaphore_mem>> -> memref<!tpu.dma_semaphore, #tpu.memory_space<semaphore_mem>>
    tpu.wait_dma2 semaphore(%191 : memref<!tpu.dma_semaphore, #tpu.memory_space<semaphore_mem>>) src(%188 : memref<1x256xf32, #tpu.memory_space<any>>) dst(%189 : memref<1x256xf32, #tpu.memory_space<vmem>>)
    %c8_i32_136 = arith.constant 8 : i32
    %c0_i32_137 = arith.constant 0 : i32
    %192 = tpu.memref_slice %arg3[%40, %c0_i32_137] : memref<3200x256xf32, #tpu.memory_space<any>> -> memref<1x256xf32, #tpu.memory_space<any>>
    %c8_i32_138 = arith.constant 8 : i32
    %c0_i32_139 = arith.constant 0 : i32
    %193 = tpu.memref_slice %arg5[%c8_i32_138, %c0_i32_139] : memref<32x256xf32, #tpu.memory_space<vmem>> -> memref<1x256xf32, #tpu.memory_space<vmem>>
    %194 = tpu.memref_slice %arg6[%c8_i32_136] : memref<32x!tpu.dma_semaphore, #tpu.memory_space<semaphore_mem>> -> memref<1x!tpu.dma_semaphore, #tpu.memory_space<semaphore_mem>>
    %195 = tpu.memref_squeeze %194 : memref<1x!tpu.dma_semaphore, #tpu.memory_space<semaphore_mem>> -> memref<!tpu.dma_semaphore, #tpu.memory_space<semaphore_mem>>
    tpu.wait_dma2 semaphore(%195 : memref<!tpu.dma_semaphore, #tpu.memory_space<semaphore_mem>>) src(%192 : memref<1x256xf32, #tpu.memory_space<any>>) dst(%193 : memref<1x256xf32, #tpu.memory_space<vmem>>)
    %c9_i32_140 = arith.constant 9 : i32
    %c0_i32_141 = arith.constant 0 : i32
    %196 = tpu.memref_slice %arg3[%45, %c0_i32_141] : memref<3200x256xf32, #tpu.memory_space<any>> -> memref<1x256xf32, #tpu.memory_space<any>>
    %c9_i32_142 = arith.constant 9 : i32
    %c0_i32_143 = arith.constant 0 : i32
    %197 = tpu.memref_slice %arg5[%c9_i32_142, %c0_i32_143] : memref<32x256xf32, #tpu.memory_space<vmem>> -> memref<1x256xf32, #tpu.memory_space<vmem>>
    %198 = tpu.memref_slice %arg6[%c9_i32_140] : memref<32x!tpu.dma_semaphore, #tpu.memory_space<semaphore_mem>> -> memref<1x!tpu.dma_semaphore, #tpu.memory_space<semaphore_mem>>
    %199 = tpu.memref_squeeze %198 : memref<1x!tpu.dma_semaphore, #tpu.memory_space<semaphore_mem>> -> memref<!tpu.dma_semaphore, #tpu.memory_space<semaphore_mem>>
    tpu.wait_dma2 semaphore(%199 : memref<!tpu.dma_semaphore, #tpu.memory_space<semaphore_mem>>) src(%196 : memref<1x256xf32, #tpu.memory_space<any>>) dst(%197 : memref<1x256xf32, #tpu.memory_space<vmem>>)
    %c10_i32_144 = arith.constant 10 : i32
    %c0_i32_145 = arith.constant 0 : i32
    %200 = tpu.memref_slice %arg3[%50, %c0_i32_145] : memref<3200x256xf32, #tpu.memory_space<any>> -> memref<1x256xf32, #tpu.memory_space<any>>
    %c10_i32_146 = arith.constant 10 : i32
    %c0_i32_147 = arith.constant 0 : i32
    %201 = tpu.memref_slice %arg5[%c10_i32_146, %c0_i32_147] : memref<32x256xf32, #tpu.memory_space<vmem>> -> memref<1x256xf32, #tpu.memory_space<vmem>>
    %202 = tpu.memref_slice %arg6[%c10_i32_144] : memref<32x!tpu.dma_semaphore, #tpu.memory_space<semaphore_mem>> -> memref<1x!tpu.dma_semaphore, #tpu.memory_space<semaphore_mem>>
    %203 = tpu.memref_squeeze %202 : memref<1x!tpu.dma_semaphore, #tpu.memory_space<semaphore_mem>> -> memref<!tpu.dma_semaphore, #tpu.memory_space<semaphore_mem>>
    tpu.wait_dma2 semaphore(%203 : memref<!tpu.dma_semaphore, #tpu.memory_space<semaphore_mem>>) src(%200 : memref<1x256xf32, #tpu.memory_space<any>>) dst(%201 : memref<1x256xf32, #tpu.memory_space<vmem>>)
    %c11_i32_148 = arith.constant 11 : i32
    %c0_i32_149 = arith.constant 0 : i32
    %204 = tpu.memref_slice %arg3[%55, %c0_i32_149] : memref<3200x256xf32, #tpu.memory_space<any>> -> memref<1x256xf32, #tpu.memory_space<any>>
    %c11_i32_150 = arith.constant 11 : i32
    %c0_i32_151 = arith.constant 0 : i32
    %205 = tpu.memref_slice %arg5[%c11_i32_150, %c0_i32_151] : memref<32x256xf32, #tpu.memory_space<vmem>> -> memref<1x256xf32, #tpu.memory_space<vmem>>
    %206 = tpu.memref_slice %arg6[%c11_i32_148] : memref<32x!tpu.dma_semaphore, #tpu.memory_space<semaphore_mem>> -> memref<1x!tpu.dma_semaphore, #tpu.memory_space<semaphore_mem>>
    %207 = tpu.memref_squeeze %206 : memref<1x!tpu.dma_semaphore, #tpu.memory_space<semaphore_mem>> -> memref<!tpu.dma_semaphore, #tpu.memory_space<semaphore_mem>>
    tpu.wait_dma2 semaphore(%207 : memref<!tpu.dma_semaphore, #tpu.memory_space<semaphore_mem>>) src(%204 : memref<1x256xf32, #tpu.memory_space<any>>) dst(%205 : memref<1x256xf32, #tpu.memory_space<vmem>>)
    %c12_i32_152 = arith.constant 12 : i32
    %c0_i32_153 = arith.constant 0 : i32
    %208 = tpu.memref_slice %arg3[%60, %c0_i32_153] : memref<3200x256xf32, #tpu.memory_space<any>> -> memref<1x256xf32, #tpu.memory_space<any>>
    %c12_i32_154 = arith.constant 12 : i32
    %c0_i32_155 = arith.constant 0 : i32
    %209 = tpu.memref_slice %arg5[%c12_i32_154, %c0_i32_155] : memref<32x256xf32, #tpu.memory_space<vmem>> -> memref<1x256xf32, #tpu.memory_space<vmem>>
    %210 = tpu.memref_slice %arg6[%c12_i32_152] : memref<32x!tpu.dma_semaphore, #tpu.memory_space<semaphore_mem>> -> memref<1x!tpu.dma_semaphore, #tpu.memory_space<semaphore_mem>>
    %211 = tpu.memref_squeeze %210 : memref<1x!tpu.dma_semaphore, #tpu.memory_space<semaphore_mem>> -> memref<!tpu.dma_semaphore, #tpu.memory_space<semaphore_mem>>
    tpu.wait_dma2 semaphore(%211 : memref<!tpu.dma_semaphore, #tpu.memory_space<semaphore_mem>>) src(%208 : memref<1x256xf32, #tpu.memory_space<any>>) dst(%209 : memref<1x256xf32, #tpu.memory_space<vmem>>)
    %c13_i32_156 = arith.constant 13 : i32
    %c0_i32_157 = arith.constant 0 : i32
    %212 = tpu.memref_slice %arg3[%65, %c0_i32_157] : memref<3200x256xf32, #tpu.memory_space<any>> -> memref<1x256xf32, #tpu.memory_space<any>>
    %c13_i32_158 = arith.constant 13 : i32
    %c0_i32_159 = arith.constant 0 : i32
    %213 = tpu.memref_slice %arg5[%c13_i32_158, %c0_i32_159] : memref<32x256xf32, #tpu.memory_space<vmem>> -> memref<1x256xf32, #tpu.memory_space<vmem>>
    %214 = tpu.memref_slice %arg6[%c13_i32_156] : memref<32x!tpu.dma_semaphore, #tpu.memory_space<semaphore_mem>> -> memref<1x!tpu.dma_semaphore, #tpu.memory_space<semaphore_mem>>
    %215 = tpu.memref_squeeze %214 : memref<1x!tpu.dma_semaphore, #tpu.memory_space<semaphore_mem>> -> memref<!tpu.dma_semaphore, #tpu.memory_space<semaphore_mem>>
    tpu.wait_dma2 semaphore(%215 : memref<!tpu.dma_semaphore, #tpu.memory_space<semaphore_mem>>) src(%212 : memref<1x256xf32, #tpu.memory_space<any>>) dst(%213 : memref<1x256xf32, #tpu.memory_space<vmem>>)
    %c14_i32_160 = arith.constant 14 : i32
    %c0_i32_161 = arith.constant 0 : i32
    %216 = tpu.memref_slice %arg3[%70, %c0_i32_161] : memref<3200x256xf32, #tpu.memory_space<any>> -> memref<1x256xf32, #tpu.memory_space<any>>
    %c14_i32_162 = arith.constant 14 : i32
    %c0_i32_163 = arith.constant 0 : i32
    %217 = tpu.memref_slice %arg5[%c14_i32_162, %c0_i32_163] : memref<32x256xf32, #tpu.memory_space<vmem>> -> memref<1x256xf32, #tpu.memory_space<vmem>>
    %218 = tpu.memref_slice %arg6[%c14_i32_160] : memref<32x!tpu.dma_semaphore, #tpu.memory_space<semaphore_mem>> -> memref<1x!tpu.dma_semaphore, #tpu.memory_space<semaphore_mem>>
    %219 = tpu.memref_squeeze %218 : memref<1x!tpu.dma_semaphore, #tpu.memory_space<semaphore_mem>> -> memref<!tpu.dma_semaphore, #tpu.memory_space<semaphore_mem>>
    tpu.wait_dma2 semaphore(%219 : memref<!tpu.dma_semaphore, #tpu.memory_space<semaphore_mem>>) src(%216 : memref<1x256xf32, #tpu.memory_space<any>>) dst(%217 : memref<1x256xf32, #tpu.memory_space<vmem>>)
    %c15_i32_164 = arith.constant 15 : i32
    %c0_i32_165 = arith.constant 0 : i32
    %220 = tpu.memref_slice %arg3[%75, %c0_i32_165] : memref<3200x256xf32, #tpu.memory_space<any>> -> memref<1x256xf32, #tpu.memory_space<any>>
    %c15_i32_166 = arith.constant 15 : i32
    %c0_i32_167 = arith.constant 0 : i32
    %221 = tpu.memref_slice %arg5[%c15_i32_166, %c0_i32_167] : memref<32x256xf32, #tpu.memory_space<vmem>> -> memref<1x256xf32, #tpu.memory_space<vmem>>
    %222 = tpu.memref_slice %arg6[%c15_i32_164] : memref<32x!tpu.dma_semaphore, #tpu.memory_space<semaphore_mem>> -> memref<1x!tpu.dma_semaphore, #tpu.memory_space<semaphore_mem>>
    %223 = tpu.memref_squeeze %222 : memref<1x!tpu.dma_semaphore, #tpu.memory_space<semaphore_mem>> -> memref<!tpu.dma_semaphore, #tpu.memory_space<semaphore_mem>>
    tpu.wait_dma2 semaphore(%223 : memref<!tpu.dma_semaphore, #tpu.memory_space<semaphore_mem>>) src(%220 : memref<1x256xf32, #tpu.memory_space<any>>) dst(%221 : memref<1x256xf32, #tpu.memory_space<vmem>>)
    %c16_i32_168 = arith.constant 16 : i32
    %c0_i32_169 = arith.constant 0 : i32
    %224 = tpu.memref_slice %arg3[%80, %c0_i32_169] : memref<3200x256xf32, #tpu.memory_space<any>> -> memref<1x256xf32, #tpu.memory_space<any>>
    %c16_i32_170 = arith.constant 16 : i32
    %c0_i32_171 = arith.constant 0 : i32
    %225 = tpu.memref_slice %arg5[%c16_i32_170, %c0_i32_171] : memref<32x256xf32, #tpu.memory_space<vmem>> -> memref<1x256xf32, #tpu.memory_space<vmem>>
    %226 = tpu.memref_slice %arg6[%c16_i32_168] : memref<32x!tpu.dma_semaphore, #tpu.memory_space<semaphore_mem>> -> memref<1x!tpu.dma_semaphore, #tpu.memory_space<semaphore_mem>>
    %227 = tpu.memref_squeeze %226 : memref<1x!tpu.dma_semaphore, #tpu.memory_space<semaphore_mem>> -> memref<!tpu.dma_semaphore, #tpu.memory_space<semaphore_mem>>
    tpu.wait_dma2 semaphore(%227 : memref<!tpu.dma_semaphore, #tpu.memory_space<semaphore_mem>>) src(%224 : memref<1x256xf32, #tpu.memory_space<any>>) dst(%225 : memref<1x256xf32, #tpu.memory_space<vmem>>)
    %c17_i32_172 = arith.constant 17 : i32
    %c0_i32_173 = arith.constant 0 : i32
    %228 = tpu.memref_slice %arg3[%85, %c0_i32_173] : memref<3200x256xf32, #tpu.memory_space<any>> -> memref<1x256xf32, #tpu.memory_space<any>>
    %c17_i32_174 = arith.constant 17 : i32
    %c0_i32_175 = arith.constant 0 : i32
    %229 = tpu.memref_slice %arg5[%c17_i32_174, %c0_i32_175] : memref<32x256xf32, #tpu.memory_space<vmem>> -> memref<1x256xf32, #tpu.memory_space<vmem>>
    %230 = tpu.memref_slice %arg6[%c17_i32_172] : memref<32x!tpu.dma_semaphore, #tpu.memory_space<semaphore_mem>> -> memref<1x!tpu.dma_semaphore, #tpu.memory_space<semaphore_mem>>
    %231 = tpu.memref_squeeze %230 : memref<1x!tpu.dma_semaphore, #tpu.memory_space<semaphore_mem>> -> memref<!tpu.dma_semaphore, #tpu.memory_space<semaphore_mem>>
    tpu.wait_dma2 semaphore(%231 : memref<!tpu.dma_semaphore, #tpu.memory_space<semaphore_mem>>) src(%228 : memref<1x256xf32, #tpu.memory_space<any>>) dst(%229 : memref<1x256xf32, #tpu.memory_space<vmem>>)
    %c18_i32_176 = arith.constant 18 : i32
    %c0_i32_177 = arith.constant 0 : i32
    %232 = tpu.memref_slice %arg3[%90, %c0_i32_177] : memref<3200x256xf32, #tpu.memory_space<any>> -> memref<1x256xf32, #tpu.memory_space<any>>
    %c18_i32_178 = arith.constant 18 : i32
    %c0_i32_179 = arith.constant 0 : i32
    %233 = tpu.memref_slice %arg5[%c18_i32_178, %c0_i32_179] : memref<32x256xf32, #tpu.memory_space<vmem>> -> memref<1x256xf32, #tpu.memory_space<vmem>>
    %234 = tpu.memref_slice %arg6[%c18_i32_176] : memref<32x!tpu.dma_semaphore, #tpu.memory_space<semaphore_mem>> -> memref<1x!tpu.dma_semaphore, #tpu.memory_space<semaphore_mem>>
    %235 = tpu.memref_squeeze %234 : memref<1x!tpu.dma_semaphore, #tpu.memory_space<semaphore_mem>> -> memref<!tpu.dma_semaphore, #tpu.memory_space<semaphore_mem>>
    tpu.wait_dma2 semaphore(%235 : memref<!tpu.dma_semaphore, #tpu.memory_space<semaphore_mem>>) src(%232 : memref<1x256xf32, #tpu.memory_space<any>>) dst(%233 : memref<1x256xf32, #tpu.memory_space<vmem>>)
    %c19_i32_180 = arith.constant 19 : i32
    %c0_i32_181 = arith.constant 0 : i32
    %236 = tpu.memref_slice %arg3[%95, %c0_i32_181] : memref<3200x256xf32, #tpu.memory_space<any>> -> memref<1x256xf32, #tpu.memory_space<any>>
    %c19_i32_182 = arith.constant 19 : i32
    %c0_i32_183 = arith.constant 0 : i32
    %237 = tpu.memref_slice %arg5[%c19_i32_182, %c0_i32_183] : memref<32x256xf32, #tpu.memory_space<vmem>> -> memref<1x256xf32, #tpu.memory_space<vmem>>
    %238 = tpu.memref_slice %arg6[%c19_i32_180] : memref<32x!tpu.dma_semaphore, #tpu.memory_space<semaphore_mem>> -> memref<1x!tpu.dma_semaphore, #tpu.memory_space<semaphore_mem>>
    %239 = tpu.memref_squeeze %238 : memref<1x!tpu.dma_semaphore, #tpu.memory_space<semaphore_mem>> -> memref<!tpu.dma_semaphore, #tpu.memory_space<semaphore_mem>>
    tpu.wait_dma2 semaphore(%239 : memref<!tpu.dma_semaphore, #tpu.memory_space<semaphore_mem>>) src(%236 : memref<1x256xf32, #tpu.memory_space<any>>) dst(%237 : memref<1x256xf32, #tpu.memory_space<vmem>>)
    %c20_i32_184 = arith.constant 20 : i32
    %c0_i32_185 = arith.constant 0 : i32
    %240 = tpu.memref_slice %arg3[%100, %c0_i32_185] : memref<3200x256xf32, #tpu.memory_space<any>> -> memref<1x256xf32, #tpu.memory_space<any>>
    %c20_i32_186 = arith.constant 20 : i32
    %c0_i32_187 = arith.constant 0 : i32
    %241 = tpu.memref_slice %arg5[%c20_i32_186, %c0_i32_187] : memref<32x256xf32, #tpu.memory_space<vmem>> -> memref<1x256xf32, #tpu.memory_space<vmem>>
    %242 = tpu.memref_slice %arg6[%c20_i32_184] : memref<32x!tpu.dma_semaphore, #tpu.memory_space<semaphore_mem>> -> memref<1x!tpu.dma_semaphore, #tpu.memory_space<semaphore_mem>>
    %243 = tpu.memref_squeeze %242 : memref<1x!tpu.dma_semaphore, #tpu.memory_space<semaphore_mem>> -> memref<!tpu.dma_semaphore, #tpu.memory_space<semaphore_mem>>
    tpu.wait_dma2 semaphore(%243 : memref<!tpu.dma_semaphore, #tpu.memory_space<semaphore_mem>>) src(%240 : memref<1x256xf32, #tpu.memory_space<any>>) dst(%241 : memref<1x256xf32, #tpu.memory_space<vmem>>)
    %c21_i32_188 = arith.constant 21 : i32
    %c0_i32_189 = arith.constant 0 : i32
    %244 = tpu.memref_slice %arg3[%105, %c0_i32_189] : memref<3200x256xf32, #tpu.memory_space<any>> -> memref<1x256xf32, #tpu.memory_space<any>>
    %c21_i32_190 = arith.constant 21 : i32
    %c0_i32_191 = arith.constant 0 : i32
    %245 = tpu.memref_slice %arg5[%c21_i32_190, %c0_i32_191] : memref<32x256xf32, #tpu.memory_space<vmem>> -> memref<1x256xf32, #tpu.memory_space<vmem>>
    %246 = tpu.memref_slice %arg6[%c21_i32_188] : memref<32x!tpu.dma_semaphore, #tpu.memory_space<semaphore_mem>> -> memref<1x!tpu.dma_semaphore, #tpu.memory_space<semaphore_mem>>
    %247 = tpu.memref_squeeze %246 : memref<1x!tpu.dma_semaphore, #tpu.memory_space<semaphore_mem>> -> memref<!tpu.dma_semaphore, #tpu.memory_space<semaphore_mem>>
    tpu.wait_dma2 semaphore(%247 : memref<!tpu.dma_semaphore, #tpu.memory_space<semaphore_mem>>) src(%244 : memref<1x256xf32, #tpu.memory_space<any>>) dst(%245 : memref<1x256xf32, #tpu.memory_space<vmem>>)
    %c22_i32_192 = arith.constant 22 : i32
    %c0_i32_193 = arith.constant 0 : i32
    %248 = tpu.memref_slice %arg3[%110, %c0_i32_193] : memref<3200x256xf32, #tpu.memory_space<any>> -> memref<1x256xf32, #tpu.memory_space<any>>
    %c22_i32_194 = arith.constant 22 : i32
    %c0_i32_195 = arith.constant 0 : i32
    %249 = tpu.memref_slice %arg5[%c22_i32_194, %c0_i32_195] : memref<32x256xf32, #tpu.memory_space<vmem>> -> memref<1x256xf32, #tpu.memory_space<vmem>>
    %250 = tpu.memref_slice %arg6[%c22_i32_192] : memref<32x!tpu.dma_semaphore, #tpu.memory_space<semaphore_mem>> -> memref<1x!tpu.dma_semaphore, #tpu.memory_space<semaphore_mem>>
    %251 = tpu.memref_squeeze %250 : memref<1x!tpu.dma_semaphore, #tpu.memory_space<semaphore_mem>> -> memref<!tpu.dma_semaphore, #tpu.memory_space<semaphore_mem>>
    tpu.wait_dma2 semaphore(%251 : memref<!tpu.dma_semaphore, #tpu.memory_space<semaphore_mem>>) src(%248 : memref<1x256xf32, #tpu.memory_space<any>>) dst(%249 : memref<1x256xf32, #tpu.memory_space<vmem>>)
    %c23_i32_196 = arith.constant 23 : i32
    %c0_i32_197 = arith.constant 0 : i32
    %252 = tpu.memref_slice %arg3[%115, %c0_i32_197] : memref<3200x256xf32, #tpu.memory_space<any>> -> memref<1x256xf32, #tpu.memory_space<any>>
    %c23_i32_198 = arith.constant 23 : i32
    %c0_i32_199 = arith.constant 0 : i32
    %253 = tpu.memref_slice %arg5[%c23_i32_198, %c0_i32_199] : memref<32x256xf32, #tpu.memory_space<vmem>> -> memref<1x256xf32, #tpu.memory_space<vmem>>
    %254 = tpu.memref_slice %arg6[%c23_i32_196] : memref<32x!tpu.dma_semaphore, #tpu.memory_space<semaphore_mem>> -> memref<1x!tpu.dma_semaphore, #tpu.memory_space<semaphore_mem>>
    %255 = tpu.memref_squeeze %254 : memref<1x!tpu.dma_semaphore, #tpu.memory_space<semaphore_mem>> -> memref<!tpu.dma_semaphore, #tpu.memory_space<semaphore_mem>>
    tpu.wait_dma2 semaphore(%255 : memref<!tpu.dma_semaphore, #tpu.memory_space<semaphore_mem>>) src(%252 : memref<1x256xf32, #tpu.memory_space<any>>) dst(%253 : memref<1x256xf32, #tpu.memory_space<vmem>>)
    %c24_i32_200 = arith.constant 24 : i32
    %c0_i32_201 = arith.constant 0 : i32
    %256 = tpu.memref_slice %arg3[%120, %c0_i32_201] : memref<3200x256xf32, #tpu.memory_space<any>> -> memref<1x256xf32, #tpu.memory_space<any>>
    %c24_i32_202 = arith.constant 24 : i32
    %c0_i32_203 = arith.constant 0 : i32
    %257 = tpu.memref_slice %arg5[%c24_i32_202, %c0_i32_203] : memref<32x256xf32, #tpu.memory_space<vmem>> -> memref<1x256xf32, #tpu.memory_space<vmem>>
    %258 = tpu.memref_slice %arg6[%c24_i32_200] : memref<32x!tpu.dma_semaphore, #tpu.memory_space<semaphore_mem>> -> memref<1x!tpu.dma_semaphore, #tpu.memory_space<semaphore_mem>>
    %259 = tpu.memref_squeeze %258 : memref<1x!tpu.dma_semaphore, #tpu.memory_space<semaphore_mem>> -> memref<!tpu.dma_semaphore, #tpu.memory_space<semaphore_mem>>
    tpu.wait_dma2 semaphore(%259 : memref<!tpu.dma_semaphore, #tpu.memory_space<semaphore_mem>>) src(%256 : memref<1x256xf32, #tpu.memory_space<any>>) dst(%257 : memref<1x256xf32, #tpu.memory_space<vmem>>)
    %c25_i32_204 = arith.constant 25 : i32
    %c0_i32_205 = arith.constant 0 : i32
    %260 = tpu.memref_slice %arg3[%125, %c0_i32_205] : memref<3200x256xf32, #tpu.memory_space<any>> -> memref<1x256xf32, #tpu.memory_space<any>>
    %c25_i32_206 = arith.constant 25 : i32
    %c0_i32_207 = arith.constant 0 : i32
    %261 = tpu.memref_slice %arg5[%c25_i32_206, %c0_i32_207] : memref<32x256xf32, #tpu.memory_space<vmem>> -> memref<1x256xf32, #tpu.memory_space<vmem>>
    %262 = tpu.memref_slice %arg6[%c25_i32_204] : memref<32x!tpu.dma_semaphore, #tpu.memory_space<semaphore_mem>> -> memref<1x!tpu.dma_semaphore, #tpu.memory_space<semaphore_mem>>
    %263 = tpu.memref_squeeze %262 : memref<1x!tpu.dma_semaphore, #tpu.memory_space<semaphore_mem>> -> memref<!tpu.dma_semaphore, #tpu.memory_space<semaphore_mem>>
    tpu.wait_dma2 semaphore(%263 : memref<!tpu.dma_semaphore, #tpu.memory_space<semaphore_mem>>) src(%260 : memref<1x256xf32, #tpu.memory_space<any>>) dst(%261 : memref<1x256xf32, #tpu.memory_space<vmem>>)
    %c26_i32_208 = arith.constant 26 : i32
    %c0_i32_209 = arith.constant 0 : i32
    %264 = tpu.memref_slice %arg3[%130, %c0_i32_209] : memref<3200x256xf32, #tpu.memory_space<any>> -> memref<1x256xf32, #tpu.memory_space<any>>
    %c26_i32_210 = arith.constant 26 : i32
    %c0_i32_211 = arith.constant 0 : i32
    %265 = tpu.memref_slice %arg5[%c26_i32_210, %c0_i32_211] : memref<32x256xf32, #tpu.memory_space<vmem>> -> memref<1x256xf32, #tpu.memory_space<vmem>>
    %266 = tpu.memref_slice %arg6[%c26_i32_208] : memref<32x!tpu.dma_semaphore, #tpu.memory_space<semaphore_mem>> -> memref<1x!tpu.dma_semaphore, #tpu.memory_space<semaphore_mem>>
    %267 = tpu.memref_squeeze %266 : memref<1x!tpu.dma_semaphore, #tpu.memory_space<semaphore_mem>> -> memref<!tpu.dma_semaphore, #tpu.memory_space<semaphore_mem>>
    tpu.wait_dma2 semaphore(%267 : memref<!tpu.dma_semaphore, #tpu.memory_space<semaphore_mem>>) src(%264 : memref<1x256xf32, #tpu.memory_space<any>>) dst(%265 : memref<1x256xf32, #tpu.memory_space<vmem>>)
    %c27_i32_212 = arith.constant 27 : i32
    %c0_i32_213 = arith.constant 0 : i32
    %268 = tpu.memref_slice %arg3[%135, %c0_i32_213] : memref<3200x256xf32, #tpu.memory_space<any>> -> memref<1x256xf32, #tpu.memory_space<any>>
    %c27_i32_214 = arith.constant 27 : i32
    %c0_i32_215 = arith.constant 0 : i32
    %269 = tpu.memref_slice %arg5[%c27_i32_214, %c0_i32_215] : memref<32x256xf32, #tpu.memory_space<vmem>> -> memref<1x256xf32, #tpu.memory_space<vmem>>
    %270 = tpu.memref_slice %arg6[%c27_i32_212] : memref<32x!tpu.dma_semaphore, #tpu.memory_space<semaphore_mem>> -> memref<1x!tpu.dma_semaphore, #tpu.memory_space<semaphore_mem>>
    %271 = tpu.memref_squeeze %270 : memref<1x!tpu.dma_semaphore, #tpu.memory_space<semaphore_mem>> -> memref<!tpu.dma_semaphore, #tpu.memory_space<semaphore_mem>>
    tpu.wait_dma2 semaphore(%271 : memref<!tpu.dma_semaphore, #tpu.memory_space<semaphore_mem>>) src(%268 : memref<1x256xf32, #tpu.memory_space<any>>) dst(%269 : memref<1x256xf32, #tpu.memory_space<vmem>>)
    %c28_i32_216 = arith.constant 28 : i32
    %c0_i32_217 = arith.constant 0 : i32
    %272 = tpu.memref_slice %arg3[%140, %c0_i32_217] : memref<3200x256xf32, #tpu.memory_space<any>> -> memref<1x256xf32, #tpu.memory_space<any>>
    %c28_i32_218 = arith.constant 28 : i32
    %c0_i32_219 = arith.constant 0 : i32
    %273 = tpu.memref_slice %arg5[%c28_i32_218, %c0_i32_219] : memref<32x256xf32, #tpu.memory_space<vmem>> -> memref<1x256xf32, #tpu.memory_space<vmem>>
    %274 = tpu.memref_slice %arg6[%c28_i32_216] : memref<32x!tpu.dma_semaphore, #tpu.memory_space<semaphore_mem>> -> memref<1x!tpu.dma_semaphore, #tpu.memory_space<semaphore_mem>>
    %275 = tpu.memref_squeeze %274 : memref<1x!tpu.dma_semaphore, #tpu.memory_space<semaphore_mem>> -> memref<!tpu.dma_semaphore, #tpu.memory_space<semaphore_mem>>
    tpu.wait_dma2 semaphore(%275 : memref<!tpu.dma_semaphore, #tpu.memory_space<semaphore_mem>>) src(%272 : memref<1x256xf32, #tpu.memory_space<any>>) dst(%273 : memref<1x256xf32, #tpu.memory_space<vmem>>)
    %c29_i32_220 = arith.constant 29 : i32
    %c0_i32_221 = arith.constant 0 : i32
    %276 = tpu.memref_slice %arg3[%145, %c0_i32_221] : memref<3200x256xf32, #tpu.memory_space<any>> -> memref<1x256xf32, #tpu.memory_space<any>>
    %c29_i32_222 = arith.constant 29 : i32
    %c0_i32_223 = arith.constant 0 : i32
    %277 = tpu.memref_slice %arg5[%c29_i32_222, %c0_i32_223] : memref<32x256xf32, #tpu.memory_space<vmem>> -> memref<1x256xf32, #tpu.memory_space<vmem>>
    %278 = tpu.memref_slice %arg6[%c29_i32_220] : memref<32x!tpu.dma_semaphore, #tpu.memory_space<semaphore_mem>> -> memref<1x!tpu.dma_semaphore, #tpu.memory_space<semaphore_mem>>
    %279 = tpu.memref_squeeze %278 : memref<1x!tpu.dma_semaphore, #tpu.memory_space<semaphore_mem>> -> memref<!tpu.dma_semaphore, #tpu.memory_space<semaphore_mem>>
    tpu.wait_dma2 semaphore(%279 : memref<!tpu.dma_semaphore, #tpu.memory_space<semaphore_mem>>) src(%276 : memref<1x256xf32, #tpu.memory_space<any>>) dst(%277 : memref<1x256xf32, #tpu.memory_space<vmem>>)
    %c30_i32_224 = arith.constant 30 : i32
    %c0_i32_225 = arith.constant 0 : i32
    %280 = tpu.memref_slice %arg3[%150, %c0_i32_225] : memref<3200x256xf32, #tpu.memory_space<any>> -> memref<1x256xf32, #tpu.memory_space<any>>
    %c30_i32_226 = arith.constant 30 : i32
    %c0_i32_227 = arith.constant 0 : i32
    %281 = tpu.memref_slice %arg5[%c30_i32_226, %c0_i32_227] : memref<32x256xf32, #tpu.memory_space<vmem>> -> memref<1x256xf32, #tpu.memory_space<vmem>>
    %282 = tpu.memref_slice %arg6[%c30_i32_224] : memref<32x!tpu.dma_semaphore, #tpu.memory_space<semaphore_mem>> -> memref<1x!tpu.dma_semaphore, #tpu.memory_space<semaphore_mem>>
    %283 = tpu.memref_squeeze %282 : memref<1x!tpu.dma_semaphore, #tpu.memory_space<semaphore_mem>> -> memref<!tpu.dma_semaphore, #tpu.memory_space<semaphore_mem>>
    tpu.wait_dma2 semaphore(%283 : memref<!tpu.dma_semaphore, #tpu.memory_space<semaphore_mem>>) src(%280 : memref<1x256xf32, #tpu.memory_space<any>>) dst(%281 : memref<1x256xf32, #tpu.memory_space<vmem>>)
    %c31_i32_228 = arith.constant 31 : i32
    %c0_i32_229 = arith.constant 0 : i32
    %284 = tpu.memref_slice %arg3[%155, %c0_i32_229] : memref<3200x256xf32, #tpu.memory_space<any>> -> memref<1x256xf32, #tpu.memory_space<any>>
    %c31_i32_230 = arith.constant 31 : i32
    %c0_i32_231 = arith.constant 0 : i32
    %285 = tpu.memref_slice %arg5[%c31_i32_230, %c0_i32_231] : memref<32x256xf32, #tpu.memory_space<vmem>> -> memref<1x256xf32, #tpu.memory_space<vmem>>
    %286 = tpu.memref_slice %arg6[%c31_i32_228] : memref<32x!tpu.dma_semaphore, #tpu.memory_space<semaphore_mem>> -> memref<1x!tpu.dma_semaphore, #tpu.memory_space<semaphore_mem>>
    %287 = tpu.memref_squeeze %286 : memref<1x!tpu.dma_semaphore, #tpu.memory_space<semaphore_mem>> -> memref<!tpu.dma_semaphore, #tpu.memory_space<semaphore_mem>>
    tpu.wait_dma2 semaphore(%287 : memref<!tpu.dma_semaphore, #tpu.memory_space<semaphore_mem>>) src(%284 : memref<1x256xf32, #tpu.memory_space<any>>) dst(%285 : memref<1x256xf32, #tpu.memory_space<vmem>>)
    %c0_232 = arith.constant 0 : index
    %c0_233 = arith.constant 0 : index
    %288 = vector.load %arg5[%c0_232, %c0_233] : memref<32x256xf32, #tpu.memory_space<vmem>>, vector<32x256xf32>
    %c6_i32_234 = arith.constant 6 : i32
    %289 = tpu.dynamic_rotate %288 by %c6_i32_234 dim 1 : vector<32x256xf32>, i32 -> vector<32x256xf32>
    %c31_i32_235 = arith.constant 31 : i32
    %290 = tpu.dynamic_rotate %289 by %c31_i32_235 dim 0 : vector<32x256xf32>, i32 -> vector<32x256xf32>
    %291 = vector.shape_cast %290 : vector<32x256xf32> to vector<2x16x256xf32>
    %292 = vector.extract_strided_slice %291 {offsets = [0, 0, 0], sizes = [2, 8, 256], strides = [1, 1, 1]} : vector<2x16x256xf32> to vector<2x8x256xf32>
    %c5_i32_236 = arith.constant 5 : i32
    %293 = tpu.dynamic_rotate %288 by %c5_i32_236 dim 1 : vector<32x256xf32>, i32 -> vector<32x256xf32>
    %c30_i32_237 = arith.constant 30 : i32
    %294 = tpu.dynamic_rotate %293 by %c30_i32_237 dim 0 : vector<32x256xf32>, i32 -> vector<32x256xf32>
    %295 = vector.shape_cast %294 : vector<32x256xf32> to vector<2x16x256xf32>
    %296 = vector.extract_strided_slice %295 {offsets = [0, 0, 0], sizes = [2, 8, 256], strides = [1, 1, 1]} : vector<2x16x256xf32> to vector<2x8x256xf32>
    %297 = arith.mulf %292, %296 : vector<2x8x256xf32>
    %c4_i32_238 = arith.constant 4 : i32
    %298 = tpu.dynamic_rotate %288 by %c4_i32_238 dim 1 : vector<32x256xf32>, i32 -> vector<32x256xf32>
    %c29_i32_239 = arith.constant 29 : i32
    %299 = tpu.dynamic_rotate %298 by %c29_i32_239 dim 0 : vector<32x256xf32>, i32 -> vector<32x256xf32>
    %300 = vector.shape_cast %299 : vector<32x256xf32> to vector<2x16x256xf32>
    %301 = vector.extract_strided_slice %300 {offsets = [0, 0, 0], sizes = [2, 8, 256], strides = [1, 1, 1]} : vector<2x16x256xf32> to vector<2x8x256xf32>
    %302 = arith.mulf %297, %301 : vector<2x8x256xf32>
    %c3_i32_240 = arith.constant 3 : i32
    %303 = tpu.dynamic_rotate %288 by %c3_i32_240 dim 1 : vector<32x256xf32>, i32 -> vector<32x256xf32>
    %c28_i32_241 = arith.constant 28 : i32
    %304 = tpu.dynamic_rotate %303 by %c28_i32_241 dim 0 : vector<32x256xf32>, i32 -> vector<32x256xf32>
    %305 = vector.shape_cast %304 : vector<32x256xf32> to vector<2x16x256xf32>
    %306 = vector.extract_strided_slice %305 {offsets = [0, 0, 0], sizes = [2, 8, 256], strides = [1, 1, 1]} : vector<2x16x256xf32> to vector<2x8x256xf32>
    %307 = arith.mulf %302, %306 : vector<2x8x256xf32>
    %c2_i32_242 = arith.constant 2 : i32
    %308 = tpu.dynamic_rotate %288 by %c2_i32_242 dim 1 : vector<32x256xf32>, i32 -> vector<32x256xf32>
    %c27_i32_243 = arith.constant 27 : i32
    %309 = tpu.dynamic_rotate %308 by %c27_i32_243 dim 0 : vector<32x256xf32>, i32 -> vector<32x256xf32>
    %310 = vector.shape_cast %309 : vector<32x256xf32> to vector<2x16x256xf32>
    %311 = vector.extract_strided_slice %310 {offsets = [0, 0, 0], sizes = [2, 8, 256], strides = [1, 1, 1]} : vector<2x16x256xf32> to vector<2x8x256xf32>
    %312 = arith.mulf %307, %311 : vector<2x8x256xf32>
    %c1_i32_244 = arith.constant 1 : i32
    %313 = tpu.dynamic_rotate %288 by %c1_i32_244 dim 1 : vector<32x256xf32>, i32 -> vector<32x256xf32>
    %c26_i32_245 = arith.constant 26 : i32
    %314 = tpu.dynamic_rotate %313 by %c26_i32_245 dim 0 : vector<32x256xf32>, i32 -> vector<32x256xf32>
    %315 = vector.shape_cast %314 : vector<32x256xf32> to vector<2x16x256xf32>
    %316 = vector.extract_strided_slice %315 {offsets = [0, 0, 0], sizes = [2, 8, 256], strides = [1, 1, 1]} : vector<2x16x256xf32> to vector<2x8x256xf32>
    %317 = arith.mulf %312, %316 : vector<2x8x256xf32>
    %c25_i32_246 = arith.constant 25 : i32
    %318 = tpu.dynamic_rotate %288 by %c25_i32_246 dim 0 : vector<32x256xf32>, i32 -> vector<32x256xf32>
    %319 = vector.shape_cast %318 : vector<32x256xf32> to vector<2x16x256xf32>
    %320 = vector.extract_strided_slice %319 {offsets = [0, 0, 0], sizes = [2, 8, 256], strides = [1, 1, 1]} : vector<2x16x256xf32> to vector<2x8x256xf32>
    %321 = arith.mulf %317, %320 : vector<2x8x256xf32>
    %c0_247 = arith.constant 0 : index
    %c0_248 = arith.constant 0 : index
    %322 = vector.load %arg2[%c0_247, %c0_248] : memref<8x256xf32, #tpu.memory_space<vmem>>, vector<8x256xf32>
    %323 = vector.shape_cast %322 : vector<8x256xf32> to vector<1x8x256xf32>
    %324 = vector.broadcast %323 : vector<1x8x256xf32> to vector<2x8x256xf32>
    %325 = arith.mulf %324, %321 : vector<2x8x256xf32>
    %cst = arith.constant dense<0.000000e+00> : vector<2x256xf32>
    %326 = vector.multi_reduction <add>, %325, %cst [1] : vector<2x8x256xf32> to vector<2x256xf32>
    %c0_249 = arith.constant 0 : index
    %c0_250 = arith.constant 0 : index
    %327 = vector.load %arg4[%c0_249, %c0_250] : memref<2x256xf32, #tpu.memory_space<vmem>>, vector<2x256xf32>
    tpu.vector_store %arg4[%c0_249, %c0_250], %326 {strides = array<i32>} : memref<2x256xf32, #tpu.memory_space<vmem>>, vector<2x256xf32>,
    return
  }
  func.func @transform_0(%arg0: i32, %arg1: memref<24xi32, #tpu.memory_space<smem>>) -> (i32, i32) {
    %c0_i32 = arith.constant 0 : i32
    %c0_i32_0 = arith.constant 0 : i32
    %c0_i32_1 = arith.constant 0 : i32
    return %c0_i32, %c0_i32_0 : i32, i32
  }
  func.func @transform_2(%arg0: i32, %arg1: memref<24xi32, #tpu.memory_space<smem>>) -> (i32, i32) {
    %c0_i32 = arith.constant 0 : i32
    %c0_i32_0 = arith.constant 0 : i32
    %c0_i32_1 = arith.constant 0 : i32
    return %c0_i32, %c0_i32_0 : i32, i32
  }
}

</mosaic_0001>

<bundles_post_ra>
// kernel: tpu_custom_call.1
= control target key start
LH: loop header
LB: loop body
LE: loop exit
PB: predicated region body
PF: predicated region fallthrough
CT: control target
= control target key end

     0   :  { %s3218_s0 = inlined_call_operand.hbm [shape: s32[24], index: 0, kind: input, shape index: {}]   ;;  %s3219_s1 = inlined_call_operand.hbm [shape: f32[8,256], index: 1, kind: input, shape index: {}]   ;;  %s3220_s2 = inlined_call_operand.hbm [shape: f32[3200,256], index: 2, kind: input, shape index: {}]   ;;  %s3221_s3 = inlined_call_operand.hbm [shape: f32[2,256], index: 3, kind: output, shape index: {}]  }
   0x1   :  { %s1412_s14 = scalar_lea.hbm %s3218_s0, 16 }
   0x2   :  { %p1413_p0 = scmp.ne.s32.totalorder %s3218_s0, %s1412_s14  ;;  %p1416_p1 = scmp.lt.u32.totalorder %s1412_s14, %s3218_s0 }
   0x4   :  { %p1418_p2 = pnand %p1416_p1, %p1413_p0 }
   0x6   :  { %1421 = shalt.err (!%p1418_p2)  }
   0x7   :  { %s2304_s19 = smov [#allocation5]  }
   0x8   :  { %9 = dma.hbm_to_smem %s3218_s0, 16, %s2304_s19, [#allocation4] }
   0x9   :  { %2234 = dma.done.wait [#allocation4], 16 }
   0xa   :  { %2235 = vsyncadd [#allocation4], 4294967280 }
   0xb   :  { %11 = sfence }
   0xc   :  { %12 = vsyncpa [#allocation7], 0 }
   0xd   :  { %13 = vsyncpa [#allocation8], 0  ;;  %s2305_s22 = smov [#allocation6]   ;;  %s1422_s26 = scalar_lea.hbm %s3219_s1, 256 }
   0xe   :  { %s20_s23 = sshll.u32 %s2305_s22, 4  ;;  %p1423_p3 = scmp.ne.s32.totalorder %s3219_s1, %s1422_s26  ;;  %s21_s23 = int_to_ptr.vmem [resolvable:$true] %s20_s23 }
   0xf   :  { %p1426_p4 = scmp.lt.u32.totalorder %s1422_s26, %s3219_s1 }
  0x11   :  { %p1428_p5 = pnand %p1426_p4, %p1423_p3 }
  0x13   :  { %1431 = shalt.err (!%p1428_p5)
}
  0x14   :  { %s1432_s0 = scalar_lea.vmem %s21_s23, 256  ;;  %p1437_p7 = scmp.lt.s32.totalorder %s21_s23, %s21_s23 }
  0x15   :  { %p1433_p6 = scmp.ne.s32.totalorder %s21_s23, %s1432_s0  ;;  %p1438_p8 = scmp.lt.s32.totalorder %s1432_s0, %s1432_s0 }
  0x17   :  { %p1439_p9 = por %p1438_p8, %p1437_p7 }
  0x19   :  { %p1440_p10 = pnand %p1439_p9, %p1433_p6 }
  0x1b   :  { %1443 = shalt.err (!%p1440_p10)
}
  0x1c   :  { %23 = dma.hbm_to_vmem [thread:$0]  %s3219_s1, 256, %s21_s23, [#allocation7]  }
  0x1d   :  { %2236 = dma.done.wait [#allocation7], 256  }
  0x1e   :  { %2237 = vsyncadd [#allocation7], 4294967040  ;;  %s27_s6 = sld [smem:[#allocation5]]  ;;  %s2306_s7 = smov [#allocation2]  }
  0x1f   :  { %s35_s8 = sshll.u32 %s2306_s7, 4  ;;  %s2393_s9 = sld [smem:[#allocation5 + $0x1]]  ;;  %s2391_s8 = int_to_ptr.vmem [resolvable:$true] %s35_s8 }
  0x20   :  { %s2307_s10 = smov [#allocation2 + $0x1]   ;;  %s2395_s12 = sld [smem:[#allocation5 + $0x2]] }
  0x21   :  { %s49_s11 = sshll.u32 %s2307_s10, 4  ;;  %s2308_s13 = smov [#allocation2 + $0x2]   ;;  %s2397_s11 = int_to_ptr.vmem [resolvable:$true] %s49_s11 }
  0x22   :  { %s63_s14 = sshll.u32 %s2308_s13, 4  ;;  %s2399_s1 = sld [smem:[#allocation5 + $0x3]]  ;;  %s2401_s14 = int_to_ptr.vmem [resolvable:$true] %s63_s14 }
  0x23   :  { %s2415_s29 = scalar_lea.hbm %s3220_s2, 102400 }
  0x24   :  { %s28_s15 = sshrl.u32 %s27_s6, 3  ;;  %s29_s16 = sand.u32 7, %s27_s6  }
  0x25   :  { %s1246_s17 = sshll.u32 %s28_s15, 4  ;;  %s40_s19 = sshrl.u32 %s2393_s9, 3 }
  0x26   :  { %s31_s18 = sadd.s32 %s1246_s17, %s29_s16  ;;  %s41_s21 = sand.u32 7, %s2393_s9  }
  0x27   :  { %s1247_s20 = sshll.u32 %s31_s18, 4  ;;  %s1249_s25 = sshll.u32 %s40_s19, 4 }
  0x28   :  { %s2408_s24 = scalar_lea.hbm %s3220_s2, %s1247_s20 }
  0x29   :  { %s1444_s26 = scalar_lea.hbm %s2408_s24, 32  ;;  %p1447_p12 = scmp.lt.u32.totalorder %s2408_s24, %s3220_s2 }
  0x2a   :  { %p1445_p11 = scmp.ne.s32.totalorder %s2408_s24, %s1444_s26  ;;  %p1448_p13 = scmp.lt.u32.totalorder %s2415_s29, %s1444_s26 }
  0x2b   :  { %p1450_p1 = scmp.lt.u32.totalorder %s1444_s26, %s2408_s24 }
  0x2c   :  { %p1449_p0 = por %p1448_p13, %p1447_p12 }
  0x2e   :  { %p1451_p2 = por %p1450_p1, %p1449_p0 }
  0x30   :  { %p2423_p3 = pnand %p1451_p2, %p1445_p11 }
  0x32   :  { %1455 = shalt.err (!%p2423_p3)  }
  0x33   :  { %s1456_s5 = scalar_lea.vmem %s2391_s8, 32  ;;  %s2432_s6 = scalar_lea.vmem %s2391_s8, 1024 }
  0x34   :  { %p1457_p4 = scmp.ne.s32.totalorder %s2391_s8, %s1456_s5  ;;  %p1461_p5 = scmp.lt.s32.totalorder %s2391_s8, %s2391_s8 }
  0x35   :  { %p1462_p6 = scmp.lt.s32.totalorder %s2432_s6, %s1456_s5 }
  0x37   :  { %p1463_p7 = por %p1462_p6, %p1461_p5 }
  0x39   :  { %p1464_p8 = pnand %p1463_p7, %p1457_p4 }
  0x3b   :  { %1467 = shalt.err (!%p1464_p8)  }
  0x3c   :  { %s2309_s7 = smov 128   ;;  %s2310_s9 = smov 1  }
  0x3d   :  { %38 = dma.hbm_to_vmem [thread:$0]  %s2408_s24, 32, %s2391_s8, [#allocation3], %s2309_s7, %s2309_s7, %s2310_s9 }
  0x3e   :  { %s43_s10 = sadd.s32 %s1249_s25, %s41_s21  ;;  %s54_s13 = sshrl.u32 %s2395_s12, 3 }
  0x3f   :  { %s1250_s15 = sshll.u32 %s43_s10, 4  ;;  %s55_s16 = sand.u32 7, %s2395_s12  }
  0x40   :  { %s45_s19 = scalar_lea.hbm %s3220_s2, %s1250_s15  ;;  %s1252_s20 = sshll.u32 %s54_s13, 4 }
  0x41   :  { %s1468_s22 = scalar_lea.hbm %s45_s19, 32  ;;  %p1471_p10 = scmp.lt.u32.totalorder %s45_s19, %s3220_s2 }
  0x42   :  { %p1469_p9 = scmp.ne.s32.totalorder %s45_s19, %s1468_s22  ;;  %p1472_p11 = scmp.lt.u32.totalorder %s2415_s29, %s1468_s22 }
  0x43   :  { %p1474_p13 = scmp.lt.u32.totalorder %s1468_s22, %s45_s19 }
  0x44   :  { %p1473_p12 = por %p1472_p11, %p1471_p10 }
  0x46   :  { %p1475_p0 = por %p1474_p13, %p1473_p12 }
  0x48   :  { %p1476_p1 = pnand %p1475_p0, %p1469_p9 }
  0x4a   :  { %1479 = shalt.err (!%p1476_p1)  }
  0x4b   :  { %s1480_s12 = scalar_lea.vmem %s2397_s11, 32  ;;  %p1485_p4 = scmp.lt.s32.totalorder %s2397_s11, %s2391_s8 }
  0x4c   :  { %p1481_p2 = scmp.ne.s32.totalorder %s2397_s11, %s1480_s12  ;;  %p1486_p5 = scmp.lt.s32.totalorder %s2432_s6, %s1480_s12 }
  0x4e   :  { %p1487_p6 = por %p1486_p5, %p1485_p4 }
  0x50   :  { %p1488_p7 = pnand %p1487_p6, %p1481_p2 }
  0x52   :  { %1491 = shalt.err (!%p1488_p7)  }
  0x53   :  { %52 = dma.hbm_to_vmem [thread:$0]  %s45_s19, 32, %s2397_s11, [#allocation3 + $0x1], %s2309_s7, %s2309_s7, %s2310_s9 }
  0x54   :  { %s57_s21 = sadd.s32 %s1252_s20, %s55_s16  ;;  %s68_s25 = sshrl.u32 %s2399_s1, 3 }
  0x55   :  { %s1253_s27 = sshll.u32 %s57_s21, 4  ;;  %s69_s28 = sand.u32 7, %s2399_s1  }
  0x56   :  { %s59_s5 = scalar_lea.hbm %s3220_s2, %s1253_s27  ;;  %s1255_s10 = sshll.u32 %s68_s25, 4 }
  0x57   :  { %s1492_s13 = scalar_lea.hbm %s59_s5, 32  ;;  %p1495_p9 = scmp.lt.u32.totalorder %s59_s5, %s3220_s2 }
  0x58   :  { %p1493_p8 = scmp.ne.s32.totalorder %s59_s5, %s1492_s13  ;;  %p1496_p10 = scmp.lt.u32.totalorder %s2415_s29, %s1492_s13 }
  0x59   :  { %p1498_p12 = scmp.lt.u32.totalorder %s1492_s13, %s59_s5 }
  0x5a   :  { %p1497_p11 = por %p1496_p10, %p1495_p9 }
  0x5c   :  { %p1499_p13 = por %p1498_p12, %p1497_p11 }
  0x5e   :  { %p1500_p0 = pnand %p1499_p13, %p1493_p8 }
  0x60   :  { %1503 = shalt.err (!%p1500_p0)  }
  0x61   :  { %s1504_s11 = scalar_lea.vmem %s2401_s14, 32  ;;  %p1509_p2 = scmp.lt.s32.totalorder %s2401_s14, %s2391_s8 }
  0x62   :  { %p1505_p1 = scmp.ne.s32.totalorder %s2401_s14, %s1504_s11  ;;  %p1510_p4 = scmp.lt.s32.totalorder %s2432_s6, %s1504_s11 }
  0x64   :  { %p1511_p5 = por %p1510_p4, %p1509_p2 }
  0x66   :  { %p1512_p6 = pnand %p1511_p5, %p1505_p1 }
  0x68   :  { %1515 = shalt.err (!%p1512_p6)  }
  0x69   :  { %66 = dma.hbm_to_vmem [thread:$0]  %s59_s5, 32, %s2401_s14, [#allocation3 + $0x2], %s2309_s7, %s2309_s7, %s2310_s9 }
  0x6a   :  { %s71_s1 = sadd.s32 %s1255_s10, %s69_s28  ;;  %s2311_s18 = smov [#allocation2 + $0x3]  }
  0x6b   :  { %s1256_s16 = sshll.u32 %s71_s1, 4  ;;  %s77_s19 = sshll.u32 %s2311_s18, 4  ;;  %s78_s19 = int_to_ptr.vmem [resolvable:$true] %s77_s19 }
  0x6c   :  { %s73_s23 = scalar_lea.hbm %s3220_s2, %s1256_s16 }
  0x6d   :  { %s1516_s26 = scalar_lea.hbm %s73_s23, 32  ;;  %p1519_p8 = scmp.lt.u32.totalorder %s73_s23, %s3220_s2 }
  0x6e   :  { %p1517_p7 = scmp.ne.s32.totalorder %s73_s23, %s1516_s26  ;;  %p1520_p9 = scmp.lt.u32.totalorder %s2415_s29, %s1516_s26 }
  0x6f   :  { %p1522_p11 = scmp.lt.u32.totalorder %s1516_s26, %s73_s23 }
  0x70   :  { %p1521_p10 = por %p1520_p9, %p1519_p8 }
  0x72   :  { %p1523_p12 = por %p1522_p11, %p1521_p10 }
  0x74   :  { %p1524_p13 = pnand %p1523_p12, %p1517_p7 }
  0x76   :  { %1527 = shalt.err (!%p1524_p13)  }
  0x77   :  { %s1528_s14 = scalar_lea.vmem %s78_s19, 32  ;;  %p1533_p1 = scmp.lt.s32.totalorder %s78_s19, %s2391_s8 }
  0x78   :  { %p1529_p0 = scmp.ne.s32.totalorder %s78_s19, %s1528_s14  ;;  %p1534_p2 = scmp.lt.s32.totalorder %s2432_s6, %s1528_s14 }
  0x7a   :  { %p1535_p4 = por %p1534_p2, %p1533_p1 }
  0x7c   :  { %p1536_p5 = pnand %p1535_p4, %p1529_p0 }
  0x7e   :  { %1539 = shalt.err (!%p1536_p5)  }
  0x7f   :  { %80 = dma.hbm_to_vmem [thread:$0]  %s73_s23, 32, %s78_s19, [#allocation3 + $0x3], %s2309_s7, %s2309_s7, %s2310_s9 }
  0x80   :  { %s1257_s25 = sld [smem:[#allocation5 + $0x4]]  ;;  %s2312_s27 = smov [#allocation2 + $0x4]  }
  0x81   :  { %s91_s28 = sshll.u32 %s2312_s27, 4  ;;  %s1260_s30 = sld [smem:[#allocation5 + $0x5]]  ;;  %s2490_s28 = int_to_ptr.vmem [resolvable:$true] %s91_s28 }
  0x82   :  { %s2313_s0 = smov [#allocation2 + $0x5]   ;;  %s2492_s10 = sld [smem:[#allocation5 + $0x6]] }
  0x83   :  { %s105_s5 = sshll.u32 %s2313_s0, 4  ;;  %s2314_s13 = smov [#allocation2 + $0x6]   ;;  %s2494_s5 = int_to_ptr.vmem [resolvable:$true] %s105_s5 }
  0x84   :  { %s2496_s15 = sshll.u32 %s2314_s13, 4  ;;  %s2498_s17 = sld [smem:[#allocation5 + $0x7]]  ;;  %s120_s15 = int_to_ptr.vmem [resolvable:$true] %s2496_s15 }
  0x86   :  { %s82_s11 = sshrl.u32 %s1257_s25, 3  ;;  %s83_s1 = sand.u32 7, %s1257_s25  }
  0x87   :  { %s1258_s16 = sshll.u32 %s82_s11, 4  ;;  %s96_s18 = sshrl.u32 %s1260_s30, 3 }
  0x88   :  { %s85_s19 = sadd.s32 %s1258_s16, %s83_s1  ;;  %s97_s20 = sand.u32 7, %s1260_s30  }
  0x89   :  { %s1259_s22 = sshll.u32 %s85_s19, 4  ;;  %s1261_s23 = sshll.u32 %s96_s18, 4 }
  0x8a   :  { %s87_s21 = scalar_lea.hbm %s3220_s2, %s1259_s22  ;;  %s99_s14 = sadd.s32 %s1261_s23, %s97_s20 }
  0x8b   :  { %s1540_s27 = scalar_lea.hbm %s87_s21, 32  ;;  %p1543_p7 = scmp.lt.u32.totalorder %s87_s21, %s3220_s2 }
  0x8c   :  { %p1541_p6 = scmp.ne.s32.totalorder %s87_s21, %s1540_s27  ;;  %p1544_p8 = scmp.lt.u32.totalorder %s2415_s29, %s1540_s27 }
  0x8d   :  { %p1546_p10 = scmp.lt.u32.totalorder %s1540_s27, %s87_s21 }
  0x8e   :  { %p1545_p9 = por %p1544_p8, %p1543_p7 }
  0x90   :  { %p1547_p11 = por %p1546_p10, %p1545_p9 }
  0x92   :  { %p1548_p12 = pnand %p1547_p11, %p1541_p6 }
  0x94   :  { %1551 = shalt.err (!%p1548_p12)  }
  0x95   :  { %s1552_s25 = scalar_lea.vmem %s2490_s28, 32  ;;  %p1557_p0 = scmp.lt.s32.totalorder %s2490_s28, %s2391_s8 }
  0x96   :  { %p1553_p13 = scmp.ne.s32.totalorder %s2490_s28, %s1552_s25  ;;  %p1558_p1 = scmp.lt.s32.totalorder %s2432_s6, %s1552_s25 }
  0x98   :  { %p1559_p2 = por %p1558_p1, %p1557_p0 }
  0x9a   :  { %p1560_p4 = pnand %p1559_p2, %p1553_p13 }
  0x9c   :  { %1563 = shalt.err (!%p1560_p4)  }
  0x9d   :  { %94 = dma.hbm_to_vmem [thread:$0]  %s87_s21, 32, %s2490_s28, [#allocation3 + $0x4], %s2309_s7, %s2309_s7, %s2310_s9 }
  0x9e   :  { %s1262_s30 = sshll.u32 %s99_s14, 4  ;;  %s110_s11 = sshrl.u32 %s2492_s10, 3 }
  0x9f   :  { %s101_s18 = scalar_lea.hbm %s3220_s2, %s1262_s30  ;;  %s111_s19 = sand.u32 7, %s2492_s10  }
  0xa0   :  { %s1564_s20 = scalar_lea.hbm %s101_s18, 32  ;;  %p1567_p6 = scmp.lt.u32.totalorder %s101_s18, %s3220_s2 }
  0xa1   :  { %p1565_p5 = scmp.ne.s32.totalorder %s101_s18, %s1564_s20  ;;  %p1568_p7 = scmp.lt.u32.totalorder %s2415_s29, %s1564_s20 }
  0xa2   :  { %p1570_p9 = scmp.lt.u32.totalorder %s1564_s20, %s101_s18 }
  0xa3   :  { %p1569_p8 = por %p1568_p7, %p1567_p6 }
  0xa5   :  { %p1571_p10 = por %p1570_p9, %p1569_p8 }
  0xa7   :  { %p1572_p11 = pnand %p1571_p10, %p1565_p5 }
  0xa9   :  { %1575 = shalt.err (!%p1572_p11)  }
  0xaa   :  { %s1576_s28 = scalar_lea.vmem %s2494_s5, 32  ;;  %p1581_p13 = scmp.lt.s32.totalorder %s2494_s5, %s2391_s8 }
  0xab   :  { %p1577_p12 = scmp.ne.s32.totalorder %s2494_s5, %s1576_s28  ;;  %p1582_p0 = scmp.lt.s32.totalorder %s2432_s6, %s1576_s28 }
  0xad   :  { %p1583_p1 = por %p1582_p0, %p1581_p13 }
  0xaf   :  { %p1584_p2 = pnand %p1583_p1, %p1577_p12 }
  0xb1   :  { %1587 = shalt.err (!%p1584_p2)  }
  0xb2   :  { %108 = dma.hbm_to_vmem [thread:$0]  %s101_s18, 32, %s2494_s5, [#allocation3 + $0x5], %s2309_s7, %s2309_s7, %s2310_s9 }
  0xb3   :  { %s1264_s10 = sshll.u32 %s110_s11, 4  ;;  %s124_s12 = sshrl.u32 %s2498_s17, 3 }
  0xb4   :  { %s113_s26 = sadd.s32 %s1264_s10, %s111_s19  ;;  %s125_s14 = sand.u32 7, %s2498_s17  }
  0xb5   :  { %s1265_s21 = sshll.u32 %s113_s26, 4  ;;  %s1267_s25 = sshll.u32 %s124_s12, 4 }
  0xb6   :  { %s115_s13 = scalar_lea.hbm %s3220_s2, %s1265_s21 }
  0xb7   :  { %s1588_s30 = scalar_lea.hbm %s115_s13, 32  ;;  %p1591_p5 = scmp.lt.u32.totalorder %s115_s13, %s3220_s2 }
  0xb8   :  { %p1589_p4 = scmp.ne.s32.totalorder %s115_s13, %s1588_s30  ;;  %p1592_p6 = scmp.lt.u32.totalorder %s2415_s29, %s1588_s30 }
  0xb9   :  { %p1594_p8 = scmp.lt.u32.totalorder %s1588_s30, %s115_s13 }
  0xba   :  { %p1593_p7 = por %p1592_p6, %p1591_p5 }
  0xbc   :  { %p1595_p9 = por %p1594_p8, %p1593_p7 }
  0xbe   :  { %p1596_p10 = pnand %p1595_p9, %p1589_p4 }
  0xc0   :  { %1599 = shalt.err (!%p1596_p10)  }
  0xc1   :  { %s1600_s5 = scalar_lea.vmem %s120_s15, 32  ;;  %p1605_p12 = scmp.lt.s32.totalorder %s120_s15, %s2391_s8 }
  0xc2   :  { %p1601_p11 = scmp.ne.s32.totalorder %s120_s15, %s1600_s5  ;;  %p1606_p13 = scmp.lt.s32.totalorder %s2432_s6, %s1600_s5 }
  0xc4   :  { %p1607_p0 = por %p1606_p13, %p1605_p12 }
  0xc6   :  { %p1608_p1 = pnand %p1607_p0, %p1601_p11 }
  0xc8   :  { %1611 = shalt.err (!%p1608_p1)  }
  0xc9   :  { %122 = dma.hbm_to_vmem [thread:$0]  %s115_s13, 32, %s120_s15, [#allocation3 + $0x6], %s2309_s7, %s2309_s7, %s2310_s9 }
  0xca   :  { %s127_s17 = sadd.s32 %s1267_s25, %s125_s14  ;;  %s2315_s18 = smov [#allocation2 + $0x7]  }
  0xcb   :  { %s1268_s11 = sshll.u32 %s127_s17, 4  ;;  %s133_s19 = sshll.u32 %s2315_s18, 4  ;;  %s134_s19 = int_to_ptr.vmem [resolvable:$true] %s133_s19 }
  0xcc   :  { %s129_s23 = scalar_lea.hbm %s3220_s2, %s1268_s11 }
  0xcd   :  { %s1612_s28 = scalar_lea.hbm %s129_s23, 32  ;;  %p1615_p4 = scmp.lt.u32.totalorder %s129_s23, %s3220_s2 }
  0xce   :  { %p1613_p2 = scmp.ne.s32.totalorder %s129_s23, %s1612_s28  ;;  %p1616_p5 = scmp.lt.u32.totalorder %s2415_s29, %s1612_s28 }
  0xcf   :  { %p1618_p7 = scmp.lt.u32.totalorder %s1612_s28, %s129_s23 }
  0xd0   :  { %p1617_p6 = por %p1616_p5, %p1615_p4 }
  0xd2   :  { %p1619_p8 = por %p1618_p7, %p1617_p6 }
  0xd4   :  { %p1620_p9 = pnand %p1619_p8, %p1613_p2 }
  0xd6   :  { %1623 = shalt.err (!%p1620_p9)  }
  0xd7   :  { %s1624_s15 = scalar_lea.vmem %s134_s19, 32  ;;  %p1629_p11 = scmp.lt.s32.totalorder %s134_s19, %s2391_s8 }
  0xd8   :  { %p1625_p10 = scmp.ne.s32.totalorder %s134_s19, %s1624_s15  ;;  %p1630_p12 = scmp.lt.s32.totalorder %s2432_s6, %s1624_s15 }
  0xda   :  { %p1631_p13 = por %p1630_p12, %p1629_p11 }
  0xdc   :  { %p1632_p0 = pnand %p1631_p13, %p1625_p10 }
  0xde   :  { %1635 = shalt.err (!%p1632_p0)  }
  0xdf   :  { %136 = dma.hbm_to_vmem [thread:$0]  %s129_s23, 32, %s134_s19, [#allocation3 + $0x7], %s2309_s7, %s2309_s7, %s2310_s9 }
  0xe0   :  { %s1269_s12 = sld [smem:[#allocation5 + $0x8]]  ;;  %s2316_s21 = smov [#allocation2 + $0x10]  }
  0xe1   :  { %s147_s14 = sshll.u32 %s2316_s21, 4  ;;  %s1272_s27 = sld [smem:[#allocation5 + $0x9]]  ;;  %s2561_s14 = int_to_ptr.vmem [resolvable:$true] %s147_s14 }
  0xe2   :  { %s2317_s0 = smov [#allocation2 + $0x11]   ;;  %s2563_s25 = sld [smem:[#allocation5 + $0xa]] }
  0xe3   :  { %s161_s13 = sshll.u32 %s2317_s0, 4  ;;  %s2318_s30 = smov [#allocation2 + $0x12]   ;;  %s2565_s13 = int_to_ptr.vmem [resolvable:$true] %s161_s13 }
  0xe4   :  { %s2567_s1 = sshll.u32 %s2318_s30, 4  ;;  %s2569_s16 = sld [smem:[#allocation5 + $0xb]]  ;;  %s176_s1 = int_to_ptr.vmem [resolvable:$true] %s2567_s1 }
  0xe6   :  { %s138_s5 = sshrl.u32 %s1269_s12, 3  ;;  %s139_s17 = sand.u32 7, %s1269_s12  }
  0xe7   :  { %s1270_s11 = sshll.u32 %s138_s5, 4  ;;  %s152_s18 = sshrl.u32 %s1272_s27, 3 }
  0xe8   :  { %s141_s19 = sadd.s32 %s1270_s11, %s139_s17  ;;  %s153_s20 = sand.u32 7, %s1272_s27  }
  0xe9   :  { %s1271_s22 = sshll.u32 %s141_s19, 4  ;;  %s1273_s23 = sshll.u32 %s152_s18, 4 }
  0xea   :  { %s143_s26 = scalar_lea.hbm %s3220_s2, %s1271_s22  ;;  %s155_s15 = sadd.s32 %s1273_s23, %s153_s20 }
  0xeb   :  { %s1636_s21 = scalar_lea.hbm %s143_s26, 32  ;;  %p1639_p2 = scmp.lt.u32.totalorder %s143_s26, %s3220_s2 }
  0xec   :  { %p1637_p1 = scmp.ne.s32.totalorder %s143_s26, %s1636_s21  ;;  %p1640_p4 = scmp.lt.u32.totalorder %s2415_s29, %s1636_s21 }
  0xed   :  { %p1642_p6 = scmp.lt.u32.totalorder %s1636_s21, %s143_s26 }
  0xee   :  { %p1641_p5 = por %p1640_p4, %p1639_p2 }
  0xf0   :  { %p1643_p7 = por %p1642_p6, %p1641_p5 }
  0xf2   :  { %p1644_p8 = pnand %p1643_p7, %p1637_p1 }
  0xf4   :  { %1647 = shalt.err (!%p1644_p8)  }
  0xf5   :  { %s1648_s12 = scalar_lea.vmem %s2561_s14, 32  ;;  %p1653_p10 = scmp.lt.s32.totalorder %s2561_s14, %s2391_s8 }
  0xf6   :  { %p1649_p9 = scmp.ne.s32.totalorder %s2561_s14, %s1648_s12  ;;  %p1654_p11 = scmp.lt.s32.totalorder %s2432_s6, %s1648_s12 }
  0xf8   :  { %p1655_p12 = por %p1654_p11, %p1653_p10 }
  0xfa   :  { %p1656_p13 = pnand %p1655_p12, %p1649_p9 }
  0xfc   :  { %1659 = shalt.err (!%p1656_p13)  }
  0xfd   :  { %150 = dma.hbm_to_vmem [thread:$0]  %s143_s26, 32, %s2561_s14, [#allocation3 + $0x8], %s2309_s7, %s2309_s7, %s2310_s9 }
  0xfe   :  { %s1274_s27 = sshll.u32 %s155_s15, 4  ;;  %s166_s5 = sshrl.u32 %s2563_s25, 3 }
  0xff   :  { %s157_s18 = scalar_lea.hbm %s3220_s2, %s1274_s27  ;;  %s167_s19 = sand.u32 7, %s2563_s25  }
 0x100   :  { %s1660_s20 = scalar_lea.hbm %s157_s18, 32  ;;  %p1663_p1 = scmp.lt.u32.totalorder %s157_s18, %s3220_s2 }
 0x101   :  { %p1661_p0 = scmp.ne.s32.totalorder %s157_s18, %s1660_s20  ;;  %p1664_p2 = scmp.lt.u32.totalorder %s2415_s29, %s1660_s20 }
 0x102   :  { %p1666_p5 = scmp.lt.u32.totalorder %s1660_s20, %s157_s18 }
 0x103   :  { %p1665_p4 = por %p1664_p2, %p1663_p1 }
 0x105   :  { %p1667_p6 = por %p1666_p5, %p1665_p4 }
 0x107   :  { %p1668_p7 = pnand %p1667_p6, %p1661_p0 }
 0x109   :  { %1671 = shalt.err (!%p1668_p7)  }
 0x10a   :  { %s1672_s14 = scalar_lea.vmem %s2565_s13, 32  ;;  %p1677_p9 = scmp.lt.s32.totalorder %s2565_s13, %s2391_s8 }
 0x10b   :  { %p1673_p8 = scmp.ne.s32.totalorder %s2565_s13, %s1672_s14  ;;  %p1678_p10 = scmp.lt.s32.totalorder %s2432_s6, %s1672_s14 }
 0x10d   :  { %p1679_p11 = por %p1678_p10, %p1677_p9 }
 0x10f   :  { %p1680_p12 = pnand %p1679_p11, %p1673_p8 }
 0x111   :  { %1683 = shalt.err (!%p1680_p12)  }
 0x112   :  { %164 = dma.hbm_to_vmem [thread:$0]  %s157_s18, 32, %s2565_s13, [#allocation3 + $0x9], %s2309_s7, %s2309_s7, %s2310_s9 }
 0x113   :  { %s1276_s25 = sshll.u32 %s166_s5, 4  ;;  %s180_s10 = sshrl.u32 %s2569_s16, 3 }
 0x114   :  { %s169_s28 = sadd.s32 %s1276_s25, %s167_s19  ;;  %s181_s15 = sand.u32 7, %s2569_s16  }
 0x115   :  { %s1277_s26 = sshll.u32 %s169_s28, 4  ;;  %s1279_s12 = sshll.u32 %s180_s10, 4 }
 0x116   :  { %s171_s30 = scalar_lea.hbm %s3220_s2, %s1277_s26 }
 0x117   :  { %s1684_s27 = scalar_lea.hbm %s171_s30, 32  ;;  %p1687_p0 = scmp.lt.u32.totalorder %s171_s30, %s3220_s2 }
 0x118   :  { %p1685_p13 = scmp.ne.s32.totalorder %s171_s30, %s1684_s27  ;;  %p1688_p1 = scmp.lt.u32.totalorder %s2415_s29, %s1684_s27 }
 0x119   :  { %p1690_p4 = scmp.lt.u32.totalorder %s1684_s27, %s171_s30 }
 0x11a   :  { %p1689_p2 = por %p1688_p1, %p1687_p0 }
 0x11c   :  { %p1691_p5 = por %p1690_p4, %p1689_p2 }
 0x11e   :  { %p1692_p6 = pnand %p1691_p5, %p1685_p13 }
 0x120   :  { %1695 = shalt.err (!%p1692_p6)  }
 0x121   :  { %s1696_s13 = scalar_lea.vmem %s176_s1, 32  ;;  %p1701_p8 = scmp.lt.s32.totalorder %s176_s1, %s2391_s8 }
 0x122   :  { %p1697_p7 = scmp.ne.s32.totalorder %s176_s1, %s1696_s13  ;;  %p1702_p9 = scmp.lt.s32.totalorder %s2432_s6, %s1696_s13 }
 0x124   :  { %p1703_p10 = por %p1702_p9, %p1701_p8 }
 0x126   :  { %p1704_p11 = pnand %p1703_p10, %p1697_p7 }
 0x128   :  { %1707 = shalt.err (!%p1704_p11)  }
 0x129   :  { %178 = dma.hbm_to_vmem [thread:$0]  %s171_s30, 32, %s176_s1, [#allocation3 + $0xa], %s2309_s7, %s2309_s7, %s2310_s9 }
 0x12a   :  { %s183_s16 = sadd.s32 %s1279_s12, %s181_s15  ;;  %s2319_s18 = smov [#allocation2 + $0x13]  }
 0x12b   :  { %s1280_s5 = sshll.u32 %s183_s16, 4  ;;  %s189_s19 = sshll.u32 %s2319_s18, 4  ;;  %s190_s19 = int_to_ptr.vmem [resolvable:$true] %s189_s19 }
 0x12c   :  { %s185_s23 = scalar_lea.hbm %s3220_s2, %s1280_s5 }
 0x12d   :  { %s1708_s14 = scalar_lea.hbm %s185_s23, 32  ;;  %p1711_p13 = scmp.lt.u32.totalorder %s185_s23, %s3220_s2 }
 0x12e   :  { %p1709_p12 = scmp.ne.s32.totalorder %s185_s23, %s1708_s14  ;;  %p1712_p0 = scmp.lt.u32.totalorder %s2415_s29, %s1708_s14 }
 0x12f   :  { %p1714_p2 = scmp.lt.u32.totalorder %s1708_s14, %s185_s23 }
 0x130   :  { %p1713_p1 = por %p1712_p0, %p1711_p13 }
 0x132   :  { %p1715_p4 = por %p1714_p2, %p1713_p1 }
 0x134   :  { %p1716_p5 = pnand %p1715_p4, %p1709_p12 }
 0x136   :  { %1719 = shalt.err (!%p1716_p5)  }
 0x137   :  { %s1720_s1 = scalar_lea.vmem %s190_s19, 32  ;;  %p1725_p7 = scmp.lt.s32.totalorder %s190_s19, %s2391_s8 }
 0x138   :  { %p1721_p6 = scmp.ne.s32.totalorder %s190_s19, %s1720_s1  ;;  %p1726_p8 = scmp.lt.s32.totalorder %s2432_s6, %s1720_s1 }
 0x13a   :  { %p1727_p9 = por %p1726_p8, %p1725_p7 }
 0x13c   :  { %p1728_p10 = pnand %p1727_p9, %p1721_p6 }
 0x13e   :  { %1731 = shalt.err (!%p1728_p10)  }
 0x13f   :  { %192 = dma.hbm_to_vmem [thread:$0]  %s185_s23, 32, %s190_s19, [#allocation3 + $0xb], %s2309_s7, %s2309_s7, %s2310_s9 }
 0x140   :  { %s2320_s10 = smov [#allocation2 + $0x14]   ;;  %s2321_s15 = smov [#allocation2 + $0x15]  }
 0x141   :  { %s203_s26 = sshll.u32 %s2320_s10, 4  ;;  %s217_s21 = sshll.u32 %s2321_s15, 4  ;;  %s204_s26 = int_to_ptr.vmem [resolvable:$true] %s203_s26  ;;  %s218_s21 = int_to_ptr.vmem [resolvable:$true] %s217_s21 }
 0x142   :  { %1743 = shalt.err (!%p2423_p3)  }
 0x143   :  { %s1744_s0 = scalar_lea.vmem %s204_s26, 32  ;;  %p1749_p12 = scmp.lt.s32.totalorder %s204_s26, %s2391_s8 }
 0x144   :  { %p1745_p11 = scmp.ne.s32.totalorder %s204_s26, %s1744_s0  ;;  %p1750_p13 = scmp.lt.s32.totalorder %s2432_s6, %s1744_s0 }
 0x146   :  { %p1751_p0 = por %p1750_p13, %p1749_p12 }
 0x148   :  { %p1752_p1 = pnand %p1751_p0, %p1745_p11 }
 0x14a   :  { %1755 = shalt.err (!%p1752_p1)  }
 0x14b   :  { %206 = dma.hbm_to_vmem [thread:$0]  %s2408_s24, 32, %s204_s26, [#allocation3 + $0xc], %s2309_s7, %s2309_s7, %s2310_s9 }
 0x14c   :  { %1767 = shalt.err (!%p2423_p3)  }
 0x14d   :  { %s1768_s30 = scalar_lea.vmem %s218_s21, 32  ;;  %p1773_p4 = scmp.lt.s32.totalorder %s218_s21, %s2391_s8 }
 0x14e   :  { %p1769_p2 = scmp.ne.s32.totalorder %s218_s21, %s1768_s30  ;;  %p1774_p5 = scmp.lt.s32.totalorder %s2432_s6, %s1768_s30 }
 0x150   :  { %p1775_p6 = por %p1774_p5, %p1773_p4 }
 0x152   :  { %p1776_p7 = pnand %p1775_p6, %p1769_p2 }
 0x154   :  { %1779 = shalt.err (!%p1776_p7)  }
 0x155   :  { %220 = dma.hbm_to_vmem [thread:$0]  %s2408_s24, 32, %s218_s21, [#allocation3 + $0xd], %s2309_s7, %s2309_s7, %s2310_s9 }
 0x156   :  { %s2322_s12 = smov [#allocation2 + $0x16]   ;;  %s2323_s17 = smov [#allocation2 + $0x17]  }
 0x157   :  { %s231_s27 = sshll.u32 %s2322_s12, 4  ;;  %s245_s11 = sshll.u32 %s2323_s17, 4  ;;  %s232_s27 = int_to_ptr.vmem [resolvable:$true] %s231_s27  ;;  %s246_s11 = int_to_ptr.vmem [resolvable:$true] %s245_s11 }
 0x158   :  { %1791 = shalt.err (!%p2423_p3)  }
 0x159   :  { %s1792_s13 = scalar_lea.vmem %s232_s27, 32  ;;  %p1797_p9 = scmp.lt.s32.totalorder %s232_s27, %s2391_s8 }
 0x15a   :  { %p1793_p8 = scmp.ne.s32.totalorder %s232_s27, %s1792_s13  ;;  %p1798_p10 = scmp.lt.s32.totalorder %s2432_s6, %s1792_s13 }
 0x15c   :  { %p1799_p11 = por %p1798_p10, %p1797_p9 }
 0x15e   :  { %p1800_p12 = pnand %p1799_p11, %p1793_p8 }
 0x160   :  { %1803 = shalt.err (!%p1800_p12)  }
 0x161   :  { %234 = dma.hbm_to_vmem [thread:$0]  %s2408_s24, 32, %s232_s27, [#allocation3 + $0xe], %s2309_s7, %s2309_s7, %s2310_s9 }
 0x162   :  { %1815 = shalt.err (!%p2423_p3)  }
 0x163   :  { %s1816_s16 = scalar_lea.vmem %s246_s11, 32  ;;  %p1821_p0 = scmp.lt.s32.totalorder %s246_s11, %s2391_s8 }
 0x164   :  { %p1817_p13 = scmp.ne.s32.totalorder %s246_s11, %s1816_s16  ;;  %p1822_p1 = scmp.lt.s32.totalorder %s2432_s6, %s1816_s16 }
 0x166   :  { %p1823_p2 = por %p1822_p1, %p1821_p0 }
 0x168   :  { %p1824_p4 = pnand %p1823_p2, %p1817_p13 }
 0x16a   :  { %1827 = shalt.err (!%p1824_p4)  }
 0x16b   :  { %248 = dma.hbm_to_vmem [thread:$0]  %s2408_s24, 32, %s246_s11, [#allocation3 + $0xf], %s2309_s7, %s2309_s7, %s2310_s9 }
 0x16c   :  { %s1289_s5 = sld [smem:[#allocation5 + $0xc]]  ;;  %s2324_s18 = smov [#allocation2 + $0x20]  }
 0x16d   :  { %s259_s19 = sshll.u32 %s2324_s18, 4  ;;  %s1292_s20 = sld [smem:[#allocation5 + $0xd]]  ;;  %s2664_s19 = int_to_ptr.vmem [resolvable:$true] %s259_s19 }
 0x16e   :  { %s2325_s4 = smov [#allocation2 + $0x21]   ;;  %s2666_s23 = sld [smem:[#allocation5 + $0xe]] }
 0x16f   :  { %s273_s22 = sshll.u32 %s2325_s4, 4  ;;  %s2326_s14 = smov [#allocation2 + $0x22]   ;;  %s2668_s22 = int_to_ptr.vmem [resolvable:$true] %s273_s22 }
 0x170   :  { %s2670_s25 = sshll.u32 %s2326_s14, 4  ;;  %s2672_s28 = sld [smem:[#allocation5 + $0xf]]  ;;  %s288_s25 = int_to_ptr.vmem [resolvable:$true] %s2670_s25 }
 0x172   :  { %s250_s1 = sshrl.u32 %s1289_s5, 3  ;;  %s251_s24 = sand.u32 7, %s1289_s5  }
 0x173   :  { %s1290_s10 = sshll.u32 %s250_s1, 4  ;;  %s264_s26 = sshrl.u32 %s1292_s20, 3 }
 0x174   :  { %s253_s15 = sadd.s32 %s1290_s10, %s251_s24  ;;  %s265_s21 = sand.u32 7, %s1292_s20  }
 0x175   :  { %s1291_s0 = sshll.u32 %s253_s15, 4  ;;  %s1293_s30 = sshll.u32 %s264_s26, 4 }
 0x176   :  { %s2677_s17 = scalar_lea.hbm %s3220_s2, %s1291_s0  ;;  %s267_s11 = sadd.s32 %s1293_s30, %s265_s21 }
 0x177   :  { %s1828_s13 = scalar_lea.hbm %s2677_s17, 32  ;;  %p1831_p5 = scmp.lt.u32.totalorder %s2677_s17, %s3220_s2 }
 0x178   :  { %p1829_p3 = scmp.ne.s32.totalorder %s2677_s17, %s1828_s13  ;;  %p1832_p6 = scmp.lt.u32.totalorder %s2415_s29, %s1828_s13 }
 0x179   :  { %p1834_p8 = scmp.lt.u32.totalorder %s1828_s13, %s2677_s17 }
 0x17a   :  { %p1833_p7 = por %p1832_p6, %p1831_p5 }
 0x17c   :  { %p1835_p9 = por %p1834_p8, %p1833_p7 }
 0x17e   :  { %p2687_p10 = pnand %p1835_p9, %p1829_p3 }
 0x180   :  { %1839 = shalt.err (!%p2687_p10)  }
 0x181   :  { %s1840_s20 = scalar_lea.vmem %s2664_s19, 32  ;;  %p1845_p12 = scmp.lt.s32.totalorder %s2664_s19, %s2391_s8 }
 0x182   :  { %p1841_p11 = scmp.ne.s32.totalorder %s2664_s19, %s1840_s20  ;;  %p1846_p13 = scmp.lt.s32.totalorder %s2432_s6, %s1840_s20 }
 0x184   :  { %p1847_p0 = por %p1846_p13, %p1845_p12 }
 0x186   :  { %p1848_p1 = pnand %p1847_p0, %p1841_p11 }
 0x188   :  { %1851 = shalt.err (!%p1848_p1)  }
 0x189   :  { %262 = dma.hbm_to_vmem [thread:$0]  %s2677_s17, 32, %s2664_s19, [#allocation3 + $0x10], %s2309_s7, %s2309_s7, %s2310_s9 }
 0x18a   :  { %s1294_s4 = sshll.u32 %s267_s11, 4  ;;  %s278_s14 = sshrl.u32 %s2666_s23, 3 }
 0x18b   :  { %s269_s10 = scalar_lea.hbm %s3220_s2, %s1294_s4  ;;  %s279_s26 = sand.u32 7, %s2666_s23  }
 0x18c   :  { %s1852_s15 = scalar_lea.hbm %s269_s10, 32  ;;  %p1855_p4 = scmp.lt.u32.totalorder %s269_s10, %s3220_s2 }
 0x18d   :  { %p1853_p2 = scmp.ne.s32.totalorder %s269_s10, %s1852_s15  ;;  %p1856_p3 = scmp.lt.u32.totalorder %s2415_s29, %s1852_s15 }
 0x18e   :  { %p1858_p6 = scmp.lt.u32.totalorder %s1852_s15, %s269_s10 }
 0x18f   :  { %p1857_p5 = por %p1856_p3, %p1855_p4 }
 0x191   :  { %p1859_p7 = por %p1858_p6, %p1857_p5 }
 0x193   :  { %p1860_p8 = pnand %p1859_p7, %p1853_p2 }
 0x195   :  { %1863 = shalt.err (!%p1860_p8)  }
 0x196   :  { %s1864_s19 = scalar_lea.vmem %s2668_s22, 32  ;;  %p1869_p11 = scmp.lt.s32.totalorder %s2668_s22, %s2391_s8 }
 0x197   :  { %p1865_p9 = scmp.ne.s32.totalorder %s2668_s22, %s1864_s19  ;;  %p1870_p12 = scmp.lt.s32.totalorder %s2432_s6, %s1864_s19 }
 0x199   :  { %p1871_p13 = por %p1870_p12, %p1869_p11 }
 0x19b   :  { %p1872_p0 = pnand %p1871_p13, %p1865_p9 }
 0x19d   :  { %1875 = shalt.err (!%p1872_p0)  }
 0x19e   :  { %276 = dma.hbm_to_vmem [thread:$0]  %s269_s10, 32, %s2668_s22, [#allocation3 + $0x11], %s2309_s7, %s2309_s7, %s2310_s9 }
 0x19f   :  { %s1296_s23 = sshll.u32 %s278_s14, 4  ;;  %s292_s12 = sshrl.u32 %s2672_s28, 3 }
 0x1a0   :  { %s281_s30 = sadd.s32 %s1296_s23, %s279_s26  ;;  %s293_s11 = sand.u32 7, %s2672_s28  }
 0x1a1   :  { %s1297_s27 = sshll.u32 %s281_s30, 4  ;;  %s1299_s20 = sshll.u32 %s292_s12, 4 }
 0x1a2   :  { %s283_s5 = scalar_lea.hbm %s3220_s2, %s1297_s27 }
 0x1a3   :  { %s1876_s4 = scalar_lea.hbm %s283_s5, 32  ;;  %p1879_p2 = scmp.lt.u32.totalorder %s283_s5, %s3220_s2 }
 0x1a4   :  { %p1877_p1 = scmp.ne.s32.totalorder %s283_s5, %s1876_s4  ;;  %p1880_p4 = scmp.lt.u32.totalorder %s2415_s29, %s1876_s4 }
 0x1a5   :  { %p1882_p5 = scmp.lt.u32.totalorder %s1876_s4, %s283_s5 }
 0x1a6   :  { %p1881_p3 = por %p1880_p4, %p1879_p2 }
 0x1a8   :  { %p1883_p6 = por %p1882_p5, %p1881_p3 }
 0x1aa   :  { %p1884_p7 = pnand %p1883_p6, %p1877_p1 }
 0x1ac   :  { %1887 = shalt.err (!%p1884_p7)  }
 0x1ad   :  { %s1888_s22 = scalar_lea.vmem %s288_s25, 32  ;;  %p1893_p9 = scmp.lt.s32.totalorder %s288_s25, %s2391_s8 }
 0x1ae   :  { %p1889_p8 = scmp.ne.s32.totalorder %s288_s25, %s1888_s22  ;;  %p1894_p11 = scmp.lt.s32.totalorder %s2432_s6, %s1888_s22 }
 0x1b0   :  { %p1895_p12 = por %p1894_p11, %p1893_p9 }
 0x1b2   :  { %p1896_p13 = pnand %p1895_p12, %p1889_p8 }
 0x1b4   :  { %1899 = shalt.err (!%p1896_p13)  }
 0x1b5   :  { %290 = dma.hbm_to_vmem [thread:$0]  %s283_s5, 32, %s288_s25, [#allocation3 + $0x12], %s2309_s7, %s2309_s7, %s2310_s9 }
 0x1b6   :  { %s295_s28 = sadd.s32 %s1299_s20, %s293_s11  ;;  %s2327_s10 = smov [#allocation2 + $0x23]  }
 0x1b7   :  { %s1300_s14 = sshll.u32 %s295_s28, 4  ;;  %s301_s26 = sshll.u32 %s2327_s10, 4  ;;  %s302_s26 = int_to_ptr.vmem [resolvable:$true] %s301_s26 }
 0x1b8   :  { %s297_s0 = scalar_lea.hbm %s3220_s2, %s1300_s14 }
 0x1b9   :  { %s1900_s19 = scalar_lea.hbm %s297_s0, 32  ;;  %p1903_p1 = scmp.lt.u32.totalorder %s297_s0, %s3220_s2 }
 0x1ba   :  { %p1901_p0 = scmp.ne.s32.totalorder %s297_s0, %s1900_s19  ;;  %p1904_p2 = scmp.lt.u32.totalorder %s2415_s29, %s1900_s19 }
 0x1bb   :  { %p1906_p3 = scmp.lt.u32.totalorder %s1900_s19, %s297_s0 }
 0x1bc   :  { %p1905_p4 = por %p1904_p2, %p1903_p1 }
 0x1be   :  { %p1907_p5 = por %p1906_p3, %p1905_p4 }
 0x1c0   :  { %p1908_p6 = pnand %p1907_p5, %p1901_p0 }
 0x1c2   :  { %1911 = shalt.err (!%p1908_p6)  }
 0x1c3   :  { %s1912_s25 = scalar_lea.vmem %s302_s26, 32  ;;  %p1917_p8 = scmp.lt.s32.totalorder %s302_s26, %s2391_s8 }
 0x1c4   :  { %p1913_p7 = scmp.ne.s32.totalorder %s302_s26, %s1912_s25  ;;  %p1918_p9 = scmp.lt.s32.totalorder %s2432_s6, %s1912_s25 }
 0x1c6   :  { %p1919_p11 = por %p1918_p9, %p1917_p8 }
 0x1c8   :  { %p1920_p12 = pnand %p1919_p11, %p1913_p7 }
 0x1ca   :  { %1923 = shalt.err (!%p1920_p12)  }
 0x1cb   :  { %304 = dma.hbm_to_vmem [thread:$0]  %s297_s0, 32, %s302_s26, [#allocation3 + $0x13], %s2309_s7, %s2309_s7, %s2310_s9 }
 0x1cc   :  { %s1301_s12 = sld [smem:[#allocation5 + $0x10]]  ;;  %s2328_s27 = smov [#allocation2 + $0x24]  }
 0x1cd   :  { %s315_s11 = sshll.u32 %s2328_s27, 4  ;;  %s1304_s13 = sld [smem:[#allocation5 + $0x11]]  ;;  %s2748_s11 = int_to_ptr.vmem [resolvable:$true] %s315_s11 }
 0x1ce   :  { %s2329_s16 = smov [#allocation2 + $0x25]   ;;  %s2750_s20 = sld [smem:[#allocation5 + $0x12]] }
 0x1cf   :  { %s329_s5 = sshll.u32 %s2329_s16, 4  ;;  %s2330_s4 = smov [#allocation2 + $0x26]   ;;  %s2752_s5 = int_to_ptr.vmem [resolvable:$true] %s329_s5 }
 0x1d0   :  { %s2754_s1 = sshll.u32 %s2330_s4, 4  ;;  %s2756_s24 = sld [smem:[#allocation5 + $0x13]]  ;;  %s344_s1 = int_to_ptr.vmem [resolvable:$true] %s2754_s1 }
 0x1d2   :  { %s306_s22 = sshrl.u32 %s1301_s12, 3  ;;  %s307_s28 = sand.u32 7, %s1301_s12  }
 0x1d3   :  { %s1302_s14 = sshll.u32 %s306_s22, 4  ;;  %s320_s10 = sshrl.u32 %s1304_s13, 3 }
 0x1d4   :  { %s309_s26 = sadd.s32 %s1302_s14, %s307_s28  ;;  %s321_s15 = sand.u32 7, %s1304_s13  }
 0x1d5   :  { %s1303_s21 = sshll.u32 %s309_s26, 4  ;;  %s1305_s0 = sshll.u32 %s320_s10, 4 }
 0x1d6   :  { %s311_s30 = scalar_lea.hbm %s3220_s2, %s1303_s21  ;;  %s323_s25 = sadd.s32 %s1305_s0, %s321_s15 }
 0x1d7   :  { %s1924_s27 = scalar_lea.hbm %s311_s30, 32  ;;  %p1927_p0 = scmp.lt.u32.totalorder %s311_s30, %s3220_s2 }
 0x1d8   :  { %p1925_p13 = scmp.ne.s32.totalorder %s311_s30, %s1924_s27  ;;  %p1928_p1 = scmp.lt.u32.totalorder %s2415_s29, %s1924_s27 }
 0x1d9   :  { %p1930_p4 = scmp.lt.u32.totalorder %s1924_s27, %s311_s30 }
 0x1da   :  { %p1929_p2 = por %p1928_p1, %p1927_p0 }
 0x1dc   :  { %p1931_p3 = por %p1930_p4, %p1929_p2 }
 0x1de   :  { %p1932_p5 = pnand %p1931_p3, %p1925_p13 }
 0x1e0   :  { %1935 = shalt.err (!%p1932_p5)  }
 0x1e1   :  { %s1936_s12 = scalar_lea.vmem %s2748_s11, 32  ;;  %p1941_p7 = scmp.lt.s32.totalorder %s2748_s11, %s2391_s8 }
 0x1e2   :  { %p1937_p6 = scmp.ne.s32.totalorder %s2748_s11, %s1936_s12  ;;  %p1942_p8 = scmp.lt.s32.totalorder %s2432_s6, %s1936_s12 }
 0x1e4   :  { %p1943_p9 = por %p1942_p8, %p1941_p7 }
 0x1e6   :  { %p1944_p11 = pnand %p1943_p9, %p1937_p6 }
 0x1e8   :  { %1947 = shalt.err (!%p1944_p11)  }
 0x1e9   :  { %318 = dma.hbm_to_vmem [thread:$0]  %s311_s30, 32, %s2748_s11, [#allocation3 + $0x14], %s2309_s7, %s2309_s7, %s2310_s9 }
 0x1ea   :  { %s1306_s13 = sshll.u32 %s323_s25, 4  ;;  %s334_s22 = sshrl.u32 %s2750_s20, 3 }
 0x1eb   :  { %s325_s10 = scalar_lea.hbm %s3220_s2, %s1306_s13  ;;  %s335_s26 = sand.u32 7, %s2750_s20  }
 0x1ec   :  { %s1948_s15 = scalar_lea.hbm %s325_s10, 32  ;;  %p1951_p13 = scmp.lt.u32.totalorder %s325_s10, %s3220_s2 }
 0x1ed   :  { %p1949_p12 = scmp.ne.s32.totalorder %s325_s10, %s1948_s15  ;;  %p1952_p0 = scmp.lt.u32.totalorder %s2415_s29, %s1948_s15 }
 0x1ee   :  { %p1954_p2 = scmp.lt.u32.totalorder %s1948_s15, %s325_s10 }
 0x1ef   :  { %p1953_p1 = por %p1952_p0, %p1951_p13 }
 0x1f1   :  { %p1955_p4 = por %p1954_p2, %p1953_p1 }
 0x1f3   :  { %p1956_p3 = pnand %p1955_p4, %p1949_p12 }
 0x1f5   :  { %1959 = shalt.err (!%p1956_p3)  }
 0x1f6   :  { %s1960_s11 = scalar_lea.vmem %s2752_s5, 32  ;;  %p1965_p6 = scmp.lt.s32.totalorder %s2752_s5, %s2391_s8 }
 0x1f7   :  { %p1961_p5 = scmp.ne.s32.totalorder %s2752_s5, %s1960_s11  ;;  %p1966_p7 = scmp.lt.s32.totalorder %s2432_s6, %s1960_s11 }
 0x1f9   :  { %p1967_p8 = por %p1966_p7, %p1965_p6 }
 0x1fb   :  { %p1968_p9 = pnand %p1967_p8, %p1961_p5 }
 0x1fd   :  { %1971 = shalt.err (!%p1968_p9)  }
 0x1fe   :  { %332 = dma.hbm_to_vmem [thread:$0]  %s325_s10, 32, %s2752_s5, [#allocation3 + $0x15], %s2309_s7, %s2309_s7, %s2310_s9 }
 0x1ff   :  { %s1308_s20 = sshll.u32 %s334_s22, 4  ;;  %s348_s23 = sshrl.u32 %s2756_s24, 3 }
 0x200   :  { %s337_s19 = sadd.s32 %s1308_s20, %s335_s26  ;;  %s349_s25 = sand.u32 7, %s2756_s24  }
 0x201   :  { %s1309_s30 = sshll.u32 %s337_s19, 4  ;;  %s1311_s12 = sshll.u32 %s348_s23, 4 }
 0x202   :  { %s339_s4 = scalar_lea.hbm %s3220_s2, %s1309_s30 }
 0x203   :  { %s1972_s13 = scalar_lea.hbm %s339_s4, 32  ;;  %p1975_p12 = scmp.lt.u32.totalorder %s339_s4, %s3220_s2 }
 0x204   :  { %p1973_p11 = scmp.ne.s32.totalorder %s339_s4, %s1972_s13  ;;  %p1976_p13 = scmp.lt.u32.totalorder %s2415_s29, %s1972_s13 }
 0x205   :  { %p1978_p1 = scmp.lt.u32.totalorder %s1972_s13, %s339_s4 }
 0x206   :  { %p1977_p0 = por %p1976_p13, %p1975_p12 }
 0x208   :  { %p1979_p2 = por %p1978_p1, %p1977_p0 }
 0x20a   :  { %p1980_p4 = pnand %p1979_p2, %p1973_p11 }
 0x20c   :  { %1983 = shalt.err (!%p1980_p4)  }
 0x20d   :  { %s1984_s5 = scalar_lea.vmem %s344_s1, 32  ;;  %p1989_p5 = scmp.lt.s32.totalorder %s344_s1, %s2391_s8 }
 0x20e   :  { %p1985_p3 = scmp.ne.s32.totalorder %s344_s1, %s1984_s5  ;;  %p1990_p6 = scmp.lt.s32.totalorder %s2432_s6, %s1984_s5 }
 0x210   :  { %p1991_p7 = por %p1990_p6, %p1989_p5 }
 0x212   :  { %p1992_p8 = pnand %p1991_p7, %p1985_p3 }
 0x214   :  { %1995 = shalt.err (!%p1992_p8)  }
 0x215   :  { %346 = dma.hbm_to_vmem [thread:$0]  %s339_s4, 32, %s344_s1, [#allocation3 + $0x16], %s2309_s7, %s2309_s7, %s2310_s9 }
 0x216   :  { %s351_s24 = sadd.s32 %s1311_s12, %s349_s25  ;;  %s2331_s10 = smov [#allocation2 + $0x27]  }
 0x217   :  { %s1312_s22 = sshll.u32 %s351_s24, 4  ;;  %s357_s26 = sshll.u32 %s2331_s10, 4  ;;  %s358_s26 = int_to_ptr.vmem [resolvable:$true] %s357_s26 }
 0x218   :  { %s353_s0 = scalar_lea.hbm %s3220_s2, %s1312_s22 }
 0x219   :  { %s1996_s11 = scalar_lea.hbm %s353_s0, 32  ;;  %p1999_p11 = scmp.lt.u32.totalorder %s353_s0, %s3220_s2 }
 0x21a   :  { %p1997_p9 = scmp.ne.s32.totalorder %s353_s0, %s1996_s11  ;;  %p2000_p12 = scmp.lt.u32.totalorder %s2415_s29, %s1996_s11 }
 0x21b   :  { %p2002_p0 = scmp.lt.u32.totalorder %s1996_s11, %s353_s0 }
 0x21c   :  { %p2001_p13 = por %p2000_p12, %p1999_p11 }
 0x21e   :  { %p2003_p1 = por %p2002_p0, %p2001_p13 }
 0x220   :  { %p2004_p2 = pnand %p2003_p1, %p1997_p9 }
 0x222   :  { %2007 = shalt.err (!%p2004_p2)  }
 0x223   :  { %s2008_s1 = scalar_lea.vmem %s358_s26, 32  ;;  %p2013_p3 = scmp.lt.s32.totalorder %s358_s26, %s2391_s8 }
 0x224   :  { %p2009_p4 = scmp.ne.s32.totalorder %s358_s26, %s2008_s1  ;;  %p2014_p5 = scmp.lt.s32.totalorder %s2432_s6, %s2008_s1 }
 0x226   :  { %p2015_p6 = por %p2014_p5, %p2013_p3 }
 0x228   :  { %p2016_p7 = pnand %p2015_p6, %p2009_p4 }
 0x22a   :  { %2019 = shalt.err (!%p2016_p7)  }
 0x22b   :  { %360 = dma.hbm_to_vmem [thread:$0]  %s353_s0, 32, %s358_s26, [#allocation3 + $0x17], %s2309_s7, %s2309_s7, %s2310_s9 }
 0x22c   :  { %s1313_s23 = sld [smem:[#allocation5 + $0x14]]  ;;  %s2332_s30 = smov [#allocation2 + $0x30]  }
 0x22d   :  { %s371_s25 = sshll.u32 %s2332_s30, 4  ;;  %s1316_s27 = sld [smem:[#allocation5 + $0x15]]  ;;  %s2819_s25 = int_to_ptr.vmem [resolvable:$true] %s371_s25 }
 0x22e   :  { %s2333_s16 = smov [#allocation2 + $0x31]   ;;  %s2821_s12 = sld [smem:[#allocation5 + $0x16]] }
 0x22f   :  { %s385_s4 = sshll.u32 %s2333_s16, 4  ;;  %s2334_s13 = smov [#allocation2 + $0x32]   ;;  %s2823_s4 = int_to_ptr.vmem [resolvable:$true] %s385_s4 }
 0x230   :  { %s2825_s28 = sshll.u32 %s2334_s13, 4  ;;  %s2827_s14 = sld [smem:[#allocation5 + $0x17]]  ;;  %s400_s28 = int_to_ptr.vmem [resolvable:$true] %s2825_s28 }
 0x232   :  { %s362_s5 = sshrl.u32 %s1313_s23, 3  ;;  %s363_s24 = sand.u32 7, %s1313_s23  }
 0x233   :  { %s1314_s22 = sshll.u32 %s362_s5, 4  ;;  %s376_s10 = sshrl.u32 %s1316_s27, 3 }
 0x234   :  { %s365_s26 = sadd.s32 %s1314_s22, %s363_s24  ;;  %s377_s15 = sand.u32 7, %s1316_s27  }
 0x235   :  { %s1315_s21 = sshll.u32 %s365_s26, 4  ;;  %s1317_s0 = sshll.u32 %s376_s10, 4 }
 0x236   :  { %s367_s19 = scalar_lea.hbm %s3220_s2, %s1315_s21  ;;  %s379_s1 = sadd.s32 %s1317_s0, %s377_s15 }
 0x237   :  { %s2020_s30 = scalar_lea.hbm %s367_s19, 32  ;;  %p2023_p9 = scmp.lt.u32.totalorder %s367_s19, %s3220_s2 }
 0x238   :  { %p2021_p8 = scmp.ne.s32.totalorder %s367_s19, %s2020_s30  ;;  %p2024_p11 = scmp.lt.u32.totalorder %s2415_s29, %s2020_s30 }
 0x239   :  { %p2026_p13 = scmp.lt.u32.totalorder %s2020_s30, %s367_s19 }
 0x23a   :  { %p2025_p12 = por %p2024_p11, %p2023_p9 }
 0x23c   :  { %p2027_p0 = por %p2026_p13, %p2025_p12 }
 0x23e   :  { %p2028_p1 = pnand %p2027_p0, %p2021_p8 }
 0x240   :  { %2031 = shalt.err (!%p2028_p1)  }
 0x241   :  { %s2032_s23 = scalar_lea.vmem %s2819_s25, 32  ;;  %p2037_p4 = scmp.lt.s32.totalorder %s2819_s25, %s2391_s8 }
 0x242   :  { %p2033_p2 = scmp.ne.s32.totalorder %s2819_s25, %s2032_s23  ;;  %p2038_p3 = scmp.lt.s32.totalorder %s2432_s6, %s2032_s23 }
 0x244   :  { %p2039_p5 = por %p2038_p3, %p2037_p4 }
 0x246   :  { %p2040_p6 = pnand %p2039_p5, %p2033_p2 }
 0x248   :  { %2043 = shalt.err (!%p2040_p6)  }
 0x249   :  { %374 = dma.hbm_to_vmem [thread:$0]  %s367_s19, 32, %s2819_s25, [#allocation3 + $0x18], %s2309_s7, %s2309_s7, %s2310_s9 }
 0x24a   :  { %s1318_s27 = sshll.u32 %s379_s1, 4  ;;  %s390_s5 = sshrl.u32 %s2821_s12, 3 }
 0x24b   :  { %s381_s10 = scalar_lea.hbm %s3220_s2, %s1318_s27  ;;  %s391_s26 = sand.u32 7, %s2821_s12  }
 0x24c   :  { %s2044_s15 = scalar_lea.hbm %s381_s10, 32  ;;  %p2047_p8 = scmp.lt.u32.totalorder %s381_s10, %s3220_s2 }
 0x24d   :  { %p2045_p7 = scmp.ne.s32.totalorder %s381_s10, %s2044_s15  ;;  %p2048_p9 = scmp.lt.u32.totalorder %s2415_s29, %s2044_s15 }
 0x24e   :  { %p2050_p12 = scmp.lt.u32.totalorder %s2044_s15, %s381_s10 }
 0x24f   :  { %p2049_p11 = por %p2048_p9, %p2047_p8 }
 0x251   :  { %p2051_p13 = por %p2050_p12, %p2049_p11 }
 0x253   :  { %p2052_p0 = pnand %p2051_p13, %p2045_p7 }
 0x255   :  { %2055 = shalt.err (!%p2052_p0)  }
 0x256   :  { %s2056_s25 = scalar_lea.vmem %s2823_s4, 32  ;;  %p2061_p2 = scmp.lt.s32.totalorder %s2823_s4, %s2391_s8 }
 0x257   :  { %p2057_p1 = scmp.ne.s32.totalorder %s2823_s4, %s2056_s25  ;;  %p2062_p4 = scmp.lt.s32.totalorder %s2432_s6, %s2056_s25 }
 0x259   :  { %p2063_p3 = por %p2062_p4, %p2061_p2 }
 0x25b   :  { %p2064_p5 = pnand %p2063_p3, %p2057_p1 }
 0x25d   :  { %2067 = shalt.err (!%p2064_p5)  }
 0x25e   :  { %388 = dma.hbm_to_vmem [thread:$0]  %s381_s10, 32, %s2823_s4, [#allocation3 + $0x19], %s2309_s7, %s2309_s7, %s2310_s9 }
 0x25f   :  { %s1320_s12 = sshll.u32 %s390_s5, 4  ;;  %s404_s20 = sshrl.u32 %s2827_s14, 3 }
 0x260   :  { %s393_s11 = sadd.s32 %s1320_s12, %s391_s26  ;;  %s405_s1 = sand.u32 7, %s2827_s14  }
 0x261   :  { %s1321_s19 = sshll.u32 %s393_s11, 4  ;;  %s1323_s23 = sshll.u32 %s404_s20, 4 }
 0x262   :  { %s395_s13 = scalar_lea.hbm %s3220_s2, %s1321_s19 }
 0x263   :  { %s2068_s27 = scalar_lea.hbm %s395_s13, 32  ;;  %p2071_p7 = scmp.lt.u32.totalorder %s395_s13, %s3220_s2 }
 0x264   :  { %p2069_p6 = scmp.ne.s32.totalorder %s395_s13, %s2068_s27  ;;  %p2072_p8 = scmp.lt.u32.totalorder %s2415_s29, %s2068_s27 }
 0x265   :  { %p2074_p11 = scmp.lt.u32.totalorder %s2068_s27, %s395_s13 }
 0x266   :  { %p2073_p9 = por %p2072_p8, %p2071_p7 }
 0x268   :  { %p2075_p12 = por %p2074_p11, %p2073_p9 }
 0x26a   :  { %p2076_p13 = pnand %p2075_p12, %p2069_p6 }
 0x26c   :  { %2079 = shalt.err (!%p2076_p13)  }
 0x26d   :  { %s2080_s4 = scalar_lea.vmem %s400_s28, 32  ;;  %p2085_p1 = scmp.lt.s32.totalorder %s400_s28, %s2391_s8 }
 0x26e   :  { %p2081_p0 = scmp.ne.s32.totalorder %s400_s28, %s2080_s4  ;;  %p2086_p2 = scmp.lt.s32.totalorder %s2432_s6, %s2080_s4 }
 0x270   :  { %p2087_p4 = por %p2086_p2, %p2085_p1 }
 0x272   :  { %p2088_p3 = pnand %p2087_p4, %p2081_p0 }
 0x274   :  { %2091 = shalt.err (!%p2088_p3)  }
 0x275   :  { %402 = dma.hbm_to_vmem [thread:$0]  %s395_s13, 32, %s400_s28, [#allocation3 + $0x1a], %s2309_s7, %s2309_s7, %s2310_s9 }
 0x276   :  { %s407_s14 = sadd.s32 %s1323_s23, %s405_s1  ;;  %s2335_s10 = smov [#allocation2 + $0x33]  }
 0x277   :  { %s1324_s5 = sshll.u32 %s407_s14, 4  ;;  %s413_s26 = sshll.u32 %s2335_s10, 4  ;;  %s414_s26 = int_to_ptr.vmem [resolvable:$true] %s413_s26 }
 0x278   :  { %s409_s0 = scalar_lea.hbm %s3220_s2, %s1324_s5 }
 0x279   :  { %s2092_s25 = scalar_lea.hbm %s409_s0, 32  ;;  %p2095_p6 = scmp.lt.u32.totalorder %s409_s0, %s3220_s2 }
 0x27a   :  { %p2093_p5 = scmp.ne.s32.totalorder %s409_s0, %s2092_s25  ;;  %p2096_p7 = scmp.lt.u32.totalorder %s2415_s29, %s2092_s25 }
 0x27b   :  { %p2098_p9 = scmp.lt.u32.totalorder %s2092_s25, %s409_s0 }
 0x27c   :  { %p2097_p8 = por %p2096_p7, %p2095_p6 }
 0x27e   :  { %p2099_p11 = por %p2098_p9, %p2097_p8 }
 0x280   :  { %p2100_p12 = pnand %p2099_p11, %p2093_p5 }
 0x282   :  { %2103 = shalt.err (!%p2100_p12)  }
 0x283   :  { %s2104_s28 = scalar_lea.vmem %s414_s26, 32  ;;  %p2109_p0 = scmp.lt.s32.totalorder %s414_s26, %s2391_s8 }
 0x284   :  { %p2105_p13 = scmp.ne.s32.totalorder %s414_s26, %s2104_s28  ;;  %p2110_p1 = scmp.lt.s32.totalorder %s2432_s6, %s2104_s28 }
 0x286   :  { %p2111_p2 = por %p2110_p1, %p2109_p0 }
 0x288   :  { %p2112_p4 = pnand %p2111_p2, %p2105_p13 }
 0x28a   :  { %2115 = shalt.err (!%p2112_p4)  }
 0x28b   :  { %416 = dma.hbm_to_vmem [thread:$0]  %s409_s0, 32, %s414_s26, [#allocation3 + $0x1b], %s2309_s7, %s2309_s7, %s2310_s9 }
 0x28c   :  { %s2336_s2 = smov [#allocation2 + $0x34]   ;;  %s2337_s20 = smov [#allocation2 + $0x35]  }
 0x28d   :  { %s427_s29 = sshll.u32 %s2336_s2, 4  ;;  %s441_s19 = sshll.u32 %s2337_s20, 4  ;;  %s428_s29 = int_to_ptr.vmem [resolvable:$true] %s427_s29  ;;  %s442_s19 = int_to_ptr.vmem [resolvable:$true] %s441_s19 }
 0x28e   :  { %2127 = shalt.err (!%p2687_p10)  }
 0x28f   :  { %s2128_s1 = scalar_lea.vmem %s428_s29, 32  ;;  %p2133_p5 = scmp.lt.s32.totalorder %s428_s29, %s2391_s8 }
 0x290   :  { %p2129_p3 = scmp.ne.s32.totalorder %s428_s29, %s2128_s1  ;;  %p2134_p6 = scmp.lt.s32.totalorder %s2432_s6, %s2128_s1 }
 0x292   :  { %p2135_p7 = por %p2134_p6, %p2133_p5 }
 0x294   :  { %p2136_p8 = pnand %p2135_p7, %p2129_p3 }
 0x296   :  { %2139 = shalt.err (!%p2136_p8)  }
 0x297   :  { %430 = dma.hbm_to_vmem [thread:$0]  %s2677_s17, 32, %s428_s29, [#allocation3 + $0x1c], %s2309_s7, %s2309_s7, %s2310_s9 }
 0x298   :  { %2151 = shalt.err (!%p2687_p10)  }
 0x299   :  { %s2152_s30 = scalar_lea.vmem %s442_s19, 32  ;;  %p2157_p11 = scmp.lt.s32.totalorder %s442_s19, %s2391_s8 }
 0x29a   :  { %p2153_p9 = scmp.ne.s32.totalorder %s442_s19, %s2152_s30  ;;  %p2158_p12 = scmp.lt.s32.totalorder %s2432_s6, %s2152_s30 }
 0x29c   :  { %p2159_p13 = por %p2158_p12, %p2157_p11 }
 0x29e   :  { %p2160_p0 = pnand %p2159_p13, %p2153_p9 }
 0x2a0   :  { %2163 = shalt.err (!%p2160_p0)  }
 0x2a1   :  { %444 = dma.hbm_to_vmem [thread:$0]  %s2677_s17, 32, %s442_s19, [#allocation3 + $0x1d], %s2309_s7, %s2309_s7, %s2310_s9 }
 0x2a2   :  { %s2338_s16 = smov [#allocation2 + $0x36]   ;;  %s2339_s23 = smov [#allocation2 + $0x37]  }
 0x2a3   :  { %s455_s13 = sshll.u32 %s2338_s16, 4  ;;  %s469_s27 = sshll.u32 %s2339_s23, 4  ;;  %s456_s13 = int_to_ptr.vmem [resolvable:$true] %s455_s13  ;;  %s470_s27 = int_to_ptr.vmem [resolvable:$true] %s469_s27 }
 0x2a4   :  { %2175 = shalt.err (!%p2687_p10)  }
 0x2a5   :  { %s2176_s24 = scalar_lea.vmem %s456_s13, 32  ;;  %p2181_p2 = scmp.lt.s32.totalorder %s456_s13, %s2391_s8 }
 0x2a6   :  { %p2177_p1 = scmp.ne.s32.totalorder %s456_s13, %s2176_s24  ;;  %p2182_p4 = scmp.lt.s32.totalorder %s2432_s6, %s2176_s24 }
 0x2a8   :  { %p2183_p3 = por %p2182_p4, %p2181_p2 }
 0x2aa   :  { %p2184_p5 = pnand %p2183_p3, %p2177_p1 }
 0x2ac   :  { %2187 = shalt.err (!%p2184_p5)  }
 0x2ad   :  { %458 = dma.hbm_to_vmem [thread:$0]  %s2677_s17, 32, %s456_s13, [#allocation3 + $0x1e], %s2309_s7, %s2309_s7, %s2310_s9 }
 0x2ae   :  { %2199 = shalt.err (!%p2687_p10)  }
 0x2af   :  { %s2200_s22 = scalar_lea.vmem %s470_s27, 32  ;;  %p2205_p7 = scmp.lt.s32.totalorder %s470_s27, %s2391_s8 }
 0x2b0   :  { %p2201_p6 = scmp.ne.s32.totalorder %s470_s27, %s2200_s22  ;;  %p2206_p8 = scmp.lt.s32.totalorder %s2432_s6, %s2200_s22 }
 0x2b2   :  { %p2207_p9 = por %p2206_p8, %p2205_p7 }
 0x2b4   :  { %p2208_p11 = pnand %p2207_p9, %p2201_p6 }
 0x2b6   :  { %2211 = shalt.err (!%p2208_p11)  }
 0x2b7   :  { %472 = dma.hbm_to_vmem [thread:$0]  %s2677_s17, 32, %s470_s27, [#allocation3 + $0x1f], %s2309_s7, %s2309_s7, %s2310_s9 }
 0x2b8   :  { %2238 = dma.done.wait [#allocation3], 32 }
 0x2b9   :  { %2239 = vsyncadd [#allocation3], 4294967264 }
 0x2ba   :  { %2240 = dma.done.wait [#allocation3 + $0x1], 32 }
 0x2bb   :  { %2241 = vsyncadd [#allocation3 + $0x1], 4294967264 }
 0x2bc   :  { %2242 = dma.done.wait [#allocation3 + $0x2], 32 }
 0x2bd   :  { %2243 = vsyncadd [#allocation3 + $0x2], 4294967264 }
 0x2be   :  { %2244 = dma.done.wait [#allocation3 + $0x3], 32 }
 0x2bf   :  { %2245 = vsyncadd [#allocation3 + $0x3], 4294967264 }
 0x2c0   :  { %2246 = dma.done.wait [#allocation3 + $0x4], 32 }
 0x2c1   :  { %2247 = vsyncadd [#allocation3 + $0x4], 4294967264 }
 0x2c2   :  { %2248 = dma.done.wait [#allocation3 + $0x5], 32 }
 0x2c3   :  { %2249 = vsyncadd [#allocation3 + $0x5], 4294967264 }
 0x2c4   :  { %2250 = dma.done.wait [#allocation3 + $0x6], 32 }
 0x2c5   :  { %2251 = vsyncadd [#allocation3 + $0x6], 4294967264 }
 0x2c6   :  { %2252 = dma.done.wait [#allocation3 + $0x7], 32 }
 0x2c7   :  { %2253 = vsyncadd [#allocation3 + $0x7], 4294967264 }
 0x2c8   :  { %2254 = dma.done.wait [#allocation3 + $0x8], 32 }
 0x2c9   :  { %2255 = vsyncadd [#allocation3 + $0x8], 4294967264 }
 0x2ca   :  { %2256 = dma.done.wait [#allocation3 + $0x9], 32 }
 0x2cb   :  { %2257 = vsyncadd [#allocation3 + $0x9], 4294967264 }
 0x2cc   :  { %2258 = dma.done.wait [#allocation3 + $0xa], 32 }
 0x2cd   :  { %2259 = vsyncadd [#allocation3 + $0xa], 4294967264 }
 0x2ce   :  { %2260 = dma.done.wait [#allocation3 + $0xb], 32 }
 0x2cf   :  { %2261 = vsyncadd [#allocation3 + $0xb], 4294967264 }
 0x2d0   :  { %2262 = dma.done.wait [#allocation3 + $0xc], 32 }
 0x2d1   :  { %2263 = vsyncadd [#allocation3 + $0xc], 4294967264 }
 0x2d2   :  { %2264 = dma.done.wait [#allocation3 + $0xd], 32 }
 0x2d3   :  { %2265 = vsyncadd [#allocation3 + $0xd], 4294967264 }
 0x2d4   :  { %2266 = dma.done.wait [#allocation3 + $0xe], 32 }
 0x2d5   :  { %2267 = vsyncadd [#allocation3 + $0xe], 4294967264 }
 0x2d6   :  { %2268 = dma.done.wait [#allocation3 + $0xf], 32 }
 0x2d7   :  { %2269 = vsyncadd [#allocation3 + $0xf], 4294967264 }
 0x2d8   :  { %2270 = dma.done.wait [#allocation3 + $0x10], 32 }
 0x2d9   :  { %2271 = vsyncadd [#allocation3 + $0x10], 4294967264 }
 0x2da   :  { %2272 = dma.done.wait [#allocation3 + $0x11], 32 }
 0x2db   :  { %2273 = vsyncadd [#allocation3 + $0x11], 4294967264 }
 0x2dc   :  { %2274 = dma.done.wait [#allocation3 + $0x12], 32 }
 0x2dd   :  { %2275 = vsyncadd [#allocation3 + $0x12], 4294967264 }
 0x2de   :  { %2276 = dma.done.wait [#allocation3 + $0x13], 32 }
 0x2df   :  { %2277 = vsyncadd [#allocation3 + $0x13], 4294967264 }
 0x2e0   :  { %2278 = dma.done.wait [#allocation3 + $0x14], 32 }
 0x2e1   :  { %2279 = vsyncadd [#allocation3 + $0x14], 4294967264 }
 0x2e2   :  { %2280 = dma.done.wait [#allocation3 + $0x15], 32 }
 0x2e3   :  { %2281 = vsyncadd [#allocation3 + $0x15], 4294967264 }
 0x2e4   :  { %2282 = dma.done.wait [#allocation3 + $0x16], 32 }
 0x2e5   :  { %2283 = vsyncadd [#allocation3 + $0x16], 4294967264 }
 0x2e6   :  { %2284 = dma.done.wait [#allocation3 + $0x17], 32 }
 0x2e7   :  { %2285 = vsyncadd [#allocation3 + $0x17], 4294967264 }
 0x2e8   :  { %2286 = dma.done.wait [#allocation3 + $0x18], 32 }
 0x2e9   :  { %2287 = vsyncadd [#allocation3 + $0x18], 4294967264 }
 0x2ea   :  { %2288 = dma.done.wait [#allocation3 + $0x19], 32 }
 0x2eb   :  { %2289 = vsyncadd [#allocation3 + $0x19], 4294967264 }
 0x2ec   :  { %2290 = dma.done.wait [#allocation3 + $0x1a], 32 }
 0x2ed   :  { %2291 = vsyncadd [#allocation3 + $0x1a], 4294967264 }
 0x2ee   :  { %2292 = dma.done.wait [#allocation3 + $0x1b], 32 }
 0x2ef   :  { %2293 = vsyncadd [#allocation3 + $0x1b], 4294967264 }
 0x2f0   :  { %2294 = dma.done.wait [#allocation3 + $0x1c], 32 }
 0x2f1   :  { %2295 = vsyncadd [#allocation3 + $0x1c], 4294967264 }
 0x2f2   :  { %2296 = dma.done.wait [#allocation3 + $0x1d], 32 }
 0x2f3   :  { %2297 = vsyncadd [#allocation3 + $0x1d], 4294967264 }
 0x2f4   :  { %2298 = dma.done.wait [#allocation3 + $0x1e], 32 }
 0x2f5   :  { %2299 = vsyncadd [#allocation3 + $0x1e], 4294967264 }
 0x2f6   :  { %2300 = dma.done.wait [#allocation3 + $0x1f], 32 }
 0x2f7   :  { %2301 = vsyncadd [#allocation3 + $0x1f], 4294967264  ;;  %v2922_v0 = vld [vmem:[#allocation2 + $0x28] sm:$0xff]  ;;  %v2924_v1 = vld [vmem:[#allocation2 + $0x20] sm:$0xff]  ;;  %s2340_s8 = smov 6   ;;  %s2341_s6 = smov 5   ;;  %v562_v8 = vlaneseq }
 0x2f8   :  { %558 = vrot.lane.b32.xlu1 %v2922_v0, %s2340_s8  ;;  %550 = vrot.lane.b32.xlu0 %v2924_v1, %s2340_s8  ;;  %v2928_v2 = vld [vmem:[#allocation2 + $0x38] sm:$0xff]  ;;  %v2930_v3 = vld [vmem:[#allocation2 + $0x30] sm:$0xff]  ;;  %v2940_v5 = vld [vmem:[#allocation2] sm:$0xff]  ;;  %s2342_s7 = smov 4   ;;  %s2343_s17 = smov 3   ;;  %vm870_vm13 = vcmask 1041409  }
 0x2f9   :  { %v2938_v4 = vld [vmem:[#allocation2 + $0x10] sm:$0xff]  ;;  %v2944_v6 = vld [vmem:[#allocation2 + $0x18] sm:$0xff]  ;;  %v2946_v7 = vld [vmem:[#allocation2 + $0x8] sm:$0xff]  ;;  %s2344_s18 = smov 2   ;;  %v2994_v9 = vand.u32 127, %v562_v8  ;;  %v2997_v12 = vshrl.u32 %v562_v8, 7 }
 0x2fa   :  { %vm872_vm14 = vcmask 1043459   ;;  %vm874_vm15 = vcmask 1045509  }
 0x2fb   :  { %vm564_vm0 = vcmp.lt.s32.totalorder %v2994_v9, 6  ;;  %vm583_vm1 = vcmp.lt.s32.totalorder %v2997_v12, 7  ;;  %vm604_vm2 = vcmp.lt.s32.totalorder %v2994_v9, 5  ;;  %vm621_vm3 = vcmp.lt.s32.totalorder %v2997_v12, 6 }
 0x2fc   :  { %560 = vrot.lane.b32.xlu1 %v2928_v2, %s2340_s8  ;;  %552 = vrot.lane.b32.xlu0 %v2930_v3, %s2340_s8  ;;  %vm646_vm4 = vcmp.lt.s32.totalorder %v2994_v9, 4  ;;  %vm663_vm5 = vcmp.lt.s32.totalorder %v2997_v12, 5  ;;  %vm688_vm6 = vcmp.lt.s32.totalorder %v2994_v9, 3  ;;  %vm705_vm7 = vcmp.lt.s32.totalorder %v2997_v12, 4 }
 0x2fd   :  { %vm806_vm8 = vcmp.lt.s32.totalorder %v2997_v12, 1  ;;  %vm730_vm9 = vcmp.lt.s32.totalorder %v2994_v9, 2  ;;  %vm747_vm10 = vcmp.lt.s32.totalorder %v2997_v12, 3  ;;  %vm772_vm11 = vcmp.lt.s32.totalorder %v2994_v9, 1 }
 0x2fe   :  { %vm789_vm12 = vcmp.lt.s32.totalorder %v2997_v12, 2 }
 0x300   :  { %594 = vrot.lane.b32.xlu1 %v2930_v3, %s2341_s6  ;;  %592 = vrot.lane.b32.xlu0 %v2924_v1, %s2341_s6 }
 0x304   :  { %602 = vrot.lane.b32.xlu1 %v2928_v2, %s2341_s6  ;;  %600 = vrot.lane.b32.xlu0 %v2922_v0, %s2341_s6 }
 0x308   :  { %548 = vrot.lane.b32.xlu1 %v2938_v4, %s2340_s8  ;;  %546 = vrot.lane.b32.xlu0 %v2940_v5, %s2340_s8 }
 0x30c   :  { %556 = vrot.lane.b32.xlu1 %v2944_v6, %s2340_s8  ;;  %554 = vrot.lane.b32.xlu0 %v2946_v7, %s2340_s8 }
 0x310   :  { %590 = vrot.lane.b32.xlu1 %v2938_v4, %s2341_s6  ;;  %588 = vrot.lane.b32.xlu0 %v2940_v5, %s2341_s6 }
 0x314   :  { %598 = vrot.lane.b32.xlu1 %v2944_v6, %s2341_s6  ;;  %596 = vrot.lane.b32.xlu0 %v2946_v7, %s2341_s6 }
 0x318   :  { %636 = vrot.lane.b32.xlu1 %v2930_v3, %s2342_s7  ;;  %634 = vrot.lane.b32.xlu0 %v2924_v1, %s2342_s7 }
 0x31c   :  { %644 = vrot.lane.b32.xlu1 %v2928_v2, %s2342_s7  ;;  %642 = vrot.lane.b32.xlu0 %v2922_v0, %s2342_s7 }
 0x320   :  { %632 = vrot.lane.b32.xlu1 %v2938_v4, %s2342_s7  ;;  %630 = vrot.lane.b32.xlu0 %v2940_v5, %s2342_s7 }
 0x324   :  { %640 = vrot.lane.b32.xlu1 %v2944_v6, %s2342_s7  ;;  %638 = vrot.lane.b32.xlu0 %v2946_v7, %s2342_s7 }
 0x328   :  { %678 = vrot.lane.b32.xlu1 %v2930_v3, %s2343_s17  ;;  %676 = vrot.lane.b32.xlu0 %v2924_v1, %s2343_s17 }
 0x32c   :  { %686 = vrot.lane.b32.xlu1 %v2928_v2, %s2343_s17  ;;  %684 = vrot.lane.b32.xlu0 %v2922_v0, %s2343_s17 }
 0x330   :  { %674 = vrot.lane.b32.xlu1 %v2938_v4, %s2343_s17  ;;  %672 = vrot.lane.b32.xlu0 %v2940_v5, %s2343_s17 }
 0x334   :  { %682 = vrot.lane.b32.xlu1 %v2944_v6, %s2343_s17  ;;  %680 = vrot.lane.b32.xlu0 %v2946_v7, %s2343_s17 }
 0x338   :  { %720 = vrot.lane.b32.xlu1 %v2930_v3, %s2344_s18  ;;  %718 = vrot.lane.b32.xlu0 %v2924_v1, %s2344_s18 }
 0x33c   :  { %728 = vrot.lane.b32.xlu1 %v2928_v2, %s2344_s18  ;;  %726 = vrot.lane.b32.xlu0 %v2922_v0, %s2344_s18 }
 0x340   :  { %716 = vrot.lane.b32.xlu1 %v2938_v4, %s2344_s18  ;;  %714 = vrot.lane.b32.xlu0 %v2940_v5, %s2344_s18 }
 0x344   :  { %724 = vrot.lane.b32.xlu1 %v2944_v6, %s2344_s18  ;;  %722 = vrot.lane.b32.xlu0 %v2946_v7, %s2344_s18 }
 0x348   :  { %762 = vrot.lane.b32.xlu1 %v2930_v3, %s2310_s9  ;;  %760 = vrot.lane.b32.xlu0 %v2924_v1, %s2310_s9 }
 0x34c   :  { %770 = vrot.lane.b32.xlu1 %v2928_v2, %s2310_s9  ;;  %768 = vrot.lane.b32.xlu0 %v2922_v0, %s2310_s9 }
 0x350   :  { %758 = vrot.lane.b32.xlu1 %v2938_v4, %s2310_s9  ;;  %756 = vrot.lane.b32.xlu0 %v2940_v5, %s2310_s9 }
 0x354   :  { %766 = vrot.lane.b32.xlu1 %v2944_v6, %s2310_s9  ;;  %764 = vrot.lane.b32.xlu0 %v2946_v7, %s2310_s9  ;;  %s2346_s9 = smov [#allocation9]  }
 0x355   :  { %s886_s4 = sshll.u32 %s2346_s9, 4  ;;  %s887_s4 = int_to_ptr.vmem [resolvable:$true] %s886_s4 }
 0x356   :  { %s2212_s14 = scalar_lea.vmem %s887_s4, 64  ;;  %p2217_p12 = scmp.lt.s32.totalorder %s887_s4, %s887_s4 }
 0x357   :  { %p2213_p10 = scmp.ne.s32.totalorder %s887_s4, %s2212_s14  ;;  %p2218_p13 = scmp.lt.s32.totalorder %s2212_s14, %s2212_s14 }
 0x359   :  { %p2219_p0 = por %p2218_p13, %p2217_p12 }
 0x35b   :  { %p2220_p1 = pnand %p2219_p0, %p2213_p10 }
 0x36a   :  { %v559_v10 = vpop.permute.xlu1 %558  ;;  %v551_v11 = vpop.permute.xlu0 %550 }
 0x36b   :  { %v567_v13 = vsel %vm564_vm0, %v551_v11, %v559_v10  ;;  %v571_v14 = vsel %vm564_vm0, %v559_v10, %v551_v11 }
 0x36c   :  { %v577_v19 = vrot.slane %v571_v14, 1  ;;  %v578_v20 = vrot.slane %v567_v13, 1 }
 0x36e   :  { %v561_v15 = vpop.permute.xlu1 %560  ;;  %v553_v16 = vpop.permute.xlu0 %552 }
 0x36f   :  { %v568_v17 = vsel %vm564_vm0, %v553_v16, %v561_v15  ;;  %v572_v18 = vsel %vm564_vm0, %v561_v15, %v553_v16 }
 0x370   :  { %v579_v21 = vrot.slane %v572_v18, 1  ;;  %v580_v22 = vrot.slane %v568_v17, 1 }
 0x372   :  { %v584_v23 = vsel %vm583_vm1, %v577_v19, %v579_v21  ;;  %v585_v24 = vsel %vm583_vm1, %v578_v20, %v580_v22  ;;  %v595_v25 = vpop.permute.xlu1 %594  ;;  %v593_v26 = vpop.permute.xlu0 %592 }
 0x376   :  { %v603_v27 = vpop.permute.xlu1 %602  ;;  %v601_v28 = vpop.permute.xlu0 %600 }
 0x377   :  { %v608_v29 = vsel %vm604_vm2, %v595_v25, %v603_v27  ;;  %v612_v30 = vsel %vm604_vm2, %v603_v27, %v595_v25  ;;  %v607_v31 = vsel %vm604_vm2, %v593_v26, %v601_v28  ;;  %v611_v32 = vsel %vm604_vm2, %v601_v28, %v593_v26 }
 0x378   :  { %v619_v33 = vrot.slane %v612_v30, 2  ;;  %v620_v34 = vrot.slane %v608_v29, 2  ;;  %v617_v35 = vrot.slane %v611_v32, 2  ;;  %v618_v36 = vrot.slane %v607_v31, 2 }
 0x37a   :  { %v622_v37 = vsel %vm621_vm3, %v617_v35, %v619_v33  ;;  %v623_v38 = vsel %vm621_vm3, %v618_v36, %v620_v34  ;;  %v549_v39 = vpop.permute.xlu1 %548  ;;  %v547_v40 = vpop.permute.xlu0 %546  ;;  %v803_v33 = vrot.slane %v2922_v0, 7  ;;  %v804_v34 = vrot.slane %v2930_v3, 7 }
 0x37b   :  { %v3026_v41 = vmul.f32 %v622_v37, %v584_v23  ;;  %v3028_v42 = vmul.f32 %v623_v38, %v585_v24  ;;  %v802_v23 = vrot.slane %v2924_v1, 7  ;;  %v805_v35 = vrot.slane %v2928_v2, 7 }
 0x37e   :  { %v557_v43 = vpop.permute.xlu1 %556  ;;  %v555_v44 = vpop.permute.xlu0 %554 }
 0x37f   :  { %v566_v45 = vsel %vm564_vm0, %v549_v39, %v557_v43  ;;  %v570_v46 = vsel %vm564_vm0, %v557_v43, %v549_v39  ;;  %v565_v47 = vsel %vm564_vm0, %v547_v40, %v555_v44  ;;  %v569_v48 = vsel %vm564_vm0, %v555_v44, %v547_v40 }
 0x380   :  { %v575_v49 = vrot.slane %v570_v46, 1  ;;  %v576_v50 = vrot.slane %v566_v45, 1  ;;  %v573_v51 = vrot.slane %v569_v48, 1  ;;  %v574_v52 = vrot.slane %v565_v47, 1 }
 0x381   :  { %vm876_vm0 = vcmask 1047559  }
 0x382   :  { %v3040_v53 = vsel %vm583_vm1, %v573_v51, %v575_v49  ;;  %v3044_v54 = vsel %vm583_vm1, %v574_v52, %v576_v50  ;;  %v591_v55 = vpop.permute.xlu1 %590  ;;  %v589_v56 = vpop.permute.xlu0 %588  ;;  %v3091_v49 = vsel %vm806_vm8, %v802_v23, %v804_v34  ;;  %v3095_v50 = vsel %vm806_vm8, %v803_v33, %v805_v35 }
 0x386   :  { %v599_v57 = vpop.permute.xlu1 %598  ;;  %v597_v58 = vpop.permute.xlu0 %596 }
 0x387   :  { %v606_v24 = vsel %vm604_vm2, %v591_v55, %v599_v57  ;;  %v610_v25 = vsel %vm604_vm2, %v599_v57, %v591_v55  ;;  %v605_v26 = vsel %vm604_vm2, %v589_v56, %v597_v58  ;;  %v609_v27 = vsel %vm604_vm2, %v597_v58, %v589_v56 }
 0x388   :  { %v615_v36 = vrot.slane %v610_v25, 2  ;;  %v616_v37 = vrot.slane %v606_v24, 2  ;;  %v613_v38 = vrot.slane %v609_v27, 2  ;;  %v614_v39 = vrot.slane %v605_v26, 2 }
 0x38a   :  { %v637_v59 = vpop.permute.xlu1 %636  ;;  %v635_v60 = vpop.permute.xlu0 %634 }
 0x38e   :  { %v645_v61 = vpop.permute.xlu1 %644  ;;  %v643_v62 = vpop.permute.xlu0 %642 }
 0x38f   :  { %v650_v28 = vsel %vm646_vm4, %v637_v59, %v645_v61  ;;  %v654_v29 = vsel %vm646_vm4, %v645_v61, %v637_v59  ;;  %v649_v1 = vsel %vm646_vm4, %v635_v60, %v643_v62  ;;  %v653_v30 = vsel %vm646_vm4, %v643_v62, %v635_v60 }
 0x390   :  { %v661_v40 = vrot.slane %v654_v29, 3  ;;  %v662_v43 = vrot.slane %v650_v28, 3  ;;  %v659_v44 = vrot.slane %v653_v30, 3  ;;  %v660_v45 = vrot.slane %v649_v1, 3 }
 0x391   :  { %v624_v61 = vsel %vm621_vm3, %v613_v38, %v615_v36  ;;  %v625_v62 = vsel %vm621_vm3, %v614_v39, %v616_v37 }
 0x392   :  { %v633_v63 = vpop.permute.xlu1 %632  ;;  %v631_v8 = vpop.permute.xlu0 %630  ;;  %v627_v37 = vmul.f32 %v625_v62, %v3044_v54 }
 0x396   :  { %v641_v10 = vpop.permute.xlu1 %640  ;;  %v639_v11 = vpop.permute.xlu0 %638 }
 0x397   :  { %v648_v51 = vsel %vm646_vm4, %v633_v63, %v641_v10  ;;  %v652_v52 = vsel %vm646_vm4, %v641_v10, %v633_v63  ;;  %v647_v55 = vsel %vm646_vm4, %v631_v8, %v639_v11  ;;  %v651_v56 = vsel %vm646_vm4, %v639_v11, %v631_v8 }
 0x398   :  { %v664_v63 = vsel %vm663_vm5, %v659_v44, %v661_v40  ;;  %v665_v10 = vsel %vm663_vm5, %v660_v45, %v662_v43  ;;  %v657_v23 = vrot.slane %v652_v52, 3  ;;  %v658_v24 = vrot.slane %v648_v51, 3 }
 0x399   :  { %v655_v25 = vrot.slane %v651_v56, 3  ;;  %v656_v26 = vrot.slane %v647_v55, 3  ;;  %v671_v33 = vmul.f32 %v665_v10, %v3028_v42 }
 0x39a   :  { %v679_v13 = vpop.permute.xlu1 %678  ;;  %v677_v14 = vpop.permute.xlu0 %676 }
 0x39b   :  { %v667_v42 = vsel %vm663_vm5, %v656_v26, %v658_v24 }
 0x39c   :  { %v669_v26 = vmul.f32 %v667_v42, %v627_v37 }
 0x39e   :  { %v687_v15 = vpop.permute.xlu1 %686  ;;  %v685_v16 = vpop.permute.xlu0 %684 }
 0x39f   :  { %v692_v46 = vsel %vm688_vm6, %v679_v13, %v687_v15  ;;  %v696_v0 = vsel %vm688_vm6, %v687_v15, %v679_v13  ;;  %v691_v3 = vsel %vm688_vm6, %v677_v14, %v685_v16  ;;  %v695_v2 = vsel %vm688_vm6, %v685_v16, %v677_v14 }
 0x3a0   :  { %v703_v57 = vrot.slane %v696_v0, 4  ;;  %v704_v58 = vrot.slane %v692_v46, 4  ;;  %v701_v59 = vrot.slane %v695_v2, 4  ;;  %v702_v60 = vrot.slane %v691_v3, 4 }
 0x3a2   :  { %v3046_v17 = vpop.permute.xlu1 %674  ;;  %v3048_v18 = vpop.permute.xlu0 %672  ;;  %v706_v27 = vsel %vm705_vm7, %v701_v59, %v703_v57 }
 0x3a6   :  { %v3050_v19 = vpop.permute.xlu1 %682  ;;  %v3052_v20 = vpop.permute.xlu0 %680 }
 0x3a7   :  { %v690_v28 = vsel %vm688_vm6, %v3046_v17, %v3050_v19  ;;  %v689_v34 = vsel %vm688_vm6, %v3048_v18, %v3052_v20  ;;  %v693_v35 = vsel %vm688_vm6, %v3052_v20, %v3048_v18 }
 0x3a8   :  { %v700_v43 = vrot.slane %v690_v28, 4  ;;  %v697_v44 = vrot.slane %v693_v35, 4  ;;  %v698_v45 = vrot.slane %v689_v34, 4  ;;  %v799_v28 = vrot.slane %v2946_v7, 7 }
 0x3aa   :  { %v721_v21 = vpop.permute.xlu1 %720  ;;  %v719_v22 = vpop.permute.xlu0 %718 }
 0x3ae   :  { %v729_v31 = vpop.permute.xlu1 %728  ;;  %v727_v32 = vpop.permute.xlu0 %726 }
 0x3af   :  { %v734_v8 = vsel %vm730_vm9, %v721_v21, %v729_v31  ;;  %v738_v11 = vsel %vm730_vm9, %v729_v31, %v721_v21  ;;  %v733_v13 = vsel %vm730_vm9, %v719_v22, %v727_v32  ;;  %v737_v14 = vsel %vm730_vm9, %v727_v32, %v719_v22 }
 0x3b0   :  { %v707_v21 = vsel %vm705_vm7, %v702_v60, %v704_v58  ;;  %v694_v22 = vsel %vm688_vm6, %v3050_v19, %v3046_v17  ;;  %v745_v29 = vrot.slane %v738_v11, 5  ;;  %v746_v1 = vrot.slane %v734_v8, 5 }
 0x3b1   :  { %v743_v30 = vrot.slane %v737_v14, 5  ;;  %v744_v31 = vrot.slane %v733_v13, 5  ;;  %v670_v32 = vmul.f32 %v664_v63, %v3026_v41  ;;  %v626_v19 = vmul.f32 %v624_v61, %v3040_v53 }
 0x3b2   :  { %v717_v47 = vpop.permute.xlu1 %716  ;;  %v715_v48 = vpop.permute.xlu0 %714  ;;  %v666_v41 = vsel %vm663_vm5, %v655_v25, %v657_v23  ;;  %v713_v39 = vmul.f32 %v707_v21, %v671_v33  ;;  %v699_v40 = vrot.slane %v694_v22, 4  ;;  %v816_v21 = vld [vmem:[#allocation6 + $0x8] sm:$0xff]  ;;  %v800_v22 = vrot.slane %v2938_v4, 7 }
 0x3b3   :  { %v712_v38 = vmul.f32 %v706_v27, %v670_v32  ;;  %v748_v18 = vsel %vm747_vm10, %v743_v30, %v745_v29  ;;  %v749_v53 = vsel %vm747_vm10, %v744_v31, %v746_v1  ;;  %v668_v25 = vmul.f32 %v666_v41, %v626_v19  ;;  %v815_v27 = vld [vmem:[#allocation6] sm:$0xff] }
 0x3b4   :  { %v801_v30 = vrot.slane %v2944_v6, 7  ;;  %v798_v31 = vrot.slane %v2940_v5, 7 }
 0x3b5   :  { %v754_v60 = vmul.f32 %v748_v18, %v712_v38 }
 0x3b6   :  { %v725_v15 = vpop.permute.xlu1 %724  ;;  %v723_v16 = vpop.permute.xlu0 %722 }
 0x3b7   :  { %v732_v54 = vsel %vm730_vm9, %v717_v47, %v725_v15  ;;  %v736_v20 = vsel %vm730_vm9, %v725_v15, %v717_v47  ;;  %v731_v46 = vsel %vm730_vm9, %v715_v48, %v723_v16  ;;  %v735_v0 = vsel %vm730_vm9, %v723_v16, %v715_v48 }
 0x3b8   :  { %v755_v48 = vmul.f32 %v749_v53, %v713_v39  ;;  %v741_v61 = vrot.slane %v736_v20, 5  ;;  %v742_v62 = vrot.slane %v732_v54, 5  ;;  %v739_v63 = vrot.slane %v735_v0, 5 }
 0x3b9   :  { %v740_v10 = vrot.slane %v731_v46, 5  ;;  %v708_v15 = vsel %vm705_vm7, %v697_v44, %v699_v40  ;;  %v709_v16 = vsel %vm705_vm7, %v698_v45, %v700_v43  ;;  %v810_v44 = vsel %vm806_vm8, %v799_v28, %v801_v30 }
 0x3ba   :  { %v763_v36 = vpop.permute.xlu1 %762  ;;  %v761_v17 = vpop.permute.xlu0 %760  ;;  %v710_v32 = vmul.f32 %v708_v15, %v668_v25  ;;  %v711_v33 = vmul.f32 %v709_v16, %v669_v26  ;;  %v750_v34 = vsel %vm747_vm10, %v739_v63, %v741_v61  ;;  %v809_v45 = vsel %vm806_vm8, %v798_v31, %v800_v22 }
 0x3bb   :  { %v751_v35 = vsel %vm747_vm10, %v740_v10, %v742_v62 }
 0x3bc   :  { %v752_v40 = vmul.f32 %v750_v34, %v710_v32  ;;  %v753_v43 = vmul.f32 %v751_v35, %v711_v33 }
 0x3be   :  { %v771_v3 = vpop.permute.xlu1 %770  ;;  %v769_v2 = vpop.permute.xlu0 %768 }
 0x3bf   :  { %v776_v51 = vsel %vm772_vm11, %v763_v36, %v771_v3  ;;  %v780_v52 = vsel %vm772_vm11, %v771_v3, %v763_v36  ;;  %v775_v55 = vsel %vm772_vm11, %v761_v17, %v769_v2  ;;  %v779_v47 = vsel %vm772_vm11, %v769_v2, %v761_v17 }
 0x3c0   :  { %v787_v56 = vrot.slane %v780_v52, 6  ;;  %v788_v57 = vrot.slane %v776_v51, 6  ;;  %v785_v58 = vrot.slane %v779_v47, 6  ;;  %v786_v59 = vrot.slane %v775_v55, 6 }
 0x3c2   :  { %v790_v8 = vsel %vm789_vm12, %v785_v58, %v787_v56  ;;  %v791_v11 = vsel %vm789_vm12, %v786_v59, %v788_v57  ;;  %v759_v13 = vpop.permute.xlu1 %758  ;;  %v757_v14 = vpop.permute.xlu0 %756  ;;  %v2345_v57 = vmov 1983009808  }
 0x3c3   :  { %v796_v23 = vmul.f32 %v790_v8, %v754_v60  ;;  %v797_v24 = vmul.f32 %v791_v11, %v755_v48  ;;  %v851_v58 = vunpack.c.l.s4 %v2345_v57 }
 0x3c5   :  { %v813_v29 = vmul.f32 %v3091_v49, %v796_v23  ;;  %v814_v1 = vmul.f32 %v3095_v50, %v797_v24  ;;  %v852_v11 = vunpack.c.0.s8 %v851_v58 }
 0x3c6   :  { %v767_v36 = vpop.permute.xlu1 %766  ;;  %v765_v7 = vpop.permute.xlu0 %764 }
 0x3c7   :  { %v819_v17 = vmul.f32 %v815_v27, %v813_v29  ;;  %v820_v4 = vmul.f32 %v816_v21, %v814_v1  ;;  %v774_v49 = vsel %vm772_vm11, %v759_v13, %v767_v36  ;;  %v778_v6 = vsel %vm772_vm11, %v767_v36, %v759_v13 }
 0x3c8   :  { %v783_v50 = vrot.slane %v778_v6, 6  ;;  %v784_v5 = vrot.slane %v774_v49, 6  ;;  %v773_v19 = vsel %vm772_vm11, %v757_v14, %v765_v7  ;;  %v777_v37 = vsel %vm772_vm11, %v765_v7, %v757_v14 }
 0x3c9   :  { %v833_v41 = vrot.slane %v819_v17, 4  ;;  %v839_v42 = vrot.slane %v820_v4, 4  ;;  %v781_v38 = vrot.slane %v777_v37, 6  ;;  %v782_v39 = vrot.slane %v773_v19, 6 }
 0x3ca   :  { %v855_v24 = vsub.s32 %v852_v11, %v2997_v12 }
 0x3cb   :  { %v834_v18 = vadd.f32 %v833_v41, %v819_v17  ;;  %v840_v53 = vadd.f32 %v839_v42, %v820_v4  ;;  %v792_v54 = vsel %vm789_vm12, %v781_v38, %v783_v50  ;;  %v793_v9 = vsel %vm789_vm12, %v782_v39, %v784_v5 }
 0x3cc   :  { %v794_v20 = vmul.f32 %v792_v54, %v752_v40  ;;  %v795_v46 = vmul.f32 %v793_v9, %v753_v43 }
 0x3cd   :  { %v835_v0 = vrot.slane %v834_v18, 2  ;;  %v841_v3 = vrot.slane %v840_v53, 2 }
 0x3ce   :  { %v811_v2 = vmul.f32 %v809_v45, %v794_v20  ;;  %v812_v51 = vmul.f32 %v810_v44, %v795_v46 }
 0x3cf   :  { %v836_v52 = vadd.f32 %v835_v0, %v834_v18  ;;  %v842_v55 = vadd.f32 %v841_v3, %v840_v53 }
 0x3d0   :  { %v817_v47 = vmul.f32 %v815_v27, %v811_v2  ;;  %v818_v56 = vmul.f32 %v816_v21, %v812_v51 }
 0x3d1   :  { %v837_v59 = vrot.slane %v836_v52, 1  ;;  %v843_v60 = vrot.slane %v842_v55, 1 }
 0x3d2   :  { %v821_v48 = vrot.slane %v817_v47, 4  ;;  %v827_v61 = vrot.slane %v818_v56, 4 }
 0x3d3   :  { %v838_v62 = vadd.f32 %v837_v59, %v836_v52  ;;  %v844_v63 = vadd.f32 %v843_v60, %v842_v55 }
 0x3d4   :  { %v822_v10 = vadd.f32 %v821_v48, %v817_v47  ;;  %v828_v8 = vadd.f32 %v827_v61, %v818_v56 }
 0x3d5   :  { %v857_v13 = vcombine.low %v838_v62, %v844_v63 }
 0x3d6   :  { %v823_v14 = vrot.slane %v822_v10, 2  ;;  %v829_v15 = vrot.slane %v828_v8, 2 }
 0x3d7   :  { %v864_v28 = vrot.slane %v857_v13, %v855_v24 }
 0x3d8   :  { %v824_v16 = vadd.f32 %v823_v14, %v822_v10  ;;  %v830_v23 = vadd.f32 %v829_v15, %v828_v8 }
 0x3d9   :  { %v869_v1 = vrot.slane %v864_v28, 7 }
 0x3da   :  { %v825_v25 = vrot.slane %v824_v16, 1  ;;  %v831_v26 = vrot.slane %v830_v23, 1 }
 0x3dc   :  { %v826_v27 = vadd.f32 %v825_v25, %v824_v16  ;;  %v832_v21 = vadd.f32 %v831_v26, %v830_v23 }
 0x3de   :  { %v849_v22 = vcombine.low %v826_v27, %v832_v21 }
 0x3e0   :  { %v856_v29 = vrot.slane %v849_v22, %v855_v24 }
 0x3e2   :  { %v871_v30 = vsel %vm870_vm13, %v869_v1, %v856_v29 }
 0x3e3   :  { %v873_v31 = vsel %vm872_vm14, %v869_v1, %v871_v30 }
 0x3e4   :  { %v875_v32 = vsel %vm874_vm15, %v869_v1, %v873_v31 }
 0x3e5   :  { %v877_v33 = vsel %vm876_vm0, %v869_v1, %v875_v32 }
 0x3e6   :  { %879 = vst [vmem:[#allocation9] sm:$0xf] %v877_v33 }
 0x3e7   :  { %2223 = shalt.err (!%p2220_p1)
}
 0x3e8   :  { %s2224_s26 = scalar_lea.hbm %s3221_s3, 64 }
 0x3e9   :  { %p2225_p2 = scmp.ne.s32.totalorder %s3221_s3, %s2224_s26  ;;  %p2228_p4 = scmp.lt.u32.totalorder %s2224_s26, %s3221_s3 }
 0x3eb   :  { %p2230_p3 = pnand %p2228_p4, %p2225_p2 }
 0x3ed   :  { %2233 = shalt.err (!%p2230_p3)
}
 0x3ee   :  { %889 = dma.vmem_to_hbm [thread:$0]  %s887_s4, 64, %s3221_s3, [#allocation8]  }
 0x3ef   :  { %2302 = dma.done.wait [#allocation8], 64  }
 0x3f0   :  { %2303 = vsyncadd [#allocation8], 4294967232 }
 0x3f1   :  { %893 = vsyncpa [#allocation7], 1 }
 0x3f2   :  { %894 = vsyncpa [#allocation8], 1 }
 0x3f3   :  { %895 = vsyncmov [#allocation3] }
 0x3f6   :  { %s896_s28 = vpop.sfrf %895 }
 0x3f7   :  { %p1337_p5 = scmp.ne.s32.totalorder %s896_s28, 0 }
 0x3f9   :  { %900 = shalt.err (%p1337_p5)  }
 0x3fa   :  { %902 = vsyncmov [#allocation3 + $0x1] }
 0x3fd   :  { %s903_s2 = vpop.sfrf %902 }
 0x3fe   :  { %p1338_p6 = scmp.ne.s32.totalorder %s903_s2, 0 }
 0x400   :  { %907 = shalt.err (%p1338_p6)  }
 0x401   :  { %909 = vsyncmov [#allocation3 + $0x2] }
 0x404   :  { %s910_s29 = vpop.sfrf %909 }
 0x405   :  { %p1339_p7 = scmp.ne.s32.totalorder %s910_s29, 0 }
 0x407   :  { %914 = shalt.err (%p1339_p7)  }
 0x408   :  { %916 = vsyncmov [#allocation3 + $0x3] }
 0x40b   :  { %s917_s20 = vpop.sfrf %916 }
 0x40c   :  { %p1340_p8 = scmp.ne.s32.totalorder %s917_s20, 0 }
 0x40e   :  { %921 = shalt.err (%p1340_p8)  }
 0x40f   :  { %923 = vsyncmov [#allocation3 + $0x4] }
 0x412   :  { %s924_s3 = vpop.sfrf %923 }
 0x413   :  { %p1341_p9 = scmp.ne.s32.totalorder %s924_s3, 0 }
 0x415   :  { %928 = shalt.err (%p1341_p9)  }
 0x416   :  { %930 = vsyncmov [#allocation3 + $0x5] }
 0x419   :  { %s931_s19 = vpop.sfrf %930 }
 0x41a   :  { %p1342_p11 = scmp.ne.s32.totalorder %s931_s19, 0 }
 0x41c   :  { %935 = shalt.err (%p1342_p11)  }
 0x41d   :  { %937 = vsyncmov [#allocation3 + $0x6] }
 0x420   :  { %s938_s1 = vpop.sfrf %937 }
 0x421   :  { %p1343_p10 = scmp.ne.s32.totalorder %s938_s1, 0 }
 0x423   :  { %942 = shalt.err (%p1343_p10)  }
 0x424   :  { %944 = vsyncmov [#allocation3 + $0x7] }
 0x427   :  { %s945_s30 = vpop.sfrf %944 }
 0x428   :  { %p1344_p12 = scmp.ne.s32.totalorder %s945_s30, 0 }
 0x42a   :  { %949 = shalt.err (%p1344_p12)  }
 0x42b   :  { %951 = vsyncmov [#allocation3 + $0x8] }
 0x42e   :  { %s952_s16 = vpop.sfrf %951 }
 0x42f   :  { %p1345_p13 = scmp.ne.s32.totalorder %s952_s16, 0 }
 0x431   :  { %956 = shalt.err (%p1345_p13)  }
 0x432   :  { %958 = vsyncmov [#allocation3 + $0x9] }
 0x435   :  { %s959_s13 = vpop.sfrf %958 }
 0x436   :  { %p1346_p0 = scmp.ne.s32.totalorder %s959_s13, 0 }
 0x438   :  { %963 = shalt.err (%p1346_p0)  }
 0x439   :  { %965 = vsyncmov [#allocation3 + $0xa] }
 0x43c   :  { %s966_s23 = vpop.sfrf %965 }
 0x43d   :  { %p1347_p1 = scmp.ne.s32.totalorder %s966_s23, 0 }
 0x43f   :  { %970 = shalt.err (%p1347_p1)  }
 0x440   :  { %972 = vsyncmov [#allocation3 + $0xb] }
 0x443   :  { %s973_s27 = vpop.sfrf %972 }
 0x444   :  { %p1348_p2 = scmp.ne.s32.totalorder %s973_s27, 0 }
 0x446   :  { %977 = shalt.err (%p1348_p2)  }
 0x447   :  { %979 = vsyncmov [#allocation3 + $0xc] }
 0x44a   :  { %s980_s24 = vpop.sfrf %979 }
 0x44b   :  { %p1349_p4 = scmp.ne.s32.totalorder %s980_s24, 0 }
 0x44d   :  { %984 = shalt.err (%p1349_p4)  }
 0x44e   :  { %986 = vsyncmov [#allocation3 + $0xd] }
 0x451   :  { %s987_s22 = vpop.sfrf %986 }
 0x452   :  { %p1350_p3 = scmp.ne.s32.totalorder %s987_s22, 0 }
 0x454   :  { %991 = shalt.err (%p1350_p3)  }
 0x455   :  { %993 = vsyncmov [#allocation3 + $0xe] }
 0x458   :  { %s994_s8 = vpop.sfrf %993 }
 0x459   :  { %p1351_p5 = scmp.ne.s32.totalorder %s994_s8, 0 }
 0x45b   :  { %998 = shalt.err (%p1351_p5)  }
 0x45c   :  { %1000 = vsyncmov [#allocation3 + $0xf] }
 0x45f   :  { %s1001_s6 = vpop.sfrf %1000 }
 0x460   :  { %p1352_p6 = scmp.ne.s32.totalorder %s1001_s6, 0 }
 0x462   :  { %1005 = shalt.err (%p1352_p6)  }
 0x463   :  { %1007 = vsyncmov [#allocation3 + $0x10] }
 0x466   :  { %s1008_s7 = vpop.sfrf %1007 }
 0x467   :  { %p1353_p7 = scmp.ne.s32.totalorder %s1008_s7, 0 }
 0x469   :  { %1012 = shalt.err (%p1353_p7)  }
 0x46a   :  { %1014 = vsyncmov [#allocation3 + $0x11] }
 0x46d   :  { %s1015_s17 = vpop.sfrf %1014 }
 0x46e   :  { %p1354_p8 = scmp.ne.s32.totalorder %s1015_s17, 0 }
 0x470   :  { %1019 = shalt.err (%p1354_p8)  }
 0x471   :  { %1021 = vsyncmov [#allocation3 + $0x12] }
 0x474   :  { %s1022_s18 = vpop.sfrf %1021 }
 0x475   :  { %p1355_p9 = scmp.ne.s32.totalorder %s1022_s18, 0 }
 0x477   :  { %1026 = shalt.err (%p1355_p9)  }
 0x478   :  { %1028 = vsyncmov [#allocation3 + $0x13] }
 0x47b   :  { %s1029_s9 = vpop.sfrf %1028 }
 0x47c   :  { %p1356_p11 = scmp.ne.s32.totalorder %s1029_s9, 0 }
 0x47e   :  { %1033 = shalt.err (%p1356_p11)  }
 0x47f   :  { %1035 = vsyncmov [#allocation3 + $0x14] }
 0x482   :  { %s1036_s4 = vpop.sfrf %1035 }
 0x483   :  { %p1357_p10 = scmp.ne.s32.totalorder %s1036_s4, 0 }
 0x485   :  { %1040 = shalt.err (%p1357_p10)  }
 0x486   :  { %1042 = vsyncmov [#allocation3 + $0x15] }
 0x489   :  { %s1043_s14 = vpop.sfrf %1042 }
 0x48a   :  { %p1358_p12 = scmp.ne.s32.totalorder %s1043_s14, 0 }
 0x48c   :  { %1047 = shalt.err (%p1358_p12)  }
 0x48d   :  { %1049 = vsyncmov [#allocation3 + $0x16] }
 0x490   :  { %s1050_s5 = vpop.sfrf %1049 }
 0x491   :  { %p1359_p13 = scmp.ne.s32.totalorder %s1050_s5, 0 }
 0x493   :  { %1054 = shalt.err (%p1359_p13)  }
 0x494   :  { %1056 = vsyncmov [#allocation3 + $0x17] }
 0x497   :  { %s1057_s10 = vpop.sfrf %1056 }
 0x498   :  { %p1360_p0 = scmp.ne.s32.totalorder %s1057_s10, 0 }
 0x49a   :  { %1061 = shalt.err (%p1360_p0)  }
 0x49b   :  { %1063 = vsyncmov [#allocation3 + $0x18] }
 0x49e   :  { %s1064_s26 = vpop.sfrf %1063 }
 0x49f   :  { %p1361_p1 = scmp.ne.s32.totalorder %s1064_s26, 0 }
 0x4a1   :  { %1068 = shalt.err (%p1361_p1)  }
 0x4a2   :  { %1070 = vsyncmov [#allocation3 + $0x19] }
 0x4a5   :  { %s1071_s15 = vpop.sfrf %1070 }
 0x4a6   :  { %p1362_p2 = scmp.ne.s32.totalorder %s1071_s15, 0 }
 0x4a8   :  { %1075 = shalt.err (%p1362_p2)  }
 0x4a9   :  { %1077 = vsyncmov [#allocation3 + $0x1a] }
 0x4ac   :  { %s1078_s21 = vpop.sfrf %1077 }
 0x4ad   :  { %p1363_p4 = scmp.ne.s32.totalorder %s1078_s21, 0 }
 0x4af   :  { %1082 = shalt.err (%p1363_p4)  }
 0x4b0   :  { %1084 = vsyncmov [#allocation3 + $0x1b] }
 0x4b3   :  { %s1085_s0 = vpop.sfrf %1084 }
 0x4b4   :  { %p1364_p3 = scmp.ne.s32.totalorder %s1085_s0, 0 }
 0x4b6   :  { %1089 = shalt.err (%p1364_p3)  }
 0x4b7   :  { %1091 = vsyncmov [#allocation3 + $0x1c] }
 0x4ba   :  { %s1092_s25 = vpop.sfrf %1091 }
 0x4bb   :  { %p1365_p5 = scmp.ne.s32.totalorder %s1092_s25, 0 }
 0x4bd   :  { %1096 = shalt.err (%p1365_p5)  }
 0x4be   :  { %1098 = vsyncmov [#allocation3 + $0x1d] }
 0x4c1   :  { %s1099_s12 = vpop.sfrf %1098 }
 0x4c2   :  { %p1366_p6 = scmp.ne.s32.totalorder %s1099_s12, 0 }
 0x4c4   :  { %1103 = shalt.err (%p1366_p6)  }
 0x4c5   :  { %1105 = vsyncmov [#allocation3 + $0x1e] }
 0x4c8   :  { %s1106_s11 = vpop.sfrf %1105 }
 0x4c9   :  { %p1367_p7 = scmp.ne.s32.totalorder %s1106_s11, 0 }
 0x4cb   :  { %1110 = shalt.err (%p1367_p7)  }
 0x4cc   :  { %1112 = vsyncmov [#allocation3 + $0x1f] }
 0x4cf   :  { %s1113_s28 = vpop.sfrf %1112 }
 0x4d0   :  { %p1368_p8 = scmp.ne.s32.totalorder %s1113_s28, 0 }
 0x4d2   :  { %1117 = shalt.err (%p1368_p8)  }

</bundles_post_ra>
